<compile_context>
chip_gen: v7x
topology: tpu7x:2x2x1
jax: 0.10.0
libtpu: 0.0.40
codegen_flags: <defaults>
</compile_context>

<pallas_src>
import functools
import math

import jax
import jax.numpy as jnp
import numpy as np
from jax.experimental import pallas as pl
from jax.experimental.pallas import tpu as pltpu

# ----------------------------------------------------------------------------
# Config (small, consistent with the PyTorch module's __init__ shapes)
# ----------------------------------------------------------------------------
ENC_VOCAB = 64
DEC_VOCAB = 64
CONTEXT_LEN = 16
EMBED_DIM = 32
NUM_HEADS = 4
NUM_ENC_BLOCKS = 2
NUM_DEC_BLOCKS = 2
FFWD_DIM = 64
LN_EPS = 1e-5


# ----------------------------------------------------------------------------
# Fused whole-forward Pallas kernel (one grid step == one batch element)
# ----------------------------------------------------------------------------
def _transformer_kernel(num_heads,
                        enc_ids_ref, dec_ids_ref, pe_enc_ref, pe_dec_ref,
                        enc_emb_ref, dec_emb_ref,
                        enc_wq_ref, enc_wk_ref, enc_wv_ref, enc_wo_ref,
                        enc_w1_ref, enc_w2_ref, enc_lng_ref, enc_lnb_ref,
                        dec_sq_ref, dec_sk_ref, dec_sv_ref, dec_so_ref,
                        dec_cq_ref, dec_ck_ref, dec_cv_ref, dec_co_ref,
                        dec_w1_ref, dec_w2_ref, dec_lng_ref, dec_lnb_ref,
                        lm_head_ref, logits_ref):
    d = enc_emb_ref.shape[1]
    dh = d // num_heads
    scale = 1.0 / math.sqrt(dh)
    n_enc = enc_wq_ref.shape[0]
    n_dec = dec_sq_ref.shape[0]

    def layernorm(x, g, b):
        # x: (T, D); g/b: (1, D)
        mu = jnp.mean(x, axis=-1, keepdims=True)
        xc = x - mu
        var = jnp.mean(xc * xc, axis=-1, keepdims=True)
        return xc * jax.lax.rsqrt(var + LN_EPS) * g + b

    def mha(x_q, x_kv, wq, wk, wv, wo, causal):
        # x_q: (Tq, D), x_kv: (Tk, D); heads processed with static slices.
        q = jnp.dot(x_q, wq, preferred_element_type=jnp.float32) * scale
        k = jnp.dot(x_kv, wk, preferred_element_type=jnp.float32)
        v = jnp.dot(x_kv, wv, preferred_element_type=jnp.float32)
        tq, tk = x_q.shape[0], x_kv.shape[0]
        if causal:
            r = jax.lax.broadcasted_iota(jnp.int32, (tq, tk), 0)
            c = jax.lax.broadcasted_iota(jnp.int32, (tq, tk), 1)
            bias = jnp.where(r >= c, 0.0, -1e30).astype(jnp.float32)
        out = jnp.zeros((tq, d), jnp.float32)
        for h in range(num_heads):
            lo = h * dh
            qh = q[:, lo:lo + dh]
            kh = k[:, lo:lo + dh]
            vh = v[:, lo:lo + dh]
            # scores = qh @ kh^T (contract the head dim of both)
            s = jax.lax.dot_general(qh, kh, (((1,), (1,)), ((), ())),
                                    preferred_element_type=jnp.float32)
            if causal:
                s = s + bias
            m = jnp.max(s, axis=-1, keepdims=True)
            p = jnp.exp(s - m)
            l = jnp.sum(p, axis=-1, keepdims=True)
            oh = jnp.dot(p, vh, preferred_element_type=jnp.float32)
            oh = oh * pl.reciprocal(l, approx=True)
            # output projection decomposed over head-row-blocks of Wo
            out = out + jnp.dot(oh, wo[lo:lo + dh, :],
                                preferred_element_type=jnp.float32)
        return out

    def ffn(x, w1, w2):
        h = jnp.dot(x, w1, preferred_element_type=jnp.float32)
        h = jnp.maximum(h, 0.0)  # config.activation = F.relu
        return jnp.dot(h, w2, preferred_element_type=jnp.float32)

    def embed(ids_ref, emb_ref, pe_ref):
        # one-hot gather on the MXU: ids (T, 1) int32, emb (V, D)
        ids = ids_ref[0]                                      # (T, 1)
        t = ids.shape[0]
        vocab = emb_ref.shape[0]
        iota = jax.lax.broadcasted_iota(jnp.int32, (t, vocab), 1)
        onehot = (iota == ids).astype(jnp.float32)            # (T, V)
        x = jnp.dot(onehot, emb_ref[...],
                    preferred_element_type=jnp.float32)       # (T, D)
        return x + pe_ref[...]
        # TODO(synk): dropout after (tok + pos) is eval-mode identity here.

    # ---------------- encoder ----------------
    x = embed(enc_ids_ref, enc_emb_ref, pe_enc_ref)
    for blk in range(n_enc):
        a = mha(x, x, enc_wq_ref[blk], enc_wk_ref[blk], enc_wv_ref[blk],
                enc_wo_ref[blk], causal=False)
        x = layernorm(x + a, enc_lng_ref[2 * blk], enc_lnb_ref[2 * blk])
        f = ffn(x, enc_w1_ref[blk], enc_w2_ref[blk])
        x = layernorm(x + f, enc_lng_ref[2 * blk + 1], enc_lnb_ref[2 * blk + 1])
    enc_out = x

    # ---------------- decoder ----------------
    y = embed(dec_ids_ref, dec_emb_ref, pe_dec_ref)
    for blk in range(n_dec):
        a = mha(y, y, dec_sq_ref[blk], dec_sk_ref[blk], dec_sv_ref[blk],
                dec_so_ref[blk], causal=True)
        y = layernorm(y + a, dec_lng_ref[3 * blk], dec_lnb_ref[3 * blk])
        c = mha(y, enc_out, dec_cq_ref[blk], dec_ck_ref[blk], dec_cv_ref[blk],
                dec_co_ref[blk], causal=False)
        y = layernorm(y + c, dec_lng_ref[3 * blk + 1], dec_lnb_ref[3 * blk + 1])
        f = ffn(y, dec_w1_ref[blk], dec_w2_ref[blk])
        y = layernorm(y + f, dec_lng_ref[3 * blk + 2], dec_lnb_ref[3 * blk + 2])

    # lm_head (bias=False)
    logits = jnp.dot(y, lm_head_ref[...], preferred_element_type=jnp.float32)
    logits_ref[0] = logits


# ----------------------------------------------------------------------------
# Wrapper: one pallas_call for the whole forward
# ----------------------------------------------------------------------------
def transformer_forward(params, encoder_x, decoder_x):
    b, te = encoder_x.shape
    _, td = decoder_x.shape
    d = EMBED_DIM

    enc_ids = encoder_x.astype(jnp.int32)[:, :, None]   # (B, Te, 1)
    dec_ids = decoder_x.astype(jnp.int32)[:, :, None]   # (B, Td, 1)
    pe = params['pos_enc']
    pe_enc = pe[:te]                                     # (Te, D)
    pe_dec = pe[:td]                                     # (Td, D)
    enc = params['enc']
    dec = params['dec']

    inputs = (enc_ids, dec_ids, pe_enc, pe_dec,
              params['enc_emb'], params['dec_emb'],
              enc['wq'], enc['wk'], enc['wv'], enc['wo'],
              enc['w1'], enc['w2'], enc['ln_g'], enc['ln_b'],
              dec['sq'], dec['sk'], dec['sv'], dec['so'],
              dec['cq'], dec['ck'], dec['cv'], dec['co'],
              dec['w1'], dec['w2'], dec['ln_g'], dec['ln_b'],
              params['lm_head'])

    def _replicated(a):
        return pl.BlockSpec(a.shape, lambda i, _n=a.ndim: (0,) * _n)

    in_specs = [
        pl.BlockSpec((1, te, 1), lambda i: (i, 0, 0)),   # enc_ids
        pl.BlockSpec((1, td, 1), lambda i: (i, 0, 0)),   # dec_ids
    ] + [_replicated(a) for a in inputs[2:]]

    out_specs = pl.BlockSpec((1, td, DEC_VOCAB), lambda i: (i, 0, 0))

    kernel = functools.partial(_transformer_kernel, NUM_HEADS)

    return pl.pallas_call(
        kernel,
        out_shape=jax.ShapeDtypeStruct((b, td, DEC_VOCAB), jnp.float32),
        grid=(b,),
        in_specs=in_specs,
        out_specs=out_specs,
        compiler_params=pltpu.CompilerParams(
            dimension_semantics=("parallel",),
            vmem_limit_bytes=32 * 1024 * 1024),
    )(*inputs)


# ----------------------------------------------------------------------------
# Pure-JAX reference (for a coarse correctness check)
# ----------------------------------------------------------------------------
def _reference_forward(params, enc_x, dec_x):
    d, h = EMBED_DIM, NUM_HEADS
    dh = d // h
    pe = params['pos_enc']

    def ln(x, g, b):
        mu = jnp.mean(x, -1, keepdims=True)
        var = jnp.mean((x - mu) ** 2, -1, keepdims=True)
        return (x - mu) * jax.lax.rsqrt(var + LN_EPS) * g.reshape(1, 1, -1) \
            + b.reshape(1, 1, -1)

    def mha(xq, xkv, wq, wk, wv, wo, causal):
        bb, tq, _ = xq.shape
        tk = xkv.shape[1]
        q = (xq @ wq) / math.sqrt(dh)
        k = xkv @ wk
        v = xkv @ wv
        q = q.reshape(bb, tq, h, dh).transpose(0, 2, 1, 3)
        k = k.reshape(bb, tk, h, dh).transpose(0, 2, 1, 3)
        v = v.reshape(bb, tk, h, dh).transpose(0, 2, 1, 3)
        s = jnp.einsum('bhqd,bhkd->bhqk', q, k)
        if causal:
            mask = jnp.tril(jnp.ones((tq, tk)))
            s = jnp.where(mask > 0, s, -1e30)
        p = jax.nn.softmax(s, axis=-1)
        o = jnp.einsum('bhqk,bhkd->bhqd', p, v)
        o = o.transpose(0, 2, 1, 3).reshape(bb, tq, d)
        return o @ wo

    enc, dec = params['enc'], params['dec']
    _, te = enc_x.shape
    _, td = dec_x.shape
    x = params['enc_emb'][enc_x] + pe[None, :te]
    for i in range(NUM_ENC_BLOCKS):
        a = mha(x, x, enc['wq'][i], enc['wk'][i], enc['wv'][i], enc['wo'][i],
                False)
        x = ln(x + a, enc['ln_g'][2 * i], enc['ln_b'][2 * i])
        f = jnp.maximum(x @ enc['w1'][i], 0.0) @ enc['w2'][i]
        x = ln(x + f, enc['ln_g'][2 * i + 1], enc['ln_b'][2 * i + 1])
    enc_out = x

    y = params['dec_emb'][dec_x] + pe[None, :td]
    for i in range(NUM_DEC_BLOCKS):
        a = mha(y, y, dec['sq'][i], dec['sk'][i], dec['sv'][i], dec['so'][i],
                True)
        y = ln(y + a, dec['ln_g'][3 * i], dec['ln_b'][3 * i])
        c = mha(y, enc_out, dec['cq'][i], dec['ck'][i], dec['cv'][i],
                dec['co'][i], False)
        y = ln(y + c, dec['ln_g'][3 * i + 1], dec['ln_b'][3 * i + 1])
        f = jnp.maximum(y @ dec['w1'][i], 0.0) @ dec['w2'][i]
        y = ln(y + f, dec['ln_g'][3 * i + 2], dec['ln_b'][3 * i + 2])
    return y @ params['lm_head']


# ----------------------------------------------------------------------------
# Deterministic parameter init (weights pre-stacked per block)
# ----------------------------------------------------------------------------
def sinusoidal_positional_encoding(context_length, embed_dim):
    pos = np.arange(context_length)[:, None].astype(np.float32)
    i = np.arange(0, embed_dim, 2).astype(np.float32)
    div = np.exp(-math.log(10000.0) * i / embed_dim)
    pe = np.zeros((context_length, embed_dim), np.float32)
    pe[:, 0::2] = np.sin(pos * div)
    pe[:, 1::2] = np.cos(pos * div)
    return jnp.asarray(pe)


def init_params(key):
    keys = iter(jax.random.split(key, 64))

    def nrm(shape, scale=0.02):
        return scale * jax.random.normal(next(keys), shape, jnp.float32)

    d, f = EMBED_DIM, FFWD_DIM
    ne, nd = NUM_ENC_BLOCKS, NUM_DEC_BLOCKS
    return {
        'enc_emb': nrm((ENC_VOCAB, d)),
        'dec_emb': nrm((DEC_VOCAB, d)),
        'pos_enc': sinusoidal_positional_encoding(CONTEXT_LEN, d),
        'enc': {
            'wq': nrm((ne, d, d)), 'wk': nrm((ne, d, d)),
            'wv': nrm((ne, d, d)), 'wo': nrm((ne, d, d)),
            'w1': nrm((ne, d, f)), 'w2': nrm((ne, f, d)),
            'ln_g': jnp.ones((ne * 2, 1, d), jnp.float32),
            'ln_b': jnp.zeros((ne * 2, 1, d), jnp.float32),
        },
        'dec': {
            'sq': nrm((nd, d, d)), 'sk': nrm((nd, d, d)),
            'sv': nrm((nd, d, d)), 'so': nrm((nd, d, d)),
            'cq': nrm((nd, d, d)), 'ck': nrm((nd, d, d)),
            'cv': nrm((nd, d, d)), 'co': nrm((nd, d, d)),
            'w1': nrm((nd, d, f)), 'w2': nrm((nd, f, d)),
            'ln_g': jnp.ones((nd * 3, 1, d), jnp.float32),
            'ln_b': jnp.zeros((nd * 3, 1, d), jnp.float32),
        },
        'lm_head': nrm((d, DEC_VOCAB)),
    }


# ----------------------------------------------------------------------------
if __name__ == "__main__":
    key = jax.random.PRNGKey(0)
    k_param, k_enc, k_dec = jax.random.split(key, 3)

    params = init_params(k_param)

    B, ENC_T, DEC_T = 2, 8, 8
    encoder_x = jax.random.randint(k_enc, (B, ENC_T), 0, ENC_VOCAB,
                                   dtype=jnp.int32)
    decoder_x = jax.random.randint(k_dec, (B, DEC_T), 0, DEC_VOCAB,
                                   dtype=jnp.int32)

    logits = jax.jit(transformer_forward)(params, encoder_x, decoder_x)
    logits = jax.block_until_ready(logits)

    assert logits.shape == (B, DEC_T, DEC_VOCAB), logits.shape
    assert bool(jnp.all(jnp.isfinite(logits)))

    ref = jax.jit(_reference_forward)(params, encoder_x, decoder_x)
    np.testing.assert_allclose(np.asarray(logits), np.asarray(ref),
                               rtol=2e-2, atol=1e-4)

    print("KERNEL_OK")
</pallas_src>

<mosaic_0001>
module attributes {stable_mosaic.version = 11 : i64} {
  func.func @_transformer_kernel(%arg0: i32, %arg1: memref<1x8x1xi32, #tpu.memory_space<vmem>>, %arg2: memref<1x8x1xi32, #tpu.memory_space<vmem>>, %arg3: memref<8x32xf32, #tpu.memory_space<vmem>>, %arg4: memref<8x32xf32, #tpu.memory_space<vmem>>, %arg5: memref<64x32xf32, #tpu.memory_space<vmem>>, %arg6: memref<64x32xf32, #tpu.memory_space<vmem>>, %arg7: memref<2x32x32xf32, #tpu.memory_space<vmem>>, %arg8: memref<2x32x32xf32, #tpu.memory_space<vmem>>, %arg9: memref<2x32x32xf32, #tpu.memory_space<vmem>>, %arg10: memref<2x32x32xf32, #tpu.memory_space<vmem>>, %arg11: memref<2x32x64xf32, #tpu.memory_space<vmem>>, %arg12: memref<2x64x32xf32, #tpu.memory_space<vmem>>, %arg13: memref<4x1x32xf32, #tpu.memory_space<vmem>>, %arg14: memref<4x1x32xf32, #tpu.memory_space<vmem>>, %arg15: memref<2x32x32xf32, #tpu.memory_space<vmem>>, %arg16: memref<2x32x32xf32, #tpu.memory_space<vmem>>, %arg17: memref<2x32x32xf32, #tpu.memory_space<vmem>>, %arg18: memref<2x32x32xf32, #tpu.memory_space<vmem>>, %arg19: memref<2x32x32xf32, #tpu.memory_space<vmem>>, %arg20: memref<2x32x32xf32, #tpu.memory_space<vmem>>, %arg21: memref<2x32x32xf32, #tpu.memory_space<vmem>>, %arg22: memref<2x32x32xf32, #tpu.memory_space<vmem>>, %arg23: memref<2x32x64xf32, #tpu.memory_space<vmem>>, %arg24: memref<2x64x32xf32, #tpu.memory_space<vmem>>, %arg25: memref<6x1x32xf32, #tpu.memory_space<vmem>>, %arg26: memref<6x1x32xf32, #tpu.memory_space<vmem>>, %arg27: memref<32x64xf32, #tpu.memory_space<vmem>>, %arg28: memref<1x8x64xf32, #tpu.memory_space<vmem>>) attributes {dimension_semantics = [#tpu.dimension_semantics<parallel>], iteration_bounds = array<i64: 2>, scalar_prefetch = 0 : i64, scratch_operands = 0 : i64, tpu.core_type = #tpu.core_type<tc>, window_params = [{transform_indices = @transform_0, window_bounds = array<i64: 1, 8, 1>}, {transform_indices = @transform_1, window_bounds = array<i64: 1, 8, 1>}, {pipeline_mode = #tpu.pipeline_mode<synchronous>, transform_indices = @transform_2, window_bounds = array<i64: 8, 32>}, {pipeline_mode = #tpu.pipeline_mode<synchronous>, transform_indices = @transform_3, window_bounds = array<i64: 8, 32>}, {pipeline_mode = #tpu.pipeline_mode<synchronous>, transform_indices = @transform_4, window_bounds = array<i64: 64, 32>}, {pipeline_mode = #tpu.pipeline_mode<synchronous>, transform_indices = @transform_5, window_bounds = array<i64: 64, 32>}, {pipeline_mode = #tpu.pipeline_mode<synchronous>, transform_indices = @transform_6, window_bounds = array<i64: 2, 32, 32>}, {pipeline_mode = #tpu.pipeline_mode<synchronous>, transform_indices = @transform_7, window_bounds = array<i64: 2, 32, 32>}, {pipeline_mode = #tpu.pipeline_mode<synchronous>, transform_indices = @transform_8, window_bounds = array<i64: 2, 32, 32>}, {pipeline_mode = #tpu.pipeline_mode<synchronous>, transform_indices = @transform_9, window_bounds = array<i64: 2, 32, 32>}, {pipeline_mode = #tpu.pipeline_mode<synchronous>, transform_indices = @transform_10, window_bounds = array<i64: 2, 32, 64>}, {pipeline_mode = #tpu.pipeline_mode<synchronous>, transform_indices = @transform_11, window_bounds = array<i64: 2, 64, 32>}, {pipeline_mode = #tpu.pipeline_mode<synchronous>, transform_indices = @transform_12, window_bounds = array<i64: 4, 1, 32>}, {pipeline_mode = #tpu.pipeline_mode<synchronous>, transform_indices = @transform_13, window_bounds = array<i64: 4, 1, 32>}, {pipeline_mode = #tpu.pipeline_mode<synchronous>, transform_indices = @transform_14, window_bounds = array<i64: 2, 32, 32>}, {pipeline_mode = #tpu.pipeline_mode<synchronous>, transform_indices = @transform_15, window_bounds = array<i64: 2, 32, 32>}, {pipeline_mode = #tpu.pipeline_mode<synchronous>, transform_indices = @transform_16, window_bounds = array<i64: 2, 32, 32>}, {pipeline_mode = #tpu.pipeline_mode<synchronous>, transform_indices = @transform_17, window_bounds = array<i64: 2, 32, 32>}, {pipeline_mode = #tpu.pipeline_mode<synchronous>, transform_indices = @transform_18, window_bounds = array<i64: 2, 32, 32>}, {pipeline_mode = #tpu.pipeline_mode<synchronous>, transform_indices = @transform_19, window_bounds = array<i64: 2, 32, 32>}, {pipeline_mode = #tpu.pipeline_mode<synchronous>, transform_indices = @transform_20, window_bounds = array<i64: 2, 32, 32>}, {pipeline_mode = #tpu.pipeline_mode<synchronous>, transform_indices = @transform_21, window_bounds = array<i64: 2, 32, 32>}, {pipeline_mode = #tpu.pipeline_mode<synchronous>, transform_indices = @transform_22, window_bounds = array<i64: 2, 32, 64>}, {pipeline_mode = #tpu.pipeline_mode<synchronous>, transform_indices = @transform_23, window_bounds = array<i64: 2, 64, 32>}, {pipeline_mode = #tpu.pipeline_mode<synchronous>, transform_indices = @transform_24, window_bounds = array<i64: 6, 1, 32>}, {pipeline_mode = #tpu.pipeline_mode<synchronous>, transform_indices = @transform_25, window_bounds = array<i64: 6, 1, 32>}, {pipeline_mode = #tpu.pipeline_mode<synchronous>, transform_indices = @transform_26, window_bounds = array<i64: 32, 64>}, {transform_indices = @transform_27, window_bounds = array<i64: 1, 8, 64>}]} {
    %c0 = arith.constant 0 : index
    %c0_0 = arith.constant 0 : index
    %c0_1 = arith.constant 0 : index
    %0 = vector.load %arg1[%c0, %c0_0, %c0_1] : memref<1x8x1xi32, #tpu.memory_space<vmem>>, vector<1x8x1xi32>
    %1 = vector.shape_cast %0 : vector<1x8x1xi32> to vector<8x1xi32>
    %2 = tpu.iota {dimensions = array<i32: 1>} : vector<8x64xi32>
    %3 = vector.broadcast %1 : vector<8x1xi32> to vector<8x64xi32>
    %4 = arith.cmpi eq, %2, %3 : vector<8x64xi32>
    %5 = arith.extui %4 : vector<8x64xi1> to vector<8x64xi32>
    %6 = arith.sitofp %5 : vector<8x64xi32> to vector<8x64xf32>
    %c0_2 = arith.constant 0 : index
    %c0_3 = arith.constant 0 : index
    %7 = vector.load %arg5[%c0_2, %c0_3] : memref<64x32xf32, #tpu.memory_space<vmem>>, vector<64x32xf32>
    %cst = arith.constant dense<0.000000e+00> : vector<8x32xf32>
    %8 = tpu.matmul %6, %7, %cst {dimension_numbers = #tpu.dot_dimension_numbers<[1], [0], [0], [1], [0, 0, 1, 1], [], []>} : vector<8x64xf32>, vector<64x32xf32>, vector<8x32xf32> -> vector<8x32xf32>
    %c0_4 = arith.constant 0 : index
    %c0_5 = arith.constant 0 : index
    %9 = vector.load %arg3[%c0_4, %c0_5] : memref<8x32xf32, #tpu.memory_space<vmem>>, vector<8x32xf32>
    %10 = arith.addf %8, %9 : vector<8x32xf32>
    %c0_6 = arith.constant 0 : index
    %c0_7 = arith.constant 0 : index
    %c0_8 = arith.constant 0 : index
    %11 = vector.load %arg7[%c0_6, %c0_7, %c0_8] : memref<2x32x32xf32, #tpu.memory_space<vmem>>, vector<1x32x32xf32>
    %12 = vector.shape_cast %11 : vector<1x32x32xf32> to vector<32x32xf32>
    %c0_9 = arith.constant 0 : index
    %c0_10 = arith.constant 0 : index
    %c0_11 = arith.constant 0 : index
    %13 = vector.load %arg8[%c0_9, %c0_10, %c0_11] : memref<2x32x32xf32, #tpu.memory_space<vmem>>, vector<1x32x32xf32>
    %14 = vector.shape_cast %13 : vector<1x32x32xf32> to vector<32x32xf32>
    %c0_12 = arith.constant 0 : index
    %c0_13 = arith.constant 0 : index
    %c0_14 = arith.constant 0 : index
    %15 = vector.load %arg9[%c0_12, %c0_13, %c0_14] : memref<2x32x32xf32, #tpu.memory_space<vmem>>, vector<1x32x32xf32>
    %16 = vector.shape_cast %15 : vector<1x32x32xf32> to vector<32x32xf32>
    %c0_15 = arith.constant 0 : index
    %c0_16 = arith.constant 0 : index
    %c0_17 = arith.constant 0 : index
    %17 = vector.load %arg10[%c0_15, %c0_16, %c0_17] : memref<2x32x32xf32, #tpu.memory_space<vmem>>, vector<1x32x32xf32>
    %18 = vector.shape_cast %17 : vector<1x32x32xf32> to vector<32x32xf32>
    %cst_18 = arith.constant dense<0.000000e+00> : vector<8x32xf32>
    %19 = tpu.matmul %10, %12, %cst_18 {dimension_numbers = #tpu.dot_dimension_numbers<[1], [0], [0], [1], [0, 0, 1, 1], [], []>} : vector<8x32xf32>, vector<32x32xf32>, vector<8x32xf32> -> vector<8x32xf32>
    %cst_19 = arith.constant 0.353553385 : f32
    %20 = vector.broadcast %cst_19 : f32 to vector<8x32xf32>
    %21 = arith.mulf %19, %20 : vector<8x32xf32>
    %cst_20 = arith.constant dense<0.000000e+00> : vector<8x32xf32>
    %22 = tpu.matmul %10, %14, %cst_20 {dimension_numbers = #tpu.dot_dimension_numbers<[1], [0], [0], [1], [0, 0, 1, 1], [], []>} : vector<8x32xf32>, vector<32x32xf32>, vector<8x32xf32> -> vector<8x32xf32>
    %cst_21 = arith.constant dense<0.000000e+00> : vector<8x32xf32>
    %23 = tpu.matmul %10, %16, %cst_21 {dimension_numbers = #tpu.dot_dimension_numbers<[1], [0], [0], [1], [0, 0, 1, 1], [], []>} : vector<8x32xf32>, vector<32x32xf32>, vector<8x32xf32> -> vector<8x32xf32>
    %cst_22 = arith.constant 0.000000e+00 : f32
    %24 = vector.broadcast %cst_22 : f32 to vector<8x32xf32>
    %25 = vector.extract_strided_slice %21 {offsets = [0, 0], sizes = [8, 8], strides = [1, 1]} : vector<8x32xf32> to vector<8x8xf32>
    %26 = vector.extract_strided_slice %22 {offsets = [0, 0], sizes = [8, 8], strides = [1, 1]} : vector<8x32xf32> to vector<8x8xf32>
    %27 = vector.extract_strided_slice %23 {offsets = [0, 0], sizes = [8, 8], strides = [1, 1]} : vector<8x32xf32> to vector<8x8xf32>
    %cst_23 = arith.constant dense<0.000000e+00> : vector<8x8xf32>
    %28 = tpu.matmul %25, %26, %cst_23 {dimension_numbers = #tpu.dot_dimension_numbers<[1], [1], [0], [0], [0, 0, 1, 0], [], []>} : vector<8x8xf32>, vector<8x8xf32>, vector<8x8xf32> -> vector<8x8xf32>
    %cst_24 = arith.constant dense<0xFF800000> : vector<8xf32>
    %29 = vector.multi_reduction <maximumf>, %28, %cst_24 [1] : vector<8x8xf32> to vector<8xf32>
    %30 = vector.shape_cast %29 : vector<8xf32> to vector<8x1xf32>
    %31 = vector.broadcast %30 : vector<8x1xf32> to vector<8x8xf32>
    %32 = arith.subf %28, %31 : vector<8x8xf32>
    %33 = math.exp %32 : vector<8x8xf32>
    %cst_25 = arith.constant dense<0.000000e+00> : vector<8xf32>
    %34 = vector.multi_reduction <add>, %33, %cst_25 [1] : vector<8x8xf32> to vector<8xf32>
    %35 = vector.shape_cast %34 : vector<8xf32> to vector<8x1xf32>
    %cst_26 = arith.constant dense<0.000000e+00> : vector<8x8xf32>
    %36 = tpu.matmul %33, %27, %cst_26 {dimension_numbers = #tpu.dot_dimension_numbers<[1], [0], [0], [1], [0, 0, 1, 1], [], []>} : vector<8x8xf32>, vector<8x8xf32>, vector<8x8xf32> -> vector<8x8xf32>
    %37 = tpu.reciprocal %35 {approx = true} : vector<8x1xf32> -> vector<8x1xf32>
    %38 = vector.broadcast %37 : vector<8x1xf32> to vector<8x8xf32>
    %39 = arith.mulf %36, %38 : vector<8x8xf32>
    %40 = vector.extract_strided_slice %18 {offsets = [0, 0], sizes = [8, 32], strides = [1, 1]} : vector<32x32xf32> to vector<8x32xf32>
    %cst_27 = arith.constant dense<0.000000e+00> : vector<8x32xf32>
    %41 = tpu.matmul %39, %40, %cst_27 {dimension_numbers = #tpu.dot_dimension_numbers<[1], [0], [0], [1], [0, 0, 1, 1], [], []>} : vector<8x8xf32>, vector<8x32xf32>, vector<8x32xf32> -> vector<8x32xf32>
    %42 = arith.addf %24, %41 : vector<8x32xf32>
    %43 = vector.extract_strided_slice %21 {offsets = [0, 8], sizes = [8, 8], strides = [1, 1]} : vector<8x32xf32> to vector<8x8xf32>
    %44 = vector.extract_strided_slice %22 {offsets = [0, 8], sizes = [8, 8], strides = [1, 1]} : vector<8x32xf32> to vector<8x8xf32>
    %45 = vector.extract_strided_slice %23 {offsets = [0, 8], sizes = [8, 8], strides = [1, 1]} : vector<8x32xf32> to vector<8x8xf32>
    %cst_28 = arith.constant dense<0.000000e+00> : vector<8x8xf32>
    %46 = tpu.matmul %43, %44, %cst_28 {dimension_numbers = #tpu.dot_dimension_numbers<[1], [1], [0], [0], [0, 0, 1, 0], [], []>} : vector<8x8xf32>, vector<8x8xf32>, vector<8x8xf32> -> vector<8x8xf32>
    %cst_29 = arith.constant dense<0xFF800000> : vector<8xf32>
    %47 = vector.multi_reduction <maximumf>, %46, %cst_29 [1] : vector<8x8xf32> to vector<8xf32>
    %48 = vector.shape_cast %47 : vector<8xf32> to vector<8x1xf32>
    %49 = vector.broadcast %48 : vector<8x1xf32> to vector<8x8xf32>
    %50 = arith.subf %46, %49 : vector<8x8xf32>
    %51 = math.exp %50 : vector<8x8xf32>
    %cst_30 = arith.constant dense<0.000000e+00> : vector<8xf32>
    %52 = vector.multi_reduction <add>, %51, %cst_30 [1] : vector<8x8xf32> to vector<8xf32>
    %53 = vector.shape_cast %52 : vector<8xf32> to vector<8x1xf32>
    %cst_31 = arith.constant dense<0.000000e+00> : vector<8x8xf32>
    %54 = tpu.matmul %51, %45, %cst_31 {dimension_numbers = #tpu.dot_dimension_numbers<[1], [0], [0], [1], [0, 0, 1, 1], [], []>} : vector<8x8xf32>, vector<8x8xf32>, vector<8x8xf32> -> vector<8x8xf32>
    %55 = tpu.reciprocal %53 {approx = true} : vector<8x1xf32> -> vector<8x1xf32>
    %56 = vector.broadcast %55 : vector<8x1xf32> to vector<8x8xf32>
    %57 = arith.mulf %54, %56 : vector<8x8xf32>
    %58 = vector.extract_strided_slice %18 {offsets = [8, 0], sizes = [8, 32], strides = [1, 1]} : vector<32x32xf32> to vector<8x32xf32>
    %cst_32 = arith.constant dense<0.000000e+00> : vector<8x32xf32>
    %59 = tpu.matmul %57, %58, %cst_32 {dimension_numbers = #tpu.dot_dimension_numbers<[1], [0], [0], [1], [0, 0, 1, 1], [], []>} : vector<8x8xf32>, vector<8x32xf32>, vector<8x32xf32> -> vector<8x32xf32>
    %60 = arith.addf %42, %59 : vector<8x32xf32>
    %61 = vector.extract_strided_slice %21 {offsets = [0, 16], sizes = [8, 8], strides = [1, 1]} : vector<8x32xf32> to vector<8x8xf32>
    %62 = vector.extract_strided_slice %22 {offsets = [0, 16], sizes = [8, 8], strides = [1, 1]} : vector<8x32xf32> to vector<8x8xf32>
    %63 = vector.extract_strided_slice %23 {offsets = [0, 16], sizes = [8, 8], strides = [1, 1]} : vector<8x32xf32> to vector<8x8xf32>
    %cst_33 = arith.constant dense<0.000000e+00> : vector<8x8xf32>
    %64 = tpu.matmul %61, %62, %cst_33 {dimension_numbers = #tpu.dot_dimension_numbers<[1], [1], [0], [0], [0, 0, 1, 0], [], []>} : vector<8x8xf32>, vector<8x8xf32>, vector<8x8xf32> -> vector<8x8xf32>
    %cst_34 = arith.constant dense<0xFF800000> : vector<8xf32>
    %65 = vector.multi_reduction <maximumf>, %64, %cst_34 [1] : vector<8x8xf32> to vector<8xf32>
    %66 = vector.shape_cast %65 : vector<8xf32> to vector<8x1xf32>
    %67 = vector.broadcast %66 : vector<8x1xf32> to vector<8x8xf32>
    %68 = arith.subf %64, %67 : vector<8x8xf32>
    %69 = math.exp %68 : vector<8x8xf32>
    %cst_35 = arith.constant dense<0.000000e+00> : vector<8xf32>
    %70 = vector.multi_reduction <add>, %69, %cst_35 [1] : vector<8x8xf32> to vector<8xf32>
    %71 = vector.shape_cast %70 : vector<8xf32> to vector<8x1xf32>
    %cst_36 = arith.constant dense<0.000000e+00> : vector<8x8xf32>
    %72 = tpu.matmul %69, %63, %cst_36 {dimension_numbers = #tpu.dot_dimension_numbers<[1], [0], [0], [1], [0, 0, 1, 1], [], []>} : vector<8x8xf32>, vector<8x8xf32>, vector<8x8xf32> -> vector<8x8xf32>
    %73 = tpu.reciprocal %71 {approx = true} : vector<8x1xf32> -> vector<8x1xf32>
    %74 = vector.broadcast %73 : vector<8x1xf32> to vector<8x8xf32>
    %75 = arith.mulf %72, %74 : vector<8x8xf32>
    %76 = vector.extract_strided_slice %18 {offsets = [16, 0], sizes = [8, 32], strides = [1, 1]} : vector<32x32xf32> to vector<8x32xf32>
    %cst_37 = arith.constant dense<0.000000e+00> : vector<8x32xf32>
    %77 = tpu.matmul %75, %76, %cst_37 {dimension_numbers = #tpu.dot_dimension_numbers<[1], [0], [0], [1], [0, 0, 1, 1], [], []>} : vector<8x8xf32>, vector<8x32xf32>, vector<8x32xf32> -> vector<8x32xf32>
    %78 = arith.addf %60, %77 : vector<8x32xf32>
    %79 = vector.extract_strided_slice %21 {offsets = [0, 24], sizes = [8, 8], strides = [1, 1]} : vector<8x32xf32> to vector<8x8xf32>
    %80 = vector.extract_strided_slice %22 {offsets = [0, 24], sizes = [8, 8], strides = [1, 1]} : vector<8x32xf32> to vector<8x8xf32>
    %81 = vector.extract_strided_slice %23 {offsets = [0, 24], sizes = [8, 8], strides = [1, 1]} : vector<8x32xf32> to vector<8x8xf32>
    %cst_38 = arith.constant dense<0.000000e+00> : vector<8x8xf32>
    %82 = tpu.matmul %79, %80, %cst_38 {dimension_numbers = #tpu.dot_dimension_numbers<[1], [1], [0], [0], [0, 0, 1, 0], [], []>} : vector<8x8xf32>, vector<8x8xf32>, vector<8x8xf32> -> vector<8x8xf32>
    %cst_39 = arith.constant dense<0xFF800000> : vector<8xf32>
    %83 = vector.multi_reduction <maximumf>, %82, %cst_39 [1] : vector<8x8xf32> to vector<8xf32>
    %84 = vector.shape_cast %83 : vector<8xf32> to vector<8x1xf32>
    %85 = vector.broadcast %84 : vector<8x1xf32> to vector<8x8xf32>
    %86 = arith.subf %82, %85 : vector<8x8xf32>
    %87 = math.exp %86 : vector<8x8xf32>
    %cst_40 = arith.constant dense<0.000000e+00> : vector<8xf32>
    %88 = vector.multi_reduction <add>, %87, %cst_40 [1] : vector<8x8xf32> to vector<8xf32>
    %89 = vector.shape_cast %88 : vector<8xf32> to vector<8x1xf32>
    %cst_41 = arith.constant dense<0.000000e+00> : vector<8x8xf32>
    %90 = tpu.matmul %87, %81, %cst_41 {dimension_numbers = #tpu.dot_dimension_numbers<[1], [0], [0], [1], [0, 0, 1, 1], [], []>} : vector<8x8xf32>, vector<8x8xf32>, vector<8x8xf32> -> vector<8x8xf32>
    %91 = tpu.reciprocal %89 {approx = true} : vector<8x1xf32> -> vector<8x1xf32>
    %92 = vector.broadcast %91 : vector<8x1xf32> to vector<8x8xf32>
    %93 = arith.mulf %90, %92 : vector<8x8xf32>
    %94 = vector.extract_strided_slice %18 {offsets = [24, 0], sizes = [8, 32], strides = [1, 1]} : vector<32x32xf32> to vector<8x32xf32>
    %cst_42 = arith.constant dense<0.000000e+00> : vector<8x32xf32>
    %95 = tpu.matmul %93, %94, %cst_42 {dimension_numbers = #tpu.dot_dimension_numbers<[1], [0], [0], [1], [0, 0, 1, 1], [], []>} : vector<8x8xf32>, vector<8x32xf32>, vector<8x32xf32> -> vector<8x32xf32>
    %96 = arith.addf %78, %95 : vector<8x32xf32>
    %97 = arith.addf %10, %96 : vector<8x32xf32>
    %c0_43 = arith.constant 0 : index
    %c0_44 = arith.constant 0 : index
    %c0_45 = arith.constant 0 : index
    %98 = vector.load %arg13[%c0_43, %c0_44, %c0_45] : memref<4x1x32xf32, #tpu.memory_space<vmem>>, vector<1x1x32xf32>
    %99 = vector.shape_cast %98 : vector<1x1x32xf32> to vector<1x32xf32>
    %c0_46 = arith.constant 0 : index
    %c0_47 = arith.constant 0 : index
    %c0_48 = arith.constant 0 : index
    %100 = vector.load %arg14[%c0_46, %c0_47, %c0_48] : memref<4x1x32xf32, #tpu.memory_space<vmem>>, vector<1x1x32xf32>
    %101 = vector.shape_cast %100 : vector<1x1x32xf32> to vector<1x32xf32>
    %cst_49 = arith.constant dense<0.000000e+00> : vector<8xf32>
    %102 = vector.multi_reduction <add>, %97, %cst_49 [1] : vector<8x32xf32> to vector<8xf32>
    %103 = vector.shape_cast %102 : vector<8xf32> to vector<8x1xf32>
    %cst_50 = arith.constant 3.200000e+01 : f32
    %104 = vector.broadcast %cst_50 : f32 to vector<8x1xf32>
    %105 = arith.divf %103, %104 : vector<8x1xf32>
    %106 = vector.broadcast %105 : vector<8x1xf32> to vector<8x32xf32>
    %107 = arith.subf %97, %106 : vector<8x32xf32>
    %108 = arith.mulf %107, %107 : vector<8x32xf32>
    %cst_51 = arith.constant dense<0.000000e+00> : vector<8xf32>
    %109 = vector.multi_reduction <add>, %108, %cst_51 [1] : vector<8x32xf32> to vector<8xf32>
    %110 = vector.shape_cast %109 : vector<8xf32> to vector<8x1xf32>
    %cst_52 = arith.constant 3.200000e+01 : f32
    %111 = vector.broadcast %cst_52 : f32 to vector<8x1xf32>
    %112 = arith.divf %110, %111 : vector<8x1xf32>
    %cst_53 = arith.constant 9.99999974E-6 : f32
    %113 = vector.broadcast %cst_53 : f32 to vector<8x1xf32>
    %114 = arith.addf %112, %113 : vector<8x1xf32>
    %115 = math.rsqrt %114 : vector<8x1xf32>
    %116 = vector.broadcast %115 : vector<8x1xf32> to vector<8x32xf32>
    %117 = arith.mulf %107, %116 : vector<8x32xf32>
    %118 = vector.broadcast %99 : vector<1x32xf32> to vector<8x32xf32>
    %119 = arith.mulf %117, %118 : vector<8x32xf32>
    %120 = vector.broadcast %101 : vector<1x32xf32> to vector<8x32xf32>
    %121 = arith.addf %119, %120 : vector<8x32xf32>
    %c0_54 = arith.constant 0 : index
    %c0_55 = arith.constant 0 : index
    %c0_56 = arith.constant 0 : index
    %122 = vector.load %arg11[%c0_54, %c0_55, %c0_56] : memref<2x32x64xf32, #tpu.memory_space<vmem>>, vector<1x32x64xf32>
    %123 = vector.shape_cast %122 : vector<1x32x64xf32> to vector<32x64xf32>
    %c0_57 = arith.constant 0 : index
    %c0_58 = arith.constant 0 : index
    %c0_59 = arith.constant 0 : index
    %124 = vector.load %arg12[%c0_57, %c0_58, %c0_59] : memref<2x64x32xf32, #tpu.memory_space<vmem>>, vector<1x64x32xf32>
    %125 = vector.shape_cast %124 : vector<1x64x32xf32> to vector<64x32xf32>
    %cst_60 = arith.constant dense<0.000000e+00> : vector<8x64xf32>
    %126 = tpu.matmul %121, %123, %cst_60 {dimension_numbers = #tpu.dot_dimension_numbers<[1], [0], [0], [1], [0, 0, 1, 1], [], []>} : vector<8x32xf32>, vector<32x64xf32>, vector<8x64xf32> -> vector<8x64xf32>
    %cst_61 = arith.constant 0.000000e+00 : f32
    %127 = vector.broadcast %cst_61 : f32 to vector<8x64xf32>
    %128 = arith.maximumf %126, %127 : vector<8x64xf32>
    %cst_62 = arith.constant dense<0.000000e+00> : vector<8x32xf32>
    %129 = tpu.matmul %128, %125, %cst_62 {dimension_numbers = #tpu.dot_dimension_numbers<[1], [0], [0], [1], [0, 0, 1, 1], [], []>} : vector<8x64xf32>, vector<64x32xf32>, vector<8x32xf32> -> vector<8x32xf32>
    %130 = arith.addf %121, %129 : vector<8x32xf32>
    %c1 = arith.constant 1 : index
    %c0_63 = arith.constant 0 : index
    %c0_64 = arith.constant 0 : index
    %131 = vector.load %arg13[%c1, %c0_63, %c0_64] : memref<4x1x32xf32, #tpu.memory_space<vmem>>, vector<1x1x32xf32>
    %132 = vector.shape_cast %131 : vector<1x1x32xf32> to vector<1x32xf32>
    %c1_65 = arith.constant 1 : index
    %c0_66 = arith.constant 0 : index
    %c0_67 = arith.constant 0 : index
    %133 = vector.load %arg14[%c1_65, %c0_66, %c0_67] : memref<4x1x32xf32, #tpu.memory_space<vmem>>, vector<1x1x32xf32>
    %134 = vector.shape_cast %133 : vector<1x1x32xf32> to vector<1x32xf32>
    %cst_68 = arith.constant dense<0.000000e+00> : vector<8xf32>
    %135 = vector.multi_reduction <add>, %130, %cst_68 [1] : vector<8x32xf32> to vector<8xf32>
    %136 = vector.shape_cast %135 : vector<8xf32> to vector<8x1xf32>
    %cst_69 = arith.constant 3.200000e+01 : f32
    %137 = vector.broadcast %cst_69 : f32 to vector<8x1xf32>
    %138 = arith.divf %136, %137 : vector<8x1xf32>
    %139 = vector.broadcast %138 : vector<8x1xf32> to vector<8x32xf32>
    %140 = arith.subf %130, %139 : vector<8x32xf32>
    %141 = arith.mulf %140, %140 : vector<8x32xf32>
    %cst_70 = arith.constant dense<0.000000e+00> : vector<8xf32>
    %142 = vector.multi_reduction <add>, %141, %cst_70 [1] : vector<8x32xf32> to vector<8xf32>
    %143 = vector.shape_cast %142 : vector<8xf32> to vector<8x1xf32>
    %cst_71 = arith.constant 3.200000e+01 : f32
    %144 = vector.broadcast %cst_71 : f32 to vector<8x1xf32>
    %145 = arith.divf %143, %144 : vector<8x1xf32>
    %cst_72 = arith.constant 9.99999974E-6 : f32
    %146 = vector.broadcast %cst_72 : f32 to vector<8x1xf32>
    %147 = arith.addf %145, %146 : vector<8x1xf32>
    %148 = math.rsqrt %147 : vector<8x1xf32>
    %149 = vector.broadcast %148 : vector<8x1xf32> to vector<8x32xf32>
    %150 = arith.mulf %140, %149 : vector<8x32xf32>
    %151 = vector.broadcast %132 : vector<1x32xf32> to vector<8x32xf32>
    %152 = arith.mulf %150, %151 : vector<8x32xf32>
    %153 = vector.broadcast %134 : vector<1x32xf32> to vector<8x32xf32>
    %154 = arith.addf %152, %153 : vector<8x32xf32>
    %c1_73 = arith.constant 1 : index
    %c0_74 = arith.constant 0 : index
    %c0_75 = arith.constant 0 : index
    %155 = vector.load %arg7[%c1_73, %c0_74, %c0_75] : memref<2x32x32xf32, #tpu.memory_space<vmem>>, vector<1x32x32xf32>
    %156 = vector.shape_cast %155 : vector<1x32x32xf32> to vector<32x32xf32>
    %c1_76 = arith.constant 1 : index
    %c0_77 = arith.constant 0 : index
    %c0_78 = arith.constant 0 : index
    %157 = vector.load %arg8[%c1_76, %c0_77, %c0_78] : memref<2x32x32xf32, #tpu.memory_space<vmem>>, vector<1x32x32xf32>
    %158 = vector.shape_cast %157 : vector<1x32x32xf32> to vector<32x32xf32>
    %c1_79 = arith.constant 1 : index
    %c0_80 = arith.constant 0 : index
    %c0_81 = arith.constant 0 : index
    %159 = vector.load %arg9[%c1_79, %c0_80, %c0_81] : memref<2x32x32xf32, #tpu.memory_space<vmem>>, vector<1x32x32xf32>
    %160 = vector.shape_cast %159 : vector<1x32x32xf32> to vector<32x32xf32>
    %c1_82 = arith.constant 1 : index
    %c0_83 = arith.constant 0 : index
    %c0_84 = arith.constant 0 : index
    %161 = vector.load %arg10[%c1_82, %c0_83, %c0_84] : memref<2x32x32xf32, #tpu.memory_space<vmem>>, vector<1x32x32xf32>
    %162 = vector.shape_cast %161 : vector<1x32x32xf32> to vector<32x32xf32>
    %cst_85 = arith.constant dense<0.000000e+00> : vector<8x32xf32>
    %163 = tpu.matmul %154, %156, %cst_85 {dimension_numbers = #tpu.dot_dimension_numbers<[1], [0], [0], [1], [0, 0, 1, 1], [], []>} : vector<8x32xf32>, vector<32x32xf32>, vector<8x32xf32> -> vector<8x32xf32>
    %cst_86 = arith.constant 0.353553385 : f32
    %164 = vector.broadcast %cst_86 : f32 to vector<8x32xf32>
    %165 = arith.mulf %163, %164 : vector<8x32xf32>
    %cst_87 = arith.constant dense<0.000000e+00> : vector<8x32xf32>
    %166 = tpu.matmul %154, %158, %cst_87 {dimension_numbers = #tpu.dot_dimension_numbers<[1], [0], [0], [1], [0, 0, 1, 1], [], []>} : vector<8x32xf32>, vector<32x32xf32>, vector<8x32xf32> -> vector<8x32xf32>
    %cst_88 = arith.constant dense<0.000000e+00> : vector<8x32xf32>
    %167 = tpu.matmul %154, %160, %cst_88 {dimension_numbers = #tpu.dot_dimension_numbers<[1], [0], [0], [1], [0, 0, 1, 1], [], []>} : vector<8x32xf32>, vector<32x32xf32>, vector<8x32xf32> -> vector<8x32xf32>
    %cst_89 = arith.constant 0.000000e+00 : f32
    %168 = vector.broadcast %cst_89 : f32 to vector<8x32xf32>
    %169 = vector.extract_strided_slice %165 {offsets = [0, 0], sizes = [8, 8], strides = [1, 1]} : vector<8x32xf32> to vector<8x8xf32>
    %170 = vector.extract_strided_slice %166 {offsets = [0, 0], sizes = [8, 8], strides = [1, 1]} : vector<8x32xf32> to vector<8x8xf32>
    %171 = vector.extract_strided_slice %167 {offsets = [0, 0], sizes = [8, 8], strides = [1, 1]} : vector<8x32xf32> to vector<8x8xf32>
    %cst_90 = arith.constant dense<0.000000e+00> : vector<8x8xf32>
    %172 = tpu.matmul %169, %170, %cst_90 {dimension_numbers = #tpu.dot_dimension_numbers<[1], [1], [0], [0], [0, 0, 1, 0], [], []>} : vector<8x8xf32>, vector<8x8xf32>, vector<8x8xf32> -> vector<8x8xf32>
    %cst_91 = arith.constant dense<0xFF800000> : vector<8xf32>
    %173 = vector.multi_reduction <maximumf>, %172, %cst_91 [1] : vector<8x8xf32> to vector<8xf32>
    %174 = vector.shape_cast %173 : vector<8xf32> to vector<8x1xf32>
    %175 = vector.broadcast %174 : vector<8x1xf32> to vector<8x8xf32>
    %176 = arith.subf %172, %175 : vector<8x8xf32>
    %177 = math.exp %176 : vector<8x8xf32>
    %cst_92 = arith.constant dense<0.000000e+00> : vector<8xf32>
    %178 = vector.multi_reduction <add>, %177, %cst_92 [1] : vector<8x8xf32> to vector<8xf32>
    %179 = vector.shape_cast %178 : vector<8xf32> to vector<8x1xf32>
    %cst_93 = arith.constant dense<0.000000e+00> : vector<8x8xf32>
    %180 = tpu.matmul %177, %171, %cst_93 {dimension_numbers = #tpu.dot_dimension_numbers<[1], [0], [0], [1], [0, 0, 1, 1], [], []>} : vector<8x8xf32>, vector<8x8xf32>, vector<8x8xf32> -> vector<8x8xf32>
    %181 = tpu.reciprocal %179 {approx = true} : vector<8x1xf32> -> vector<8x1xf32>
    %182 = vector.broadcast %181 : vector<8x1xf32> to vector<8x8xf32>
    %183 = arith.mulf %180, %182 : vector<8x8xf32>
    %184 = vector.extract_strided_slice %162 {offsets = [0, 0], sizes = [8, 32], strides = [1, 1]} : vector<32x32xf32> to vector<8x32xf32>
    %cst_94 = arith.constant dense<0.000000e+00> : vector<8x32xf32>
    %185 = tpu.matmul %183, %184, %cst_94 {dimension_numbers = #tpu.dot_dimension_numbers<[1], [0], [0], [1], [0, 0, 1, 1], [], []>} : vector<8x8xf32>, vector<8x32xf32>, vector<8x32xf32> -> vector<8x32xf32>
    %186 = arith.addf %168, %185 : vector<8x32xf32>
    %187 = vector.extract_strided_slice %165 {offsets = [0, 8], sizes = [8, 8], strides = [1, 1]} : vector<8x32xf32> to vector<8x8xf32>
    %188 = vector.extract_strided_slice %166 {offsets = [0, 8], sizes = [8, 8], strides = [1, 1]} : vector<8x32xf32> to vector<8x8xf32>
    %189 = vector.extract_strided_slice %167 {offsets = [0, 8], sizes = [8, 8], strides = [1, 1]} : vector<8x32xf32> to vector<8x8xf32>
    %cst_95 = arith.constant dense<0.000000e+00> : vector<8x8xf32>
    %190 = tpu.matmul %187, %188, %cst_95 {dimension_numbers = #tpu.dot_dimension_numbers<[1], [1], [0], [0], [0, 0, 1, 0], [], []>} : vector<8x8xf32>, vector<8x8xf32>, vector<8x8xf32> -> vector<8x8xf32>
    %cst_96 = arith.constant dense<0xFF800000> : vector<8xf32>
    %191 = vector.multi_reduction <maximumf>, %190, %cst_96 [1] : vector<8x8xf32> to vector<8xf32>
    %192 = vector.shape_cast %191 : vector<8xf32> to vector<8x1xf32>
    %193 = vector.broadcast %192 : vector<8x1xf32> to vector<8x8xf32>
    %194 = arith.subf %190, %193 : vector<8x8xf32>
    %195 = math.exp %194 : vector<8x8xf32>
    %cst_97 = arith.constant dense<0.000000e+00> : vector<8xf32>
    %196 = vector.multi_reduction <add>, %195, %cst_97 [1] : vector<8x8xf32> to vector<8xf32>
    %197 = vector.shape_cast %196 : vector<8xf32> to vector<8x1xf32>
    %cst_98 = arith.constant dense<0.000000e+00> : vector<8x8xf32>
    %198 = tpu.matmul %195, %189, %cst_98 {dimension_numbers = #tpu.dot_dimension_numbers<[1], [0], [0], [1], [0, 0, 1, 1], [], []>} : vector<8x8xf32>, vector<8x8xf32>, vector<8x8xf32> -> vector<8x8xf32>
    %199 = tpu.reciprocal %197 {approx = true} : vector<8x1xf32> -> vector<8x1xf32>
    %200 = vector.broadcast %199 : vector<8x1xf32> to vector<8x8xf32>
    %201 = arith.mulf %198, %200 : vector<8x8xf32>
    %202 = vector.extract_strided_slice %162 {offsets = [8, 0], sizes = [8, 32], strides = [1, 1]} : vector<32x32xf32> to vector<8x32xf32>
    %cst_99 = arith.constant dense<0.000000e+00> : vector<8x32xf32>
    %203 = tpu.matmul %201, %202, %cst_99 {dimension_numbers = #tpu.dot_dimension_numbers<[1], [0], [0], [1], [0, 0, 1, 1], [], []>} : vector<8x8xf32>, vector<8x32xf32>, vector<8x32xf32> -> vector<8x32xf32>
    %204 = arith.addf %186, %203 : vector<8x32xf32>
    %205 = vector.extract_strided_slice %165 {offsets = [0, 16], sizes = [8, 8], strides = [1, 1]} : vector<8x32xf32> to vector<8x8xf32>
    %206 = vector.extract_strided_slice %166 {offsets = [0, 16], sizes = [8, 8], strides = [1, 1]} : vector<8x32xf32> to vector<8x8xf32>
    %207 = vector.extract_strided_slice %167 {offsets = [0, 16], sizes = [8, 8], strides = [1, 1]} : vector<8x32xf32> to vector<8x8xf32>
    %cst_100 = arith.constant dense<0.000000e+00> : vector<8x8xf32>
    %208 = tpu.matmul %205, %206, %cst_100 {dimension_numbers = #tpu.dot_dimension_numbers<[1], [1], [0], [0], [0, 0, 1, 0], [], []>} : vector<8x8xf32>, vector<8x8xf32>, vector<8x8xf32> -> vector<8x8xf32>
    %cst_101 = arith.constant dense<0xFF800000> : vector<8xf32>
    %209 = vector.multi_reduction <maximumf>, %208, %cst_101 [1] : vector<8x8xf32> to vector<8xf32>
    %210 = vector.shape_cast %209 : vector<8xf32> to vector<8x1xf32>
    %211 = vector.broadcast %210 : vector<8x1xf32> to vector<8x8xf32>
    %212 = arith.subf %208, %211 : vector<8x8xf32>
    %213 = math.exp %212 : vector<8x8xf32>
    %cst_102 = arith.constant dense<0.000000e+00> : vector<8xf32>
    %214 = vector.multi_reduction <add>, %213, %cst_102 [1] : vector<8x8xf32> to vector<8xf32>
    %215 = vector.shape_cast %214 : vector<8xf32> to vector<8x1xf32>
    %cst_103 = arith.constant dense<0.000000e+00> : vector<8x8xf32>
    %216 = tpu.matmul %213, %207, %cst_103 {dimension_numbers = #tpu.dot_dimension_numbers<[1], [0], [0], [1], [0, 0, 1, 1], [], []>} : vector<8x8xf32>, vector<8x8xf32>, vector<8x8xf32> -> vector<8x8xf32>
    %217 = tpu.reciprocal %215 {approx = true} : vector<8x1xf32> -> vector<8x1xf32>
    %218 = vector.broadcast %217 : vector<8x1xf32> to vector<8x8xf32>
    %219 = arith.mulf %216, %218 : vector<8x8xf32>
    %220 = vector.extract_strided_slice %162 {offsets = [16, 0], sizes = [8, 32], strides = [1, 1]} : vector<32x32xf32> to vector<8x32xf32>
    %cst_104 = arith.constant dense<0.000000e+00> : vector<8x32xf32>
    %221 = tpu.matmul %219, %220, %cst_104 {dimension_numbers = #tpu.dot_dimension_numbers<[1], [0], [0], [1], [0, 0, 1, 1], [], []>} : vector<8x8xf32>, vector<8x32xf32>, vector<8x32xf32> -> vector<8x32xf32>
    %222 = arith.addf %204, %221 : vector<8x32xf32>
    %223 = vector.extract_strided_slice %165 {offsets = [0, 24], sizes = [8, 8], strides = [1, 1]} : vector<8x32xf32> to vector<8x8xf32>
    %224 = vector.extract_strided_slice %166 {offsets = [0, 24], sizes = [8, 8], strides = [1, 1]} : vector<8x32xf32> to vector<8x8xf32>
    %225 = vector.extract_strided_slice %167 {offsets = [0, 24], sizes = [8, 8], strides = [1, 1]} : vector<8x32xf32> to vector<8x8xf32>
    %cst_105 = arith.constant dense<0.000000e+00> : vector<8x8xf32>
    %226 = tpu.matmul %223, %224, %cst_105 {dimension_numbers = #tpu.dot_dimension_numbers<[1], [1], [0], [0], [0, 0, 1, 0], [], []>} : vector<8x8xf32>, vector<8x8xf32>, vector<8x8xf32> -> vector<8x8xf32>
    %cst_106 = arith.constant dense<0xFF800000> : vector<8xf32>
    %227 = vector.multi_reduction <maximumf>, %226, %cst_106 [1] : vector<8x8xf32> to vector<8xf32>
    %228 = vector.shape_cast %227 : vector<8xf32> to vector<8x1xf32>
    %229 = vector.broadcast %228 : vector<8x1xf32> to vector<8x8xf32>
    %230 = arith.subf %226, %229 : vector<8x8xf32>
    %231 = math.exp %230 : vector<8x8xf32>
    %cst_107 = arith.constant dense<0.000000e+00> : vector<8xf32>
    %232 = vector.multi_reduction <add>, %231, %cst_107 [1] : vector<8x8xf32> to vector<8xf32>
    %233 = vector.shape_cast %232 : vector<8xf32> to vector<8x1xf32>
    %cst_108 = arith.constant dense<0.000000e+00> : vector<8x8xf32>
    %234 = tpu.matmul %231, %225, %cst_108 {dimension_numbers = #tpu.dot_dimension_numbers<[1], [0], [0], [1], [0, 0, 1, 1], [], []>} : vector<8x8xf32>, vector<8x8xf32>, vector<8x8xf32> -> vector<8x8xf32>
    %235 = tpu.reciprocal %233 {approx = true} : vector<8x1xf32> -> vector<8x1xf32>
    %236 = vector.broadcast %235 : vector<8x1xf32> to vector<8x8xf32>
    %237 = arith.mulf %234, %236 : vector<8x8xf32>
    %238 = vector.extract_strided_slice %162 {offsets = [24, 0], sizes = [8, 32], strides = [1, 1]} : vector<32x32xf32> to vector<8x32xf32>
    %cst_109 = arith.constant dense<0.000000e+00> : vector<8x32xf32>
    %239 = tpu.matmul %237, %238, %cst_109 {dimension_numbers = #tpu.dot_dimension_numbers<[1], [0], [0], [1], [0, 0, 1, 1], [], []>} : vector<8x8xf32>, vector<8x32xf32>, vector<8x32xf32> -> vector<8x32xf32>
    %240 = arith.addf %222, %239 : vector<8x32xf32>
    %241 = arith.addf %154, %240 : vector<8x32xf32>
    %c2 = arith.constant 2 : index
    %c0_110 = arith.constant 0 : index
    %c0_111 = arith.constant 0 : index
    %242 = vector.load %arg13[%c2, %c0_110, %c0_111] : memref<4x1x32xf32, #tpu.memory_space<vmem>>, vector<1x1x32xf32>
    %243 = vector.shape_cast %242 : vector<1x1x32xf32> to vector<1x32xf32>
    %c2_112 = arith.constant 2 : index
    %c0_113 = arith.constant 0 : index
    %c0_114 = arith.constant 0 : index
    %244 = vector.load %arg14[%c2_112, %c0_113, %c0_114] : memref<4x1x32xf32, #tpu.memory_space<vmem>>, vector<1x1x32xf32>
    %245 = vector.shape_cast %244 : vector<1x1x32xf32> to vector<1x32xf32>
    %cst_115 = arith.constant dense<0.000000e+00> : vector<8xf32>
    %246 = vector.multi_reduction <add>, %241, %cst_115 [1] : vector<8x32xf32> to vector<8xf32>
    %247 = vector.shape_cast %246 : vector<8xf32> to vector<8x1xf32>
    %cst_116 = arith.constant 3.200000e+01 : f32
    %248 = vector.broadcast %cst_116 : f32 to vector<8x1xf32>
    %249 = arith.divf %247, %248 : vector<8x1xf32>
    %250 = vector.broadcast %249 : vector<8x1xf32> to vector<8x32xf32>
    %251 = arith.subf %241, %250 : vector<8x32xf32>
    %252 = arith.mulf %251, %251 : vector<8x32xf32>
    %cst_117 = arith.constant dense<0.000000e+00> : vector<8xf32>
    %253 = vector.multi_reduction <add>, %252, %cst_117 [1] : vector<8x32xf32> to vector<8xf32>
    %254 = vector.shape_cast %253 : vector<8xf32> to vector<8x1xf32>
    %cst_118 = arith.constant 3.200000e+01 : f32
    %255 = vector.broadcast %cst_118 : f32 to vector<8x1xf32>
    %256 = arith.divf %254, %255 : vector<8x1xf32>
    %cst_119 = arith.constant 9.99999974E-6 : f32
    %257 = vector.broadcast %cst_119 : f32 to vector<8x1xf32>
    %258 = arith.addf %256, %257 : vector<8x1xf32>
    %259 = math.rsqrt %258 : vector<8x1xf32>
    %260 = vector.broadcast %259 : vector<8x1xf32> to vector<8x32xf32>
    %261 = arith.mulf %251, %260 : vector<8x32xf32>
    %262 = vector.broadcast %243 : vector<1x32xf32> to vector<8x32xf32>
    %263 = arith.mulf %261, %262 : vector<8x32xf32>
    %264 = vector.broadcast %245 : vector<1x32xf32> to vector<8x32xf32>
    %265 = arith.addf %263, %264 : vector<8x32xf32>
    %c1_120 = arith.constant 1 : index
    %c0_121 = arith.constant 0 : index
    %c0_122 = arith.constant 0 : index
    %266 = vector.load %arg11[%c1_120, %c0_121, %c0_122] : memref<2x32x64xf32, #tpu.memory_space<vmem>>, vector<1x32x64xf32>
    %267 = vector.shape_cast %266 : vector<1x32x64xf32> to vector<32x64xf32>
    %c1_123 = arith.constant 1 : index
    %c0_124 = arith.constant 0 : index
    %c0_125 = arith.constant 0 : index
    %268 = vector.load %arg12[%c1_123, %c0_124, %c0_125] : memref<2x64x32xf32, #tpu.memory_space<vmem>>, vector<1x64x32xf32>
    %269 = vector.shape_cast %268 : vector<1x64x32xf32> to vector<64x32xf32>
    %cst_126 = arith.constant dense<0.000000e+00> : vector<8x64xf32>
    %270 = tpu.matmul %265, %267, %cst_126 {dimension_numbers = #tpu.dot_dimension_numbers<[1], [0], [0], [1], [0, 0, 1, 1], [], []>} : vector<8x32xf32>, vector<32x64xf32>, vector<8x64xf32> -> vector<8x64xf32>
    %cst_127 = arith.constant 0.000000e+00 : f32
    %271 = vector.broadcast %cst_127 : f32 to vector<8x64xf32>
    %272 = arith.maximumf %270, %271 : vector<8x64xf32>
    %cst_128 = arith.constant dense<0.000000e+00> : vector<8x32xf32>
    %273 = tpu.matmul %272, %269, %cst_128 {dimension_numbers = #tpu.dot_dimension_numbers<[1], [0], [0], [1], [0, 0, 1, 1], [], []>} : vector<8x64xf32>, vector<64x32xf32>, vector<8x32xf32> -> vector<8x32xf32>
    %274 = arith.addf %265, %273 : vector<8x32xf32>
    %c3 = arith.constant 3 : index
    %c0_129 = arith.constant 0 : index
    %c0_130 = arith.constant 0 : index
    %275 = vector.load %arg13[%c3, %c0_129, %c0_130] : memref<4x1x32xf32, #tpu.memory_space<vmem>>, vector<1x1x32xf32>
    %276 = vector.shape_cast %275 : vector<1x1x32xf32> to vector<1x32xf32>
    %c3_131 = arith.constant 3 : index
    %c0_132 = arith.constant 0 : index
    %c0_133 = arith.constant 0 : index
    %277 = vector.load %arg14[%c3_131, %c0_132, %c0_133] : memref<4x1x32xf32, #tpu.memory_space<vmem>>, vector<1x1x32xf32>
    %278 = vector.shape_cast %277 : vector<1x1x32xf32> to vector<1x32xf32>
    %cst_134 = arith.constant dense<0.000000e+00> : vector<8xf32>
    %279 = vector.multi_reduction <add>, %274, %cst_134 [1] : vector<8x32xf32> to vector<8xf32>
    %280 = vector.shape_cast %279 : vector<8xf32> to vector<8x1xf32>
    %cst_135 = arith.constant 3.200000e+01 : f32
    %281 = vector.broadcast %cst_135 : f32 to vector<8x1xf32>
    %282 = arith.divf %280, %281 : vector<8x1xf32>
    %283 = vector.broadcast %282 : vector<8x1xf32> to vector<8x32xf32>
    %284 = arith.subf %274, %283 : vector<8x32xf32>
    %285 = arith.mulf %284, %284 : vector<8x32xf32>
    %cst_136 = arith.constant dense<0.000000e+00> : vector<8xf32>
    %286 = vector.multi_reduction <add>, %285, %cst_136 [1] : vector<8x32xf32> to vector<8xf32>
    %287 = vector.shape_cast %286 : vector<8xf32> to vector<8x1xf32>
    %cst_137 = arith.constant 3.200000e+01 : f32
    %288 = vector.broadcast %cst_137 : f32 to vector<8x1xf32>
    %289 = arith.divf %287, %288 : vector<8x1xf32>
    %cst_138 = arith.constant 9.99999974E-6 : f32
    %290 = vector.broadcast %cst_138 : f32 to vector<8x1xf32>
    %291 = arith.addf %289, %290 : vector<8x1xf32>
    %292 = math.rsqrt %291 : vector<8x1xf32>
    %293 = vector.broadcast %292 : vector<8x1xf32> to vector<8x32xf32>
    %294 = arith.mulf %284, %293 : vector<8x32xf32>
    %295 = vector.broadcast %276 : vector<1x32xf32> to vector<8x32xf32>
    %296 = arith.mulf %294, %295 : vector<8x32xf32>
    %297 = vector.broadcast %278 : vector<1x32xf32> to vector<8x32xf32>
    %298 = arith.addf %296, %297 : vector<8x32xf32>
    %c0_139 = arith.constant 0 : index
    %c0_140 = arith.constant 0 : index
    %c0_141 = arith.constant 0 : index
    %299 = vector.load %arg2[%c0_139, %c0_140, %c0_141] : memref<1x8x1xi32, #tpu.memory_space<vmem>>, vector<1x8x1xi32>
    %300 = vector.shape_cast %299 : vector<1x8x1xi32> to vector<8x1xi32>
    %301 = tpu.iota {dimensions = array<i32: 1>} : vector<8x64xi32>
    %302 = vector.broadcast %300 : vector<8x1xi32> to vector<8x64xi32>
    %303 = arith.cmpi eq, %301, %302 : vector<8x64xi32>
    %304 = arith.extui %303 : vector<8x64xi1> to vector<8x64xi32>
    %305 = arith.sitofp %304 : vector<8x64xi32> to vector<8x64xf32>
    %c0_142 = arith.constant 0 : index
    %c0_143 = arith.constant 0 : index
    %306 = vector.load %arg6[%c0_142, %c0_143] : memref<64x32xf32, #tpu.memory_space<vmem>>, vector<64x32xf32>
    %cst_144 = arith.constant dense<0.000000e+00> : vector<8x32xf32>
    %307 = tpu.matmul %305, %306, %cst_144 {dimension_numbers = #tpu.dot_dimension_numbers<[1], [0], [0], [1], [0, 0, 1, 1], [], []>} : vector<8x64xf32>, vector<64x32xf32>, vector<8x32xf32> -> vector<8x32xf32>
    %c0_145 = arith.constant 0 : index
    %c0_146 = arith.constant 0 : index
    %308 = vector.load %arg4[%c0_145, %c0_146] : memref<8x32xf32, #tpu.memory_space<vmem>>, vector<8x32xf32>
    %309 = arith.addf %307, %308 : vector<8x32xf32>
    %c0_147 = arith.constant 0 : index
    %c0_148 = arith.constant 0 : index
    %c0_149 = arith.constant 0 : index
    %310 = vector.load %arg15[%c0_147, %c0_148, %c0_149] : memref<2x32x32xf32, #tpu.memory_space<vmem>>, vector<1x32x32xf32>
    %311 = vector.shape_cast %310 : vector<1x32x32xf32> to vector<32x32xf32>
    %c0_150 = arith.constant 0 : index
    %c0_151 = arith.constant 0 : index
    %c0_152 = arith.constant 0 : index
    %312 = vector.load %arg16[%c0_150, %c0_151, %c0_152] : memref<2x32x32xf32, #tpu.memory_space<vmem>>, vector<1x32x32xf32>
    %313 = vector.shape_cast %312 : vector<1x32x32xf32> to vector<32x32xf32>
    %c0_153 = arith.constant 0 : index
    %c0_154 = arith.constant 0 : index
    %c0_155 = arith.constant 0 : index
    %314 = vector.load %arg17[%c0_153, %c0_154, %c0_155] : memref<2x32x32xf32, #tpu.memory_space<vmem>>, vector<1x32x32xf32>
    %315 = vector.shape_cast %314 : vector<1x32x32xf32> to vector<32x32xf32>
    %c0_156 = arith.constant 0 : index
    %c0_157 = arith.constant 0 : index
    %c0_158 = arith.constant 0 : index
    %316 = vector.load %arg18[%c0_156, %c0_157, %c0_158] : memref<2x32x32xf32, #tpu.memory_space<vmem>>, vector<1x32x32xf32>
    %317 = vector.shape_cast %316 : vector<1x32x32xf32> to vector<32x32xf32>
    %cst_159 = arith.constant dense<0.000000e+00> : vector<8x32xf32>
    %318 = tpu.matmul %309, %311, %cst_159 {dimension_numbers = #tpu.dot_dimension_numbers<[1], [0], [0], [1], [0, 0, 1, 1], [], []>} : vector<8x32xf32>, vector<32x32xf32>, vector<8x32xf32> -> vector<8x32xf32>
    %cst_160 = arith.constant 0.353553385 : f32
    %319 = vector.broadcast %cst_160 : f32 to vector<8x32xf32>
    %320 = arith.mulf %318, %319 : vector<8x32xf32>
    %cst_161 = arith.constant dense<0.000000e+00> : vector<8x32xf32>
    %321 = tpu.matmul %309, %313, %cst_161 {dimension_numbers = #tpu.dot_dimension_numbers<[1], [0], [0], [1], [0, 0, 1, 1], [], []>} : vector<8x32xf32>, vector<32x32xf32>, vector<8x32xf32> -> vector<8x32xf32>
    %cst_162 = arith.constant dense<0.000000e+00> : vector<8x32xf32>
    %322 = tpu.matmul %309, %315, %cst_162 {dimension_numbers = #tpu.dot_dimension_numbers<[1], [0], [0], [1], [0, 0, 1, 1], [], []>} : vector<8x32xf32>, vector<32x32xf32>, vector<8x32xf32> -> vector<8x32xf32>
    %323 = tpu.iota {dimensions = array<i32: 0>} : vector<8x8xi32>
    %324 = tpu.iota {dimensions = array<i32: 1>} : vector<8x8xi32>
    %325 = arith.cmpi sge, %323, %324 : vector<8x8xi32>
    %cst_163 = arith.constant 0.000000e+00 : f32
    %cst_164 = arith.constant -1.000000e+30 : f32
    %326 = vector.broadcast %cst_163 : f32 to vector<8x8xf32>
    %327 = vector.broadcast %cst_164 : f32 to vector<8x8xf32>
    %328 = arith.select %325, %326, %327 : vector<8x8xi1>, vector<8x8xf32>
    %cst_165 = arith.constant 0.000000e+00 : f32
    %329 = vector.broadcast %cst_165 : f32 to vector<8x32xf32>
    %330 = vector.extract_strided_slice %320 {offsets = [0, 0], sizes = [8, 8], strides = [1, 1]} : vector<8x32xf32> to vector<8x8xf32>
    %331 = vector.extract_strided_slice %321 {offsets = [0, 0], sizes = [8, 8], strides = [1, 1]} : vector<8x32xf32> to vector<8x8xf32>
    %332 = vector.extract_strided_slice %322 {offsets = [0, 0], sizes = [8, 8], strides = [1, 1]} : vector<8x32xf32> to vector<8x8xf32>
    %cst_166 = arith.constant dense<0.000000e+00> : vector<8x8xf32>
    %333 = tpu.matmul %330, %331, %cst_166 {dimension_numbers = #tpu.dot_dimension_numbers<[1], [1], [0], [0], [0, 0, 1, 0], [], []>} : vector<8x8xf32>, vector<8x8xf32>, vector<8x8xf32> -> vector<8x8xf32>
    %334 = arith.addf %333, %328 : vector<8x8xf32>
    %cst_167 = arith.constant dense<0xFF800000> : vector<8xf32>
    %335 = vector.multi_reduction <maximumf>, %334, %cst_167 [1] : vector<8x8xf32> to vector<8xf32>
    %336 = vector.shape_cast %335 : vector<8xf32> to vector<8x1xf32>
    %337 = vector.broadcast %336 : vector<8x1xf32> to vector<8x8xf32>
    %338 = arith.subf %334, %337 : vector<8x8xf32>
    %339 = math.exp %338 : vector<8x8xf32>
    %cst_168 = arith.constant dense<0.000000e+00> : vector<8xf32>
    %340 = vector.multi_reduction <add>, %339, %cst_168 [1] : vector<8x8xf32> to vector<8xf32>
    %341 = vector.shape_cast %340 : vector<8xf32> to vector<8x1xf32>
    %cst_169 = arith.constant dense<0.000000e+00> : vector<8x8xf32>
    %342 = tpu.matmul %339, %332, %cst_169 {dimension_numbers = #tpu.dot_dimension_numbers<[1], [0], [0], [1], [0, 0, 1, 1], [], []>} : vector<8x8xf32>, vector<8x8xf32>, vector<8x8xf32> -> vector<8x8xf32>
    %343 = tpu.reciprocal %341 {approx = true} : vector<8x1xf32> -> vector<8x1xf32>
    %344 = vector.broadcast %343 : vector<8x1xf32> to vector<8x8xf32>
    %345 = arith.mulf %342, %344 : vector<8x8xf32>
    %346 = vector.extract_strided_slice %317 {offsets = [0, 0], sizes = [8, 32], strides = [1, 1]} : vector<32x32xf32> to vector<8x32xf32>
    %cst_170 = arith.constant dense<0.000000e+00> : vector<8x32xf32>
    %347 = tpu.matmul %345, %346, %cst_170 {dimension_numbers = #tpu.dot_dimension_numbers<[1], [0], [0], [1], [0, 0, 1, 1], [], []>} : vector<8x8xf32>, vector<8x32xf32>, vector<8x32xf32> -> vector<8x32xf32>
    %348 = arith.addf %329, %347 : vector<8x32xf32>
    %349 = vector.extract_strided_slice %320 {offsets = [0, 8], sizes = [8, 8], strides = [1, 1]} : vector<8x32xf32> to vector<8x8xf32>
    %350 = vector.extract_strided_slice %321 {offsets = [0, 8], sizes = [8, 8], strides = [1, 1]} : vector<8x32xf32> to vector<8x8xf32>
    %351 = vector.extract_strided_slice %322 {offsets = [0, 8], sizes = [8, 8], strides = [1, 1]} : vector<8x32xf32> to vector<8x8xf32>
    %cst_171 = arith.constant dense<0.000000e+00> : vector<8x8xf32>
    %352 = tpu.matmul %349, %350, %cst_171 {dimension_numbers = #tpu.dot_dimension_numbers<[1], [1], [0], [0], [0, 0, 1, 0], [], []>} : vector<8x8xf32>, vector<8x8xf32>, vector<8x8xf32> -> vector<8x8xf32>
    %353 = arith.addf %352, %328 : vector<8x8xf32>
    %cst_172 = arith.constant dense<0xFF800000> : vector<8xf32>
    %354 = vector.multi_reduction <maximumf>, %353, %cst_172 [1] : vector<8x8xf32> to vector<8xf32>
    %355 = vector.shape_cast %354 : vector<8xf32> to vector<8x1xf32>
    %356 = vector.broadcast %355 : vector<8x1xf32> to vector<8x8xf32>
    %357 = arith.subf %353, %356 : vector<8x8xf32>
    %358 = math.exp %357 : vector<8x8xf32>
    %cst_173 = arith.constant dense<0.000000e+00> : vector<8xf32>
    %359 = vector.multi_reduction <add>, %358, %cst_173 [1] : vector<8x8xf32> to vector<8xf32>
    %360 = vector.shape_cast %359 : vector<8xf32> to vector<8x1xf32>
    %cst_174 = arith.constant dense<0.000000e+00> : vector<8x8xf32>
    %361 = tpu.matmul %358, %351, %cst_174 {dimension_numbers = #tpu.dot_dimension_numbers<[1], [0], [0], [1], [0, 0, 1, 1], [], []>} : vector<8x8xf32>, vector<8x8xf32>, vector<8x8xf32> -> vector<8x8xf32>
    %362 = tpu.reciprocal %360 {approx = true} : vector<8x1xf32> -> vector<8x1xf32>
    %363 = vector.broadcast %362 : vector<8x1xf32> to vector<8x8xf32>
    %364 = arith.mulf %361, %363 : vector<8x8xf32>
    %365 = vector.extract_strided_slice %317 {offsets = [8, 0], sizes = [8, 32], strides = [1, 1]} : vector<32x32xf32> to vector<8x32xf32>
    %cst_175 = arith.constant dense<0.000000e+00> : vector<8x32xf32>
    %366 = tpu.matmul %364, %365, %cst_175 {dimension_numbers = #tpu.dot_dimension_numbers<[1], [0], [0], [1], [0, 0, 1, 1], [], []>} : vector<8x8xf32>, vector<8x32xf32>, vector<8x32xf32> -> vector<8x32xf32>
    %367 = arith.addf %348, %366 : vector<8x32xf32>
    %368 = vector.extract_strided_slice %320 {offsets = [0, 16], sizes = [8, 8], strides = [1, 1]} : vector<8x32xf32> to vector<8x8xf32>
    %369 = vector.extract_strided_slice %321 {offsets = [0, 16], sizes = [8, 8], strides = [1, 1]} : vector<8x32xf32> to vector<8x8xf32>
    %370 = vector.extract_strided_slice %322 {offsets = [0, 16], sizes = [8, 8], strides = [1, 1]} : vector<8x32xf32> to vector<8x8xf32>
    %cst_176 = arith.constant dense<0.000000e+00> : vector<8x8xf32>
    %371 = tpu.matmul %368, %369, %cst_176 {dimension_numbers = #tpu.dot_dimension_numbers<[1], [1], [0], [0], [0, 0, 1, 0], [], []>} : vector<8x8xf32>, vector<8x8xf32>, vector<8x8xf32> -> vector<8x8xf32>
    %372 = arith.addf %371, %328 : vector<8x8xf32>
    %cst_177 = arith.constant dense<0xFF800000> : vector<8xf32>
    %373 = vector.multi_reduction <maximumf>, %372, %cst_177 [1] : vector<8x8xf32> to vector<8xf32>
    %374 = vector.shape_cast %373 : vector<8xf32> to vector<8x1xf32>
    %375 = vector.broadcast %374 : vector<8x1xf32> to vector<8x8xf32>
    %376 = arith.subf %372, %375 : vector<8x8xf32>
    %377 = math.exp %376 : vector<8x8xf32>
    %cst_178 = arith.constant dense<0.000000e+00> : vector<8xf32>
    %378 = vector.multi_reduction <add>, %377, %cst_178 [1] : vector<8x8xf32> to vector<8xf32>
    %379 = vector.shape_cast %378 : vector<8xf32> to vector<8x1xf32>
    %cst_179 = arith.constant dense<0.000000e+00> : vector<8x8xf32>
    %380 = tpu.matmul %377, %370, %cst_179 {dimension_numbers = #tpu.dot_dimension_numbers<[1], [0], [0], [1], [0, 0, 1, 1], [], []>} : vector<8x8xf32>, vector<8x8xf32>, vector<8x8xf32> -> vector<8x8xf32>
    %381 = tpu.reciprocal %379 {approx = true} : vector<8x1xf32> -> vector<8x1xf32>
    %382 = vector.broadcast %381 : vector<8x1xf32> to vector<8x8xf32>
    %383 = arith.mulf %380, %382 : vector<8x8xf32>
    %384 = vector.extract_strided_slice %317 {offsets = [16, 0], sizes = [8, 32], strides = [1, 1]} : vector<32x32xf32> to vector<8x32xf32>
    %cst_180 = arith.constant dense<0.000000e+00> : vector<8x32xf32>
    %385 = tpu.matmul %383, %384, %cst_180 {dimension_numbers = #tpu.dot_dimension_numbers<[1], [0], [0], [1], [0, 0, 1, 1], [], []>} : vector<8x8xf32>, vector<8x32xf32>, vector<8x32xf32> -> vector<8x32xf32>
    %386 = arith.addf %367, %385 : vector<8x32xf32>
    %387 = vector.extract_strided_slice %320 {offsets = [0, 24], sizes = [8, 8], strides = [1, 1]} : vector<8x32xf32> to vector<8x8xf32>
    %388 = vector.extract_strided_slice %321 {offsets = [0, 24], sizes = [8, 8], strides = [1, 1]} : vector<8x32xf32> to vector<8x8xf32>
    %389 = vector.extract_strided_slice %322 {offsets = [0, 24], sizes = [8, 8], strides = [1, 1]} : vector<8x32xf32> to vector<8x8xf32>
    %cst_181 = arith.constant dense<0.000000e+00> : vector<8x8xf32>
    %390 = tpu.matmul %387, %388, %cst_181 {dimension_numbers = #tpu.dot_dimension_numbers<[1], [1], [0], [0], [0, 0, 1, 0], [], []>} : vector<8x8xf32>, vector<8x8xf32>, vector<8x8xf32> -> vector<8x8xf32>
    %391 = arith.addf %390, %328 : vector<8x8xf32>
    %cst_182 = arith.constant dense<0xFF800000> : vector<8xf32>
    %392 = vector.multi_reduction <maximumf>, %391, %cst_182 [1] : vector<8x8xf32> to vector<8xf32>
    %393 = vector.shape_cast %392 : vector<8xf32> to vector<8x1xf32>
    %394 = vector.broadcast %393 : vector<8x1xf32> to vector<8x8xf32>
    %395 = arith.subf %391, %394 : vector<8x8xf32>
    %396 = math.exp %395 : vector<8x8xf32>
    %cst_183 = arith.constant dense<0.000000e+00> : vector<8xf32>
    %397 = vector.multi_reduction <add>, %396, %cst_183 [1] : vector<8x8xf32> to vector<8xf32>
    %398 = vector.shape_cast %397 : vector<8xf32> to vector<8x1xf32>
    %cst_184 = arith.constant dense<0.000000e+00> : vector<8x8xf32>
    %399 = tpu.matmul %396, %389, %cst_184 {dimension_numbers = #tpu.dot_dimension_numbers<[1], [0], [0], [1], [0, 0, 1, 1], [], []>} : vector<8x8xf32>, vector<8x8xf32>, vector<8x8xf32> -> vector<8x8xf32>
    %400 = tpu.reciprocal %398 {approx = true} : vector<8x1xf32> -> vector<8x1xf32>
    %401 = vector.broadcast %400 : vector<8x1xf32> to vector<8x8xf32>
    %402 = arith.mulf %399, %401 : vector<8x8xf32>
    %403 = vector.extract_strided_slice %317 {offsets = [24, 0], sizes = [8, 32], strides = [1, 1]} : vector<32x32xf32> to vector<8x32xf32>
    %cst_185 = arith.constant dense<0.000000e+00> : vector<8x32xf32>
    %404 = tpu.matmul %402, %403, %cst_185 {dimension_numbers = #tpu.dot_dimension_numbers<[1], [0], [0], [1], [0, 0, 1, 1], [], []>} : vector<8x8xf32>, vector<8x32xf32>, vector<8x32xf32> -> vector<8x32xf32>
    %405 = arith.addf %386, %404 : vector<8x32xf32>
    %406 = arith.addf %309, %405 : vector<8x32xf32>
    %c0_186 = arith.constant 0 : index
    %c0_187 = arith.constant 0 : index
    %c0_188 = arith.constant 0 : index
    %407 = vector.load %arg25[%c0_186, %c0_187, %c0_188] : memref<6x1x32xf32, #tpu.memory_space<vmem>>, vector<1x1x32xf32>
    %408 = vector.shape_cast %407 : vector<1x1x32xf32> to vector<1x32xf32>
    %c0_189 = arith.constant 0 : index
    %c0_190 = arith.constant 0 : index
    %c0_191 = arith.constant 0 : index
    %409 = vector.load %arg26[%c0_189, %c0_190, %c0_191] : memref<6x1x32xf32, #tpu.memory_space<vmem>>, vector<1x1x32xf32>
    %410 = vector.shape_cast %409 : vector<1x1x32xf32> to vector<1x32xf32>
    %cst_192 = arith.constant dense<0.000000e+00> : vector<8xf32>
    %411 = vector.multi_reduction <add>, %406, %cst_192 [1] : vector<8x32xf32> to vector<8xf32>
    %412 = vector.shape_cast %411 : vector<8xf32> to vector<8x1xf32>
    %cst_193 = arith.constant 3.200000e+01 : f32
    %413 = vector.broadcast %cst_193 : f32 to vector<8x1xf32>
    %414 = arith.divf %412, %413 : vector<8x1xf32>
    %415 = vector.broadcast %414 : vector<8x1xf32> to vector<8x32xf32>
    %416 = arith.subf %406, %415 : vector<8x32xf32>
    %417 = arith.mulf %416, %416 : vector<8x32xf32>
    %cst_194 = arith.constant dense<0.000000e+00> : vector<8xf32>
    %418 = vector.multi_reduction <add>, %417, %cst_194 [1] : vector<8x32xf32> to vector<8xf32>
    %419 = vector.shape_cast %418 : vector<8xf32> to vector<8x1xf32>
    %cst_195 = arith.constant 3.200000e+01 : f32
    %420 = vector.broadcast %cst_195 : f32 to vector<8x1xf32>
    %421 = arith.divf %419, %420 : vector<8x1xf32>
    %cst_196 = arith.constant 9.99999974E-6 : f32
    %422 = vector.broadcast %cst_196 : f32 to vector<8x1xf32>
    %423 = arith.addf %421, %422 : vector<8x1xf32>
    %424 = math.rsqrt %423 : vector<8x1xf32>
    %425 = vector.broadcast %424 : vector<8x1xf32> to vector<8x32xf32>
    %426 = arith.mulf %416, %425 : vector<8x32xf32>
    %427 = vector.broadcast %408 : vector<1x32xf32> to vector<8x32xf32>
    %428 = arith.mulf %426, %427 : vector<8x32xf32>
    %429 = vector.broadcast %410 : vector<1x32xf32> to vector<8x32xf32>
    %430 = arith.addf %428, %429 : vector<8x32xf32>
    %c0_197 = arith.constant 0 : index
    %c0_198 = arith.constant 0 : index
    %c0_199 = arith.constant 0 : index
    %431 = vector.load %arg19[%c0_197, %c0_198, %c0_199] : memref<2x32x32xf32, #tpu.memory_space<vmem>>, vector<1x32x32xf32>
    %432 = vector.shape_cast %431 : vector<1x32x32xf32> to vector<32x32xf32>
    %c0_200 = arith.constant 0 : index
    %c0_201 = arith.constant 0 : index
    %c0_202 = arith.constant 0 : index
    %433 = vector.load %arg20[%c0_200, %c0_201, %c0_202] : memref<2x32x32xf32, #tpu.memory_space<vmem>>, vector<1x32x32xf32>
    %434 = vector.shape_cast %433 : vector<1x32x32xf32> to vector<32x32xf32>
    %c0_203 = arith.constant 0 : index
    %c0_204 = arith.constant 0 : index
    %c0_205 = arith.constant 0 : index
    %435 = vector.load %arg21[%c0_203, %c0_204, %c0_205] : memref<2x32x32xf32, #tpu.memory_space<vmem>>, vector<1x32x32xf32>
    %436 = vector.shape_cast %435 : vector<1x32x32xf32> to vector<32x32xf32>
    %c0_206 = arith.constant 0 : index
    %c0_207 = arith.constant 0 : index
    %c0_208 = arith.constant 0 : index
    %437 = vector.load %arg22[%c0_206, %c0_207, %c0_208] : memref<2x32x32xf32, #tpu.memory_space<vmem>>, vector<1x32x32xf32>
    %438 = vector.shape_cast %437 : vector<1x32x32xf32> to vector<32x32xf32>
    %cst_209 = arith.constant dense<0.000000e+00> : vector<8x32xf32>
    %439 = tpu.matmul %430, %432, %cst_209 {dimension_numbers = #tpu.dot_dimension_numbers<[1], [0], [0], [1], [0, 0, 1, 1], [], []>} : vector<8x32xf32>, vector<32x32xf32>, vector<8x32xf32> -> vector<8x32xf32>
    %cst_210 = arith.constant 0.353553385 : f32
    %440 = vector.broadcast %cst_210 : f32 to vector<8x32xf32>
    %441 = arith.mulf %439, %440 : vector<8x32xf32>
    %cst_211 = arith.constant dense<0.000000e+00> : vector<8x32xf32>
    %442 = tpu.matmul %298, %434, %cst_211 {dimension_numbers = #tpu.dot_dimension_numbers<[1], [0], [0], [1], [0, 0, 1, 1], [], []>} : vector<8x32xf32>, vector<32x32xf32>, vector<8x32xf32> -> vector<8x32xf32>
    %cst_212 = arith.constant dense<0.000000e+00> : vector<8x32xf32>
    %443 = tpu.matmul %298, %436, %cst_212 {dimension_numbers = #tpu.dot_dimension_numbers<[1], [0], [0], [1], [0, 0, 1, 1], [], []>} : vector<8x32xf32>, vector<32x32xf32>, vector<8x32xf32> -> vector<8x32xf32>
    %cst_213 = arith.constant 0.000000e+00 : f32
    %444 = vector.broadcast %cst_213 : f32 to vector<8x32xf32>
    %445 = vector.extract_strided_slice %441 {offsets = [0, 0], sizes = [8, 8], strides = [1, 1]} : vector<8x32xf32> to vector<8x8xf32>
    %446 = vector.extract_strided_slice %442 {offsets = [0, 0], sizes = [8, 8], strides = [1, 1]} : vector<8x32xf32> to vector<8x8xf32>
    %447 = vector.extract_strided_slice %443 {offsets = [0, 0], sizes = [8, 8], strides = [1, 1]} : vector<8x32xf32> to vector<8x8xf32>
    %cst_214 = arith.constant dense<0.000000e+00> : vector<8x8xf32>
    %448 = tpu.matmul %445, %446, %cst_214 {dimension_numbers = #tpu.dot_dimension_numbers<[1], [1], [0], [0], [0, 0, 1, 0], [], []>} : vector<8x8xf32>, vector<8x8xf32>, vector<8x8xf32> -> vector<8x8xf32>
    %cst_215 = arith.constant dense<0xFF800000> : vector<8xf32>
    %449 = vector.multi_reduction <maximumf>, %448, %cst_215 [1] : vector<8x8xf32> to vector<8xf32>
    %450 = vector.shape_cast %449 : vector<8xf32> to vector<8x1xf32>
    %451 = vector.broadcast %450 : vector<8x1xf32> to vector<8x8xf32>
    %452 = arith.subf %448, %451 : vector<8x8xf32>
    %453 = math.exp %452 : vector<8x8xf32>
    %cst_216 = arith.constant dense<0.000000e+00> : vector<8xf32>
    %454 = vector.multi_reduction <add>, %453, %cst_216 [1] : vector<8x8xf32> to vector<8xf32>
    %455 = vector.shape_cast %454 : vector<8xf32> to vector<8x1xf32>
    %cst_217 = arith.constant dense<0.000000e+00> : vector<8x8xf32>
    %456 = tpu.matmul %453, %447, %cst_217 {dimension_numbers = #tpu.dot_dimension_numbers<[1], [0], [0], [1], [0, 0, 1, 1], [], []>} : vector<8x8xf32>, vector<8x8xf32>, vector<8x8xf32> -> vector<8x8xf32>
    %457 = tpu.reciprocal %455 {approx = true} : vector<8x1xf32> -> vector<8x1xf32>
    %458 = vector.broadcast %457 : vector<8x1xf32> to vector<8x8xf32>
    %459 = arith.mulf %456, %458 : vector<8x8xf32>
    %460 = vector.extract_strided_slice %438 {offsets = [0, 0], sizes = [8, 32], strides = [1, 1]} : vector<32x32xf32> to vector<8x32xf32>
    %cst_218 = arith.constant dense<0.000000e+00> : vector<8x32xf32>
    %461 = tpu.matmul %459, %460, %cst_218 {dimension_numbers = #tpu.dot_dimension_numbers<[1], [0], [0], [1], [0, 0, 1, 1], [], []>} : vector<8x8xf32>, vector<8x32xf32>, vector<8x32xf32> -> vector<8x32xf32>
    %462 = arith.addf %444, %461 : vector<8x32xf32>
    %463 = vector.extract_strided_slice %441 {offsets = [0, 8], sizes = [8, 8], strides = [1, 1]} : vector<8x32xf32> to vector<8x8xf32>
    %464 = vector.extract_strided_slice %442 {offsets = [0, 8], sizes = [8, 8], strides = [1, 1]} : vector<8x32xf32> to vector<8x8xf32>
    %465 = vector.extract_strided_slice %443 {offsets = [0, 8], sizes = [8, 8], strides = [1, 1]} : vector<8x32xf32> to vector<8x8xf32>
    %cst_219 = arith.constant dense<0.000000e+00> : vector<8x8xf32>
    %466 = tpu.matmul %463, %464, %cst_219 {dimension_numbers = #tpu.dot_dimension_numbers<[1], [1], [0], [0], [0, 0, 1, 0], [], []>} : vector<8x8xf32>, vector<8x8xf32>, vector<8x8xf32> -> vector<8x8xf32>
    %cst_220 = arith.constant dense<0xFF800000> : vector<8xf32>
    %467 = vector.multi_reduction <maximumf>, %466, %cst_220 [1] : vector<8x8xf32> to vector<8xf32>
    %468 = vector.shape_cast %467 : vector<8xf32> to vector<8x1xf32>
    %469 = vector.broadcast %468 : vector<8x1xf32> to vector<8x8xf32>
    %470 = arith.subf %466, %469 : vector<8x8xf32>
    %471 = math.exp %470 : vector<8x8xf32>
    %cst_221 = arith.constant dense<0.000000e+00> : vector<8xf32>
    %472 = vector.multi_reduction <add>, %471, %cst_221 [1] : vector<8x8xf32> to vector<8xf32>
    %473 = vector.shape_cast %472 : vector<8xf32> to vector<8x1xf32>
    %cst_222 = arith.constant dense<0.000000e+00> : vector<8x8xf32>
    %474 = tpu.matmul %471, %465, %cst_222 {dimension_numbers = #tpu.dot_dimension_numbers<[1], [0], [0], [1], [0, 0, 1, 1], [], []>} : vector<8x8xf32>, vector<8x8xf32>, vector<8x8xf32> -> vector<8x8xf32>
    %475 = tpu.reciprocal %473 {approx = true} : vector<8x1xf32> -> vector<8x1xf32>
    %476 = vector.broadcast %475 : vector<8x1xf32> to vector<8x8xf32>
    %477 = arith.mulf %474, %476 : vector<8x8xf32>
    %478 = vector.extract_strided_slice %438 {offsets = [8, 0], sizes = [8, 32], strides = [1, 1]} : vector<32x32xf32> to vector<8x32xf32>
    %cst_223 = arith.constant dense<0.000000e+00> : vector<8x32xf32>
    %479 = tpu.matmul %477, %478, %cst_223 {dimension_numbers = #tpu.dot_dimension_numbers<[1], [0], [0], [1], [0, 0, 1, 1], [], []>} : vector<8x8xf32>, vector<8x32xf32>, vector<8x32xf32> -> vector<8x32xf32>
    %480 = arith.addf %462, %479 : vector<8x32xf32>
    %481 = vector.extract_strided_slice %441 {offsets = [0, 16], sizes = [8, 8], strides = [1, 1]} : vector<8x32xf32> to vector<8x8xf32>
    %482 = vector.extract_strided_slice %442 {offsets = [0, 16], sizes = [8, 8], strides = [1, 1]} : vector<8x32xf32> to vector<8x8xf32>
    %483 = vector.extract_strided_slice %443 {offsets = [0, 16], sizes = [8, 8], strides = [1, 1]} : vector<8x32xf32> to vector<8x8xf32>
    %cst_224 = arith.constant dense<0.000000e+00> : vector<8x8xf32>
    %484 = tpu.matmul %481, %482, %cst_224 {dimension_numbers = #tpu.dot_dimension_numbers<[1], [1], [0], [0], [0, 0, 1, 0], [], []>} : vector<8x8xf32>, vector<8x8xf32>, vector<8x8xf32> -> vector<8x8xf32>
    %cst_225 = arith.constant dense<0xFF800000> : vector<8xf32>
    %485 = vector.multi_reduction <maximumf>, %484, %cst_225 [1] : vector<8x8xf32> to vector<8xf32>
    %486 = vector.shape_cast %485 : vector<8xf32> to vector<8x1xf32>
    %487 = vector.broadcast %486 : vector<8x1xf32> to vector<8x8xf32>
    %488 = arith.subf %484, %487 : vector<8x8xf32>
    %489 = math.exp %488 : vector<8x8xf32>
    %cst_226 = arith.constant dense<0.000000e+00> : vector<8xf32>
    %490 = vector.multi_reduction <add>, %489, %cst_226 [1] : vector<8x8xf32> to vector<8xf32>
    %491 = vector.shape_cast %490 : vector<8xf32> to vector<8x1xf32>
    %cst_227 = arith.constant dense<0.000000e+00> : vector<8x8xf32>
    %492 = tpu.matmul %489, %483, %cst_227 {dimension_numbers = #tpu.dot_dimension_numbers<[1], [0], [0], [1], [0, 0, 1, 1], [], []>} : vector<8x8xf32>, vector<8x8xf32>, vector<8x8xf32> -> vector<8x8xf32>
    %493 = tpu.reciprocal %491 {approx = true} : vector<8x1xf32> -> vector<8x1xf32>
    %494 = vector.broadcast %493 : vector<8x1xf32> to vector<8x8xf32>
    %495 = arith.mulf %492, %494 : vector<8x8xf32>
    %496 = vector.extract_strided_slice %438 {offsets = [16, 0], sizes = [8, 32], strides = [1, 1]} : vector<32x32xf32> to vector<8x32xf32>
    %cst_228 = arith.constant dense<0.000000e+00> : vector<8x32xf32>
    %497 = tpu.matmul %495, %496, %cst_228 {dimension_numbers = #tpu.dot_dimension_numbers<[1], [0], [0], [1], [0, 0, 1, 1], [], []>} : vector<8x8xf32>, vector<8x32xf32>, vector<8x32xf32> -> vector<8x32xf32>
    %498 = arith.addf %480, %497 : vector<8x32xf32>
    %499 = vector.extract_strided_slice %441 {offsets = [0, 24], sizes = [8, 8], strides = [1, 1]} : vector<8x32xf32> to vector<8x8xf32>
    %500 = vector.extract_strided_slice %442 {offsets = [0, 24], sizes = [8, 8], strides = [1, 1]} : vector<8x32xf32> to vector<8x8xf32>
    %501 = vector.extract_strided_slice %443 {offsets = [0, 24], sizes = [8, 8], strides = [1, 1]} : vector<8x32xf32> to vector<8x8xf32>
    %cst_229 = arith.constant dense<0.000000e+00> : vector<8x8xf32>
    %502 = tpu.matmul %499, %500, %cst_229 {dimension_numbers = #tpu.dot_dimension_numbers<[1], [1], [0], [0], [0, 0, 1, 0], [], []>} : vector<8x8xf32>, vector<8x8xf32>, vector<8x8xf32> -> vector<8x8xf32>
    %cst_230 = arith.constant dense<0xFF800000> : vector<8xf32>
    %503 = vector.multi_reduction <maximumf>, %502, %cst_230 [1] : vector<8x8xf32> to vector<8xf32>
    %504 = vector.shape_cast %503 : vector<8xf32> to vector<8x1xf32>
    %505 = vector.broadcast %504 : vector<8x1xf32> to vector<8x8xf32>
    %506 = arith.subf %502, %505 : vector<8x8xf32>
    %507 = math.exp %506 : vector<8x8xf32>
    %cst_231 = arith.constant dense<0.000000e+00> : vector<8xf32>
    %508 = vector.multi_reduction <add>, %507, %cst_231 [1] : vector<8x8xf32> to vector<8xf32>
    %509 = vector.shape_cast %508 : vector<8xf32> to vector<8x1xf32>
    %cst_232 = arith.constant dense<0.000000e+00> : vector<8x8xf32>
    %510 = tpu.matmul %507, %501, %cst_232 {dimension_numbers = #tpu.dot_dimension_numbers<[1], [0], [0], [1], [0, 0, 1, 1], [], []>} : vector<8x8xf32>, vector<8x8xf32>, vector<8x8xf32> -> vector<8x8xf32>
    %511 = tpu.reciprocal %509 {approx = true} : vector<8x1xf32> -> vector<8x1xf32>
    %512 = vector.broadcast %511 : vector<8x1xf32> to vector<8x8xf32>
    %513 = arith.mulf %510, %512 : vector<8x8xf32>
    %514 = vector.extract_strided_slice %438 {offsets = [24, 0], sizes = [8, 32], strides = [1, 1]} : vector<32x32xf32> to vector<8x32xf32>
    %cst_233 = arith.constant dense<0.000000e+00> : vector<8x32xf32>
    %515 = tpu.matmul %513, %514, %cst_233 {dimension_numbers = #tpu.dot_dimension_numbers<[1], [0], [0], [1], [0, 0, 1, 1], [], []>} : vector<8x8xf32>, vector<8x32xf32>, vector<8x32xf32> -> vector<8x32xf32>
    %516 = arith.addf %498, %515 : vector<8x32xf32>
    %517 = arith.addf %430, %516 : vector<8x32xf32>
    %c1_234 = arith.constant 1 : index
    %c0_235 = arith.constant 0 : index
    %c0_236 = arith.constant 0 : index
    %518 = vector.load %arg25[%c1_234, %c0_235, %c0_236] : memref<6x1x32xf32, #tpu.memory_space<vmem>>, vector<1x1x32xf32>
    %519 = vector.shape_cast %518 : vector<1x1x32xf32> to vector<1x32xf32>
    %c1_237 = arith.constant 1 : index
    %c0_238 = arith.constant 0 : index
    %c0_239 = arith.constant 0 : index
    %520 = vector.load %arg26[%c1_237, %c0_238, %c0_239] : memref<6x1x32xf32, #tpu.memory_space<vmem>>, vector<1x1x32xf32>
    %521 = vector.shape_cast %520 : vector<1x1x32xf32> to vector<1x32xf32>
    %cst_240 = arith.constant dense<0.000000e+00> : vector<8xf32>
    %522 = vector.multi_reduction <add>, %517, %cst_240 [1] : vector<8x32xf32> to vector<8xf32>
    %523 = vector.shape_cast %522 : vector<8xf32> to vector<8x1xf32>
    %cst_241 = arith.constant 3.200000e+01 : f32
    %524 = vector.broadcast %cst_241 : f32 to vector<8x1xf32>
    %525 = arith.divf %523, %524 : vector<8x1xf32>
    %526 = vector.broadcast %525 : vector<8x1xf32> to vector<8x32xf32>
    %527 = arith.subf %517, %526 : vector<8x32xf32>
    %528 = arith.mulf %527, %527 : vector<8x32xf32>
    %cst_242 = arith.constant dense<0.000000e+00> : vector<8xf32>
    %529 = vector.multi_reduction <add>, %528, %cst_242 [1] : vector<8x32xf32> to vector<8xf32>
    %530 = vector.shape_cast %529 : vector<8xf32> to vector<8x1xf32>
    %cst_243 = arith.constant 3.200000e+01 : f32
    %531 = vector.broadcast %cst_243 : f32 to vector<8x1xf32>
    %532 = arith.divf %530, %531 : vector<8x1xf32>
    %cst_244 = arith.constant 9.99999974E-6 : f32
    %533 = vector.broadcast %cst_244 : f32 to vector<8x1xf32>
    %534 = arith.addf %532, %533 : vector<8x1xf32>
    %535 = math.rsqrt %534 : vector<8x1xf32>
    %536 = vector.broadcast %535 : vector<8x1xf32> to vector<8x32xf32>
    %537 = arith.mulf %527, %536 : vector<8x32xf32>
    %538 = vector.broadcast %519 : vector<1x32xf32> to vector<8x32xf32>
    %539 = arith.mulf %537, %538 : vector<8x32xf32>
    %540 = vector.broadcast %521 : vector<1x32xf32> to vector<8x32xf32>
    %541 = arith.addf %539, %540 : vector<8x32xf32>
    %c0_245 = arith.constant 0 : index
    %c0_246 = arith.constant 0 : index
    %c0_247 = arith.constant 0 : index
    %542 = vector.load %arg23[%c0_245, %c0_246, %c0_247] : memref<2x32x64xf32, #tpu.memory_space<vmem>>, vector<1x32x64xf32>
    %543 = vector.shape_cast %542 : vector<1x32x64xf32> to vector<32x64xf32>
    %c0_248 = arith.constant 0 : index
    %c0_249 = arith.constant 0 : index
    %c0_250 = arith.constant 0 : index
    %544 = vector.load %arg24[%c0_248, %c0_249, %c0_250] : memref<2x64x32xf32, #tpu.memory_space<vmem>>, vector<1x64x32xf32>
    %545 = vector.shape_cast %544 : vector<1x64x32xf32> to vector<64x32xf32>
    %cst_251 = arith.constant dense<0.000000e+00> : vector<8x64xf32>
    %546 = tpu.matmul %541, %543, %cst_251 {dimension_numbers = #tpu.dot_dimension_numbers<[1], [0], [0], [1], [0, 0, 1, 1], [], []>} : vector<8x32xf32>, vector<32x64xf32>, vector<8x64xf32> -> vector<8x64xf32>
    %cst_252 = arith.constant 0.000000e+00 : f32
    %547 = vector.broadcast %cst_252 : f32 to vector<8x64xf32>
    %548 = arith.maximumf %546, %547 : vector<8x64xf32>
    %cst_253 = arith.constant dense<0.000000e+00> : vector<8x32xf32>
    %549 = tpu.matmul %548, %545, %cst_253 {dimension_numbers = #tpu.dot_dimension_numbers<[1], [0], [0], [1], [0, 0, 1, 1], [], []>} : vector<8x64xf32>, vector<64x32xf32>, vector<8x32xf32> -> vector<8x32xf32>
    %550 = arith.addf %541, %549 : vector<8x32xf32>
    %c2_254 = arith.constant 2 : index
    %c0_255 = arith.constant 0 : index
    %c0_256 = arith.constant 0 : index
    %551 = vector.load %arg25[%c2_254, %c0_255, %c0_256] : memref<6x1x32xf32, #tpu.memory_space<vmem>>, vector<1x1x32xf32>
    %552 = vector.shape_cast %551 : vector<1x1x32xf32> to vector<1x32xf32>
    %c2_257 = arith.constant 2 : index
    %c0_258 = arith.constant 0 : index
    %c0_259 = arith.constant 0 : index
    %553 = vector.load %arg26[%c2_257, %c0_258, %c0_259] : memref<6x1x32xf32, #tpu.memory_space<vmem>>, vector<1x1x32xf32>
    %554 = vector.shape_cast %553 : vector<1x1x32xf32> to vector<1x32xf32>
    %cst_260 = arith.constant dense<0.000000e+00> : vector<8xf32>
    %555 = vector.multi_reduction <add>, %550, %cst_260 [1] : vector<8x32xf32> to vector<8xf32>
    %556 = vector.shape_cast %555 : vector<8xf32> to vector<8x1xf32>
    %cst_261 = arith.constant 3.200000e+01 : f32
    %557 = vector.broadcast %cst_261 : f32 to vector<8x1xf32>
    %558 = arith.divf %556, %557 : vector<8x1xf32>
    %559 = vector.broadcast %558 : vector<8x1xf32> to vector<8x32xf32>
    %560 = arith.subf %550, %559 : vector<8x32xf32>
    %561 = arith.mulf %560, %560 : vector<8x32xf32>
    %cst_262 = arith.constant dense<0.000000e+00> : vector<8xf32>
    %562 = vector.multi_reduction <add>, %561, %cst_262 [1] : vector<8x32xf32> to vector<8xf32>
    %563 = vector.shape_cast %562 : vector<8xf32> to vector<8x1xf32>
    %cst_263 = arith.constant 3.200000e+01 : f32
    %564 = vector.broadcast %cst_263 : f32 to vector<8x1xf32>
    %565 = arith.divf %563, %564 : vector<8x1xf32>
    %cst_264 = arith.constant 9.99999974E-6 : f32
    %566 = vector.broadcast %cst_264 : f32 to vector<8x1xf32>
    %567 = arith.addf %565, %566 : vector<8x1xf32>
    %568 = math.rsqrt %567 : vector<8x1xf32>
    %569 = vector.broadcast %568 : vector<8x1xf32> to vector<8x32xf32>
    %570 = arith.mulf %560, %569 : vector<8x32xf32>
    %571 = vector.broadcast %552 : vector<1x32xf32> to vector<8x32xf32>
    %572 = arith.mulf %570, %571 : vector<8x32xf32>
    %573 = vector.broadcast %554 : vector<1x32xf32> to vector<8x32xf32>
    %574 = arith.addf %572, %573 : vector<8x32xf32>
    %c1_265 = arith.constant 1 : index
    %c0_266 = arith.constant 0 : index
    %c0_267 = arith.constant 0 : index
    %575 = vector.load %arg15[%c1_265, %c0_266, %c0_267] : memref<2x32x32xf32, #tpu.memory_space<vmem>>, vector<1x32x32xf32>
    %576 = vector.shape_cast %575 : vector<1x32x32xf32> to vector<32x32xf32>
    %c1_268 = arith.constant 1 : index
    %c0_269 = arith.constant 0 : index
    %c0_270 = arith.constant 0 : index
    %577 = vector.load %arg16[%c1_268, %c0_269, %c0_270] : memref<2x32x32xf32, #tpu.memory_space<vmem>>, vector<1x32x32xf32>
    %578 = vector.shape_cast %577 : vector<1x32x32xf32> to vector<32x32xf32>
    %c1_271 = arith.constant 1 : index
    %c0_272 = arith.constant 0 : index
    %c0_273 = arith.constant 0 : index
    %579 = vector.load %arg17[%c1_271, %c0_272, %c0_273] : memref<2x32x32xf32, #tpu.memory_space<vmem>>, vector<1x32x32xf32>
    %580 = vector.shape_cast %579 : vector<1x32x32xf32> to vector<32x32xf32>
    %c1_274 = arith.constant 1 : index
    %c0_275 = arith.constant 0 : index
    %c0_276 = arith.constant 0 : index
    %581 = vector.load %arg18[%c1_274, %c0_275, %c0_276] : memref<2x32x32xf32, #tpu.memory_space<vmem>>, vector<1x32x32xf32>
    %582 = vector.shape_cast %581 : vector<1x32x32xf32> to vector<32x32xf32>
    %cst_277 = arith.constant dense<0.000000e+00> : vector<8x32xf32>
    %583 = tpu.matmul %574, %576, %cst_277 {dimension_numbers = #tpu.dot_dimension_numbers<[1], [0], [0], [1], [0, 0, 1, 1], [], []>} : vector<8x32xf32>, vector<32x32xf32>, vector<8x32xf32> -> vector<8x32xf32>
    %cst_278 = arith.constant 0.353553385 : f32
    %584 = vector.broadcast %cst_278 : f32 to vector<8x32xf32>
    %585 = arith.mulf %583, %584 : vector<8x32xf32>
    %cst_279 = arith.constant dense<0.000000e+00> : vector<8x32xf32>
    %586 = tpu.matmul %574, %578, %cst_279 {dimension_numbers = #tpu.dot_dimension_numbers<[1], [0], [0], [1], [0, 0, 1, 1], [], []>} : vector<8x32xf32>, vector<32x32xf32>, vector<8x32xf32> -> vector<8x32xf32>
    %cst_280 = arith.constant dense<0.000000e+00> : vector<8x32xf32>
    %587 = tpu.matmul %574, %580, %cst_280 {dimension_numbers = #tpu.dot_dimension_numbers<[1], [0], [0], [1], [0, 0, 1, 1], [], []>} : vector<8x32xf32>, vector<32x32xf32>, vector<8x32xf32> -> vector<8x32xf32>
    %588 = tpu.iota {dimensions = array<i32: 0>} : vector<8x8xi32>
    %589 = tpu.iota {dimensions = array<i32: 1>} : vector<8x8xi32>
    %590 = arith.cmpi sge, %588, %589 : vector<8x8xi32>
    %cst_281 = arith.constant 0.000000e+00 : f32
    %cst_282 = arith.constant -1.000000e+30 : f32
    %591 = vector.broadcast %cst_281 : f32 to vector<8x8xf32>
    %592 = vector.broadcast %cst_282 : f32 to vector<8x8xf32>
    %593 = arith.select %590, %591, %592 : vector<8x8xi1>, vector<8x8xf32>
    %cst_283 = arith.constant 0.000000e+00 : f32
    %594 = vector.broadcast %cst_283 : f32 to vector<8x32xf32>
    %595 = vector.extract_strided_slice %585 {offsets = [0, 0], sizes = [8, 8], strides = [1, 1]} : vector<8x32xf32> to vector<8x8xf32>
    %596 = vector.extract_strided_slice %586 {offsets = [0, 0], sizes = [8, 8], strides = [1, 1]} : vector<8x32xf32> to vector<8x8xf32>
    %597 = vector.extract_strided_slice %587 {offsets = [0, 0], sizes = [8, 8], strides = [1, 1]} : vector<8x32xf32> to vector<8x8xf32>
    %cst_284 = arith.constant dense<0.000000e+00> : vector<8x8xf32>
    %598 = tpu.matmul %595, %596, %cst_284 {dimension_numbers = #tpu.dot_dimension_numbers<[1], [1], [0], [0], [0, 0, 1, 0], [], []>} : vector<8x8xf32>, vector<8x8xf32>, vector<8x8xf32> -> vector<8x8xf32>
    %599 = arith.addf %598, %593 : vector<8x8xf32>
    %cst_285 = arith.constant dense<0xFF800000> : vector<8xf32>
    %600 = vector.multi_reduction <maximumf>, %599, %cst_285 [1] : vector<8x8xf32> to vector<8xf32>
    %601 = vector.shape_cast %600 : vector<8xf32> to vector<8x1xf32>
    %602 = vector.broadcast %601 : vector<8x1xf32> to vector<8x8xf32>
    %603 = arith.subf %599, %602 : vector<8x8xf32>
    %604 = math.exp %603 : vector<8x8xf32>
    %cst_286 = arith.constant dense<0.000000e+00> : vector<8xf32>
    %605 = vector.multi_reduction <add>, %604, %cst_286 [1] : vector<8x8xf32> to vector<8xf32>
    %606 = vector.shape_cast %605 : vector<8xf32> to vector<8x1xf32>
    %cst_287 = arith.constant dense<0.000000e+00> : vector<8x8xf32>
    %607 = tpu.matmul %604, %597, %cst_287 {dimension_numbers = #tpu.dot_dimension_numbers<[1], [0], [0], [1], [0, 0, 1, 1], [], []>} : vector<8x8xf32>, vector<8x8xf32>, vector<8x8xf32> -> vector<8x8xf32>
    %608 = tpu.reciprocal %606 {approx = true} : vector<8x1xf32> -> vector<8x1xf32>
    %609 = vector.broadcast %608 : vector<8x1xf32> to vector<8x8xf32>
    %610 = arith.mulf %607, %609 : vector<8x8xf32>
    %611 = vector.extract_strided_slice %582 {offsets = [0, 0], sizes = [8, 32], strides = [1, 1]} : vector<32x32xf32> to vector<8x32xf32>
    %cst_288 = arith.constant dense<0.000000e+00> : vector<8x32xf32>
    %612 = tpu.matmul %610, %611, %cst_288 {dimension_numbers = #tpu.dot_dimension_numbers<[1], [0], [0], [1], [0, 0, 1, 1], [], []>} : vector<8x8xf32>, vector<8x32xf32>, vector<8x32xf32> -> vector<8x32xf32>
    %613 = arith.addf %594, %612 : vector<8x32xf32>
    %614 = vector.extract_strided_slice %585 {offsets = [0, 8], sizes = [8, 8], strides = [1, 1]} : vector<8x32xf32> to vector<8x8xf32>
    %615 = vector.extract_strided_slice %586 {offsets = [0, 8], sizes = [8, 8], strides = [1, 1]} : vector<8x32xf32> to vector<8x8xf32>
    %616 = vector.extract_strided_slice %587 {offsets = [0, 8], sizes = [8, 8], strides = [1, 1]} : vector<8x32xf32> to vector<8x8xf32>
    %cst_289 = arith.constant dense<0.000000e+00> : vector<8x8xf32>
    %617 = tpu.matmul %614, %615, %cst_289 {dimension_numbers = #tpu.dot_dimension_numbers<[1], [1], [0], [0], [0, 0, 1, 0], [], []>} : vector<8x8xf32>, vector<8x8xf32>, vector<8x8xf32> -> vector<8x8xf32>
    %618 = arith.addf %617, %593 : vector<8x8xf32>
    %cst_290 = arith.constant dense<0xFF800000> : vector<8xf32>
    %619 = vector.multi_reduction <maximumf>, %618, %cst_290 [1] : vector<8x8xf32> to vector<8xf32>
    %620 = vector.shape_cast %619 : vector<8xf32> to vector<8x1xf32>
    %621 = vector.broadcast %620 : vector<8x1xf32> to vector<8x8xf32>
    %622 = arith.subf %618, %621 : vector<8x8xf32>
    %623 = math.exp %622 : vector<8x8xf32>
    %cst_291 = arith.constant dense<0.000000e+00> : vector<8xf32>
    %624 = vector.multi_reduction <add>, %623, %cst_291 [1] : vector<8x8xf32> to vector<8xf32>
    %625 = vector.shape_cast %624 : vector<8xf32> to vector<8x1xf32>
    %cst_292 = arith.constant dense<0.000000e+00> : vector<8x8xf32>
    %626 = tpu.matmul %623, %616, %cst_292 {dimension_numbers = #tpu.dot_dimension_numbers<[1], [0], [0], [1], [0, 0, 1, 1], [], []>} : vector<8x8xf32>, vector<8x8xf32>, vector<8x8xf32> -> vector<8x8xf32>
    %627 = tpu.reciprocal %625 {approx = true} : vector<8x1xf32> -> vector<8x1xf32>
    %628 = vector.broadcast %627 : vector<8x1xf32> to vector<8x8xf32>
    %629 = arith.mulf %626, %628 : vector<8x8xf32>
    %630 = vector.extract_strided_slice %582 {offsets = [8, 0], sizes = [8, 32], strides = [1, 1]} : vector<32x32xf32> to vector<8x32xf32>
    %cst_293 = arith.constant dense<0.000000e+00> : vector<8x32xf32>
    %631 = tpu.matmul %629, %630, %cst_293 {dimension_numbers = #tpu.dot_dimension_numbers<[1], [0], [0], [1], [0, 0, 1, 1], [], []>} : vector<8x8xf32>, vector<8x32xf32>, vector<8x32xf32> -> vector<8x32xf32>
    %632 = arith.addf %613, %631 : vector<8x32xf32>
    %633 = vector.extract_strided_slice %585 {offsets = [0, 16], sizes = [8, 8], strides = [1, 1]} : vector<8x32xf32> to vector<8x8xf32>
    %634 = vector.extract_strided_slice %586 {offsets = [0, 16], sizes = [8, 8], strides = [1, 1]} : vector<8x32xf32> to vector<8x8xf32>
    %635 = vector.extract_strided_slice %587 {offsets = [0, 16], sizes = [8, 8], strides = [1, 1]} : vector<8x32xf32> to vector<8x8xf32>
    %cst_294 = arith.constant dense<0.000000e+00> : vector<8x8xf32>
    %636 = tpu.matmul %633, %634, %cst_294 {dimension_numbers = #tpu.dot_dimension_numbers<[1], [1], [0], [0], [0, 0, 1, 0], [], []>} : vector<8x8xf32>, vector<8x8xf32>, vector<8x8xf32> -> vector<8x8xf32>
    %637 = arith.addf %636, %593 : vector<8x8xf32>
    %cst_295 = arith.constant dense<0xFF800000> : vector<8xf32>
    %638 = vector.multi_reduction <maximumf>, %637, %cst_295 [1] : vector<8x8xf32> to vector<8xf32>
    %639 = vector.shape_cast %638 : vector<8xf32> to vector<8x1xf32>
    %640 = vector.broadcast %639 : vector<8x1xf32> to vector<8x8xf32>
    %641 = arith.subf %637, %640 : vector<8x8xf32>
    %642 = math.exp %641 : vector<8x8xf32>
    %cst_296 = arith.constant dense<0.000000e+00> : vector<8xf32>
    %643 = vector.multi_reduction <add>, %642, %cst_296 [1] : vector<8x8xf32> to vector<8xf32>
    %644 = vector.shape_cast %643 : vector<8xf32> to vector<8x1xf32>
    %cst_297 = arith.constant dense<0.000000e+00> : vector<8x8xf32>
    %645 = tpu.matmul %642, %635, %cst_297 {dimension_numbers = #tpu.dot_dimension_numbers<[1], [0], [0], [1], [0, 0, 1, 1], [], []>} : vector<8x8xf32>, vector<8x8xf32>, vector<8x8xf32> -> vector<8x8xf32>
    %646 = tpu.reciprocal %644 {approx = true} : vector<8x1xf32> -> vector<8x1xf32>
    %647 = vector.broadcast %646 : vector<8x1xf32> to vector<8x8xf32>
    %648 = arith.mulf %645, %647 : vector<8x8xf32>
    %649 = vector.extract_strided_slice %582 {offsets = [16, 0], sizes = [8, 32], strides = [1, 1]} : vector<32x32xf32> to vector<8x32xf32>
    %cst_298 = arith.constant dense<0.000000e+00> : vector<8x32xf32>
    %650 = tpu.matmul %648, %649, %cst_298 {dimension_numbers = #tpu.dot_dimension_numbers<[1], [0], [0], [1], [0, 0, 1, 1], [], []>} : vector<8x8xf32>, vector<8x32xf32>, vector<8x32xf32> -> vector<8x32xf32>
    %651 = arith.addf %632, %650 : vector<8x32xf32>
    %652 = vector.extract_strided_slice %585 {offsets = [0, 24], sizes = [8, 8], strides = [1, 1]} : vector<8x32xf32> to vector<8x8xf32>
    %653 = vector.extract_strided_slice %586 {offsets = [0, 24], sizes = [8, 8], strides = [1, 1]} : vector<8x32xf32> to vector<8x8xf32>
    %654 = vector.extract_strided_slice %587 {offsets = [0, 24], sizes = [8, 8], strides = [1, 1]} : vector<8x32xf32> to vector<8x8xf32>
    %cst_299 = arith.constant dense<0.000000e+00> : vector<8x8xf32>
    %655 = tpu.matmul %652, %653, %cst_299 {dimension_numbers = #tpu.dot_dimension_numbers<[1], [1], [0], [0], [0, 0, 1, 0], [], []>} : vector<8x8xf32>, vector<8x8xf32>, vector<8x8xf32> -> vector<8x8xf32>
    %656 = arith.addf %655, %593 : vector<8x8xf32>
    %cst_300 = arith.constant dense<0xFF800000> : vector<8xf32>
    %657 = vector.multi_reduction <maximumf>, %656, %cst_300 [1] : vector<8x8xf32> to vector<8xf32>
    %658 = vector.shape_cast %657 : vector<8xf32> to vector<8x1xf32>
    %659 = vector.broadcast %658 : vector<8x1xf32> to vector<8x8xf32>
    %660 = arith.subf %656, %659 : vector<8x8xf32>
    %661 = math.exp %660 : vector<8x8xf32>
    %cst_301 = arith.constant dense<0.000000e+00> : vector<8xf32>
    %662 = vector.multi_reduction <add>, %661, %cst_301 [1] : vector<8x8xf32> to vector<8xf32>
    %663 = vector.shape_cast %662 : vector<8xf32> to vector<8x1xf32>
    %cst_302 = arith.constant dense<0.000000e+00> : vector<8x8xf32>
    %664 = tpu.matmul %661, %654, %cst_302 {dimension_numbers = #tpu.dot_dimension_numbers<[1], [0], [0], [1], [0, 0, 1, 1], [], []>} : vector<8x8xf32>, vector<8x8xf32>, vector<8x8xf32> -> vector<8x8xf32>
    %665 = tpu.reciprocal %663 {approx = true} : vector<8x1xf32> -> vector<8x1xf32>
    %666 = vector.broadcast %665 : vector<8x1xf32> to vector<8x8xf32>
    %667 = arith.mulf %664, %666 : vector<8x8xf32>
    %668 = vector.extract_strided_slice %582 {offsets = [24, 0], sizes = [8, 32], strides = [1, 1]} : vector<32x32xf32> to vector<8x32xf32>
    %cst_303 = arith.constant dense<0.000000e+00> : vector<8x32xf32>
    %669 = tpu.matmul %667, %668, %cst_303 {dimension_numbers = #tpu.dot_dimension_numbers<[1], [0], [0], [1], [0, 0, 1, 1], [], []>} : vector<8x8xf32>, vector<8x32xf32>, vector<8x32xf32> -> vector<8x32xf32>
    %670 = arith.addf %651, %669 : vector<8x32xf32>
    %671 = arith.addf %574, %670 : vector<8x32xf32>
    %c3_304 = arith.constant 3 : index
    %c0_305 = arith.constant 0 : index
    %c0_306 = arith.constant 0 : index
    %672 = vector.load %arg25[%c3_304, %c0_305, %c0_306] : memref<6x1x32xf32, #tpu.memory_space<vmem>>, vector<1x1x32xf32>
    %673 = vector.shape_cast %672 : vector<1x1x32xf32> to vector<1x32xf32>
    %c3_307 = arith.constant 3 : index
    %c0_308 = arith.constant 0 : index
    %c0_309 = arith.constant 0 : index
    %674 = vector.load %arg26[%c3_307, %c0_308, %c0_309] : memref<6x1x32xf32, #tpu.memory_space<vmem>>, vector<1x1x32xf32>
    %675 = vector.shape_cast %674 : vector<1x1x32xf32> to vector<1x32xf32>
    %cst_310 = arith.constant dense<0.000000e+00> : vector<8xf32>
    %676 = vector.multi_reduction <add>, %671, %cst_310 [1] : vector<8x32xf32> to vector<8xf32>
    %677 = vector.shape_cast %676 : vector<8xf32> to vector<8x1xf32>
    %cst_311 = arith.constant 3.200000e+01 : f32
    %678 = vector.broadcast %cst_311 : f32 to vector<8x1xf32>
    %679 = arith.divf %677, %678 : vector<8x1xf32>
    %680 = vector.broadcast %679 : vector<8x1xf32> to vector<8x32xf32>
    %681 = arith.subf %671, %680 : vector<8x32xf32>
    %682 = arith.mulf %681, %681 : vector<8x32xf32>
    %cst_312 = arith.constant dense<0.000000e+00> : vector<8xf32>
    %683 = vector.multi_reduction <add>, %682, %cst_312 [1] : vector<8x32xf32> to vector<8xf32>
    %684 = vector.shape_cast %683 : vector<8xf32> to vector<8x1xf32>
    %cst_313 = arith.constant 3.200000e+01 : f32
    %685 = vector.broadcast %cst_313 : f32 to vector<8x1xf32>
    %686 = arith.divf %684, %685 : vector<8x1xf32>
    %cst_314 = arith.constant 9.99999974E-6 : f32
    %687 = vector.broadcast %cst_314 : f32 to vector<8x1xf32>
    %688 = arith.addf %686, %687 : vector<8x1xf32>
    %689 = math.rsqrt %688 : vector<8x1xf32>
    %690 = vector.broadcast %689 : vector<8x1xf32> to vector<8x32xf32>
    %691 = arith.mulf %681, %690 : vector<8x32xf32>
    %692 = vector.broadcast %673 : vector<1x32xf32> to vector<8x32xf32>
    %693 = arith.mulf %691, %692 : vector<8x32xf32>
    %694 = vector.broadcast %675 : vector<1x32xf32> to vector<8x32xf32>
    %695 = arith.addf %693, %694 : vector<8x32xf32>
    %c1_315 = arith.constant 1 : index
    %c0_316 = arith.constant 0 : index
    %c0_317 = arith.constant 0 : index
    %696 = vector.load %arg19[%c1_315, %c0_316, %c0_317] : memref<2x32x32xf32, #tpu.memory_space<vmem>>, vector<1x32x32xf32>
    %697 = vector.shape_cast %696 : vector<1x32x32xf32> to vector<32x32xf32>
    %c1_318 = arith.constant 1 : index
    %c0_319 = arith.constant 0 : index
    %c0_320 = arith.constant 0 : index
    %698 = vector.load %arg20[%c1_318, %c0_319, %c0_320] : memref<2x32x32xf32, #tpu.memory_space<vmem>>, vector<1x32x32xf32>
    %699 = vector.shape_cast %698 : vector<1x32x32xf32> to vector<32x32xf32>
    %c1_321 = arith.constant 1 : index
    %c0_322 = arith.constant 0 : index
    %c0_323 = arith.constant 0 : index
    %700 = vector.load %arg21[%c1_321, %c0_322, %c0_323] : memref<2x32x32xf32, #tpu.memory_space<vmem>>, vector<1x32x32xf32>
    %701 = vector.shape_cast %700 : vector<1x32x32xf32> to vector<32x32xf32>
    %c1_324 = arith.constant 1 : index
    %c0_325 = arith.constant 0 : index
    %c0_326 = arith.constant 0 : index
    %702 = vector.load %arg22[%c1_324, %c0_325, %c0_326] : memref<2x32x32xf32, #tpu.memory_space<vmem>>, vector<1x32x32xf32>
    %703 = vector.shape_cast %702 : vector<1x32x32xf32> to vector<32x32xf32>
    %cst_327 = arith.constant dense<0.000000e+00> : vector<8x32xf32>
    %704 = tpu.matmul %695, %697, %cst_327 {dimension_numbers = #tpu.dot_dimension_numbers<[1], [0], [0], [1], [0, 0, 1, 1], [], []>} : vector<8x32xf32>, vector<32x32xf32>, vector<8x32xf32> -> vector<8x32xf32>
    %cst_328 = arith.constant 0.353553385 : f32
    %705 = vector.broadcast %cst_328 : f32 to vector<8x32xf32>
    %706 = arith.mulf %704, %705 : vector<8x32xf32>
    %cst_329 = arith.constant dense<0.000000e+00> : vector<8x32xf32>
    %707 = tpu.matmul %298, %699, %cst_329 {dimension_numbers = #tpu.dot_dimension_numbers<[1], [0], [0], [1], [0, 0, 1, 1], [], []>} : vector<8x32xf32>, vector<32x32xf32>, vector<8x32xf32> -> vector<8x32xf32>
    %cst_330 = arith.constant dense<0.000000e+00> : vector<8x32xf32>
    %708 = tpu.matmul %298, %701, %cst_330 {dimension_numbers = #tpu.dot_dimension_numbers<[1], [0], [0], [1], [0, 0, 1, 1], [], []>} : vector<8x32xf32>, vector<32x32xf32>, vector<8x32xf32> -> vector<8x32xf32>
    %cst_331 = arith.constant 0.000000e+00 : f32
    %709 = vector.broadcast %cst_331 : f32 to vector<8x32xf32>
    %710 = vector.extract_strided_slice %706 {offsets = [0, 0], sizes = [8, 8], strides = [1, 1]} : vector<8x32xf32> to vector<8x8xf32>
    %711 = vector.extract_strided_slice %707 {offsets = [0, 0], sizes = [8, 8], strides = [1, 1]} : vector<8x32xf32> to vector<8x8xf32>
    %712 = vector.extract_strided_slice %708 {offsets = [0, 0], sizes = [8, 8], strides = [1, 1]} : vector<8x32xf32> to vector<8x8xf32>
    %cst_332 = arith.constant dense<0.000000e+00> : vector<8x8xf32>
    %713 = tpu.matmul %710, %711, %cst_332 {dimension_numbers = #tpu.dot_dimension_numbers<[1], [1], [0], [0], [0, 0, 1, 0], [], []>} : vector<8x8xf32>, vector<8x8xf32>, vector<8x8xf32> -> vector<8x8xf32>
    %cst_333 = arith.constant dense<0xFF800000> : vector<8xf32>
    %714 = vector.multi_reduction <maximumf>, %713, %cst_333 [1] : vector<8x8xf32> to vector<8xf32>
    %715 = vector.shape_cast %714 : vector<8xf32> to vector<8x1xf32>
    %716 = vector.broadcast %715 : vector<8x1xf32> to vector<8x8xf32>
    %717 = arith.subf %713, %716 : vector<8x8xf32>
    %718 = math.exp %717 : vector<8x8xf32>
    %cst_334 = arith.constant dense<0.000000e+00> : vector<8xf32>
    %719 = vector.multi_reduction <add>, %718, %cst_334 [1] : vector<8x8xf32> to vector<8xf32>
    %720 = vector.shape_cast %719 : vector<8xf32> to vector<8x1xf32>
    %cst_335 = arith.constant dense<0.000000e+00> : vector<8x8xf32>
    %721 = tpu.matmul %718, %712, %cst_335 {dimension_numbers = #tpu.dot_dimension_numbers<[1], [0], [0], [1], [0, 0, 1, 1], [], []>} : vector<8x8xf32>, vector<8x8xf32>, vector<8x8xf32> -> vector<8x8xf32>
    %722 = tpu.reciprocal %720 {approx = true} : vector<8x1xf32> -> vector<8x1xf32>
    %723 = vector.broadcast %722 : vector<8x1xf32> to vector<8x8xf32>
    %724 = arith.mulf %721, %723 : vector<8x8xf32>
    %725 = vector.extract_strided_slice %703 {offsets = [0, 0], sizes = [8, 32], strides = [1, 1]} : vector<32x32xf32> to vector<8x32xf32>
    %cst_336 = arith.constant dense<0.000000e+00> : vector<8x32xf32>
    %726 = tpu.matmul %724, %725, %cst_336 {dimension_numbers = #tpu.dot_dimension_numbers<[1], [0], [0], [1], [0, 0, 1, 1], [], []>} : vector<8x8xf32>, vector<8x32xf32>, vector<8x32xf32> -> vector<8x32xf32>
    %727 = arith.addf %709, %726 : vector<8x32xf32>
    %728 = vector.extract_strided_slice %706 {offsets = [0, 8], sizes = [8, 8], strides = [1, 1]} : vector<8x32xf32> to vector<8x8xf32>
    %729 = vector.extract_strided_slice %707 {offsets = [0, 8], sizes = [8, 8], strides = [1, 1]} : vector<8x32xf32> to vector<8x8xf32>
    %730 = vector.extract_strided_slice %708 {offsets = [0, 8], sizes = [8, 8], strides = [1, 1]} : vector<8x32xf32> to vector<8x8xf32>
    %cst_337 = arith.constant dense<0.000000e+00> : vector<8x8xf32>
    %731 = tpu.matmul %728, %729, %cst_337 {dimension_numbers = #tpu.dot_dimension_numbers<[1], [1], [0], [0], [0, 0, 1, 0], [], []>} : vector<8x8xf32>, vector<8x8xf32>, vector<8x8xf32> -> vector<8x8xf32>
    %cst_338 = arith.constant dense<0xFF800000> : vector<8xf32>
    %732 = vector.multi_reduction <maximumf>, %731, %cst_338 [1] : vector<8x8xf32> to vector<8xf32>
    %733 = vector.shape_cast %732 : vector<8xf32> to vector<8x1xf32>
    %734 = vector.broadcast %733 : vector<8x1xf32> to vector<8x8xf32>
    %735 = arith.subf %731, %734 : vector<8x8xf32>
    %736 = math.exp %735 : vector<8x8xf32>
    %cst_339 = arith.constant dense<0.000000e+00> : vector<8xf32>
    %737 = vector.multi_reduction <add>, %736, %cst_339 [1] : vector<8x8xf32> to vector<8xf32>
    %738 = vector.shape_cast %737 : vector<8xf32> to vector<8x1xf32>
    %cst_340 = arith.constant dense<0.000000e+00> : vector<8x8xf32>
    %739 = tpu.matmul %736, %730, %cst_340 {dimension_numbers = #tpu.dot_dimension_numbers<[1], [0], [0], [1], [0, 0, 1, 1], [], []>} : vector<8x8xf32>, vector<8x8xf32>, vector<8x8xf32> -> vector<8x8xf32>
    %740 = tpu.reciprocal %738 {approx = true} : vector<8x1xf32> -> vector<8x1xf32>
    %741 = vector.broadcast %740 : vector<8x1xf32> to vector<8x8xf32>
    %742 = arith.mulf %739, %741 : vector<8x8xf32>
    %743 = vector.extract_strided_slice %703 {offsets = [8, 0], sizes = [8, 32], strides = [1, 1]} : vector<32x32xf32> to vector<8x32xf32>
    %cst_341 = arith.constant dense<0.000000e+00> : vector<8x32xf32>
    %744 = tpu.matmul %742, %743, %cst_341 {dimension_numbers = #tpu.dot_dimension_numbers<[1], [0], [0], [1], [0, 0, 1, 1], [], []>} : vector<8x8xf32>, vector<8x32xf32>, vector<8x32xf32> -> vector<8x32xf32>
    %745 = arith.addf %727, %744 : vector<8x32xf32>
    %746 = vector.extract_strided_slice %706 {offsets = [0, 16], sizes = [8, 8], strides = [1, 1]} : vector<8x32xf32> to vector<8x8xf32>
    %747 = vector.extract_strided_slice %707 {offsets = [0, 16], sizes = [8, 8], strides = [1, 1]} : vector<8x32xf32> to vector<8x8xf32>
    %748 = vector.extract_strided_slice %708 {offsets = [0, 16], sizes = [8, 8], strides = [1, 1]} : vector<8x32xf32> to vector<8x8xf32>
    %cst_342 = arith.constant dense<0.000000e+00> : vector<8x8xf32>
    %749 = tpu.matmul %746, %747, %cst_342 {dimension_numbers = #tpu.dot_dimension_numbers<[1], [1], [0], [0], [0, 0, 1, 0], [], []>} : vector<8x8xf32>, vector<8x8xf32>, vector<8x8xf32> -> vector<8x8xf32>
    %cst_343 = arith.constant dense<0xFF800000> : vector<8xf32>
    %750 = vector.multi_reduction <maximumf>, %749, %cst_343 [1] : vector<8x8xf32> to vector<8xf32>
    %751 = vector.shape_cast %750 : vector<8xf32> to vector<8x1xf32>
    %752 = vector.broadcast %751 : vector<8x1xf32> to vector<8x8xf32>
    %753 = arith.subf %749, %752 : vector<8x8xf32>
    %754 = math.exp %753 : vector<8x8xf32>
    %cst_344 = arith.constant dense<0.000000e+00> : vector<8xf32>
    %755 = vector.multi_reduction <add>, %754, %cst_344 [1] : vector<8x8xf32> to vector<8xf32>
    %756 = vector.shape_cast %755 : vector<8xf32> to vector<8x1xf32>
    %cst_345 = arith.constant dense<0.000000e+00> : vector<8x8xf32>
    %757 = tpu.matmul %754, %748, %cst_345 {dimension_numbers = #tpu.dot_dimension_numbers<[1], [0], [0], [1], [0, 0, 1, 1], [], []>} : vector<8x8xf32>, vector<8x8xf32>, vector<8x8xf32> -> vector<8x8xf32>
    %758 = tpu.reciprocal %756 {approx = true} : vector<8x1xf32> -> vector<8x1xf32>
    %759 = vector.broadcast %758 : vector<8x1xf32> to vector<8x8xf32>
    %760 = arith.mulf %757, %759 : vector<8x8xf32>
    %761 = vector.extract_strided_slice %703 {offsets = [16, 0], sizes = [8, 32], strides = [1, 1]} : vector<32x32xf32> to vector<8x32xf32>
    %cst_346 = arith.constant dense<0.000000e+00> : vector<8x32xf32>
    %762 = tpu.matmul %760, %761, %cst_346 {dimension_numbers = #tpu.dot_dimension_numbers<[1], [0], [0], [1], [0, 0, 1, 1], [], []>} : vector<8x8xf32>, vector<8x32xf32>, vector<8x32xf32> -> vector<8x32xf32>
    %763 = arith.addf %745, %762 : vector<8x32xf32>
    %764 = vector.extract_strided_slice %706 {offsets = [0, 24], sizes = [8, 8], strides = [1, 1]} : vector<8x32xf32> to vector<8x8xf32>
    %765 = vector.extract_strided_slice %707 {offsets = [0, 24], sizes = [8, 8], strides = [1, 1]} : vector<8x32xf32> to vector<8x8xf32>
    %766 = vector.extract_strided_slice %708 {offsets = [0, 24], sizes = [8, 8], strides = [1, 1]} : vector<8x32xf32> to vector<8x8xf32>
    %cst_347 = arith.constant dense<0.000000e+00> : vector<8x8xf32>
    %767 = tpu.matmul %764, %765, %cst_347 {dimension_numbers = #tpu.dot_dimension_numbers<[1], [1], [0], [0], [0, 0, 1, 0], [], []>} : vector<8x8xf32>, vector<8x8xf32>, vector<8x8xf32> -> vector<8x8xf32>
    %cst_348 = arith.constant dense<0xFF800000> : vector<8xf32>
    %768 = vector.multi_reduction <maximumf>, %767, %cst_348 [1] : vector<8x8xf32> to vector<8xf32>
    %769 = vector.shape_cast %768 : vector<8xf32> to vector<8x1xf32>
    %770 = vector.broadcast %769 : vector<8x1xf32> to vector<8x8xf32>
    %771 = arith.subf %767, %770 : vector<8x8xf32>
    %772 = math.exp %771 : vector<8x8xf32>
    %cst_349 = arith.constant dense<0.000000e+00> : vector<8xf32>
    %773 = vector.multi_reduction <add>, %772, %cst_349 [1] : vector<8x8xf32> to vector<8xf32>
    %774 = vector.shape_cast %773 : vector<8xf32> to vector<8x1xf32>
    %cst_350 = arith.constant dense<0.000000e+00> : vector<8x8xf32>
    %775 = tpu.matmul %772, %766, %cst_350 {dimension_numbers = #tpu.dot_dimension_numbers<[1], [0], [0], [1], [0, 0, 1, 1], [], []>} : vector<8x8xf32>, vector<8x8xf32>, vector<8x8xf32> -> vector<8x8xf32>
    %776 = tpu.reciprocal %774 {approx = true} : vector<8x1xf32> -> vector<8x1xf32>
    %777 = vector.broadcast %776 : vector<8x1xf32> to vector<8x8xf32>
    %778 = arith.mulf %775, %777 : vector<8x8xf32>
    %779 = vector.extract_strided_slice %703 {offsets = [24, 0], sizes = [8, 32], strides = [1, 1]} : vector<32x32xf32> to vector<8x32xf32>
    %cst_351 = arith.constant dense<0.000000e+00> : vector<8x32xf32>
    %780 = tpu.matmul %778, %779, %cst_351 {dimension_numbers = #tpu.dot_dimension_numbers<[1], [0], [0], [1], [0, 0, 1, 1], [], []>} : vector<8x8xf32>, vector<8x32xf32>, vector<8x32xf32> -> vector<8x32xf32>
    %781 = arith.addf %763, %780 : vector<8x32xf32>
    %782 = arith.addf %695, %781 : vector<8x32xf32>
    %c4 = arith.constant 4 : index
    %c0_352 = arith.constant 0 : index
    %c0_353 = arith.constant 0 : index
    %783 = vector.load %arg25[%c4, %c0_352, %c0_353] : memref<6x1x32xf32, #tpu.memory_space<vmem>>, vector<1x1x32xf32>
    %784 = vector.shape_cast %783 : vector<1x1x32xf32> to vector<1x32xf32>
    %c4_354 = arith.constant 4 : index
    %c0_355 = arith.constant 0 : index
    %c0_356 = arith.constant 0 : index
    %785 = vector.load %arg26[%c4_354, %c0_355, %c0_356] : memref<6x1x32xf32, #tpu.memory_space<vmem>>, vector<1x1x32xf32>
    %786 = vector.shape_cast %785 : vector<1x1x32xf32> to vector<1x32xf32>
    %cst_357 = arith.constant dense<0.000000e+00> : vector<8xf32>
    %787 = vector.multi_reduction <add>, %782, %cst_357 [1] : vector<8x32xf32> to vector<8xf32>
    %788 = vector.shape_cast %787 : vector<8xf32> to vector<8x1xf32>
    %cst_358 = arith.constant 3.200000e+01 : f32
    %789 = vector.broadcast %cst_358 : f32 to vector<8x1xf32>
    %790 = arith.divf %788, %789 : vector<8x1xf32>
    %791 = vector.broadcast %790 : vector<8x1xf32> to vector<8x32xf32>
    %792 = arith.subf %782, %791 : vector<8x32xf32>
    %793 = arith.mulf %792, %792 : vector<8x32xf32>
    %cst_359 = arith.constant dense<0.000000e+00> : vector<8xf32>
    %794 = vector.multi_reduction <add>, %793, %cst_359 [1] : vector<8x32xf32> to vector<8xf32>
    %795 = vector.shape_cast %794 : vector<8xf32> to vector<8x1xf32>
    %cst_360 = arith.constant 3.200000e+01 : f32
    %796 = vector.broadcast %cst_360 : f32 to vector<8x1xf32>
    %797 = arith.divf %795, %796 : vector<8x1xf32>
    %cst_361 = arith.constant 9.99999974E-6 : f32
    %798 = vector.broadcast %cst_361 : f32 to vector<8x1xf32>
    %799 = arith.addf %797, %798 : vector<8x1xf32>
    %800 = math.rsqrt %799 : vector<8x1xf32>
    %801 = vector.broadcast %800 : vector<8x1xf32> to vector<8x32xf32>
    %802 = arith.mulf %792, %801 : vector<8x32xf32>
    %803 = vector.broadcast %784 : vector<1x32xf32> to vector<8x32xf32>
    %804 = arith.mulf %802, %803 : vector<8x32xf32>
    %805 = vector.broadcast %786 : vector<1x32xf32> to vector<8x32xf32>
    %806 = arith.addf %804, %805 : vector<8x32xf32>
    %c1_362 = arith.constant 1 : index
    %c0_363 = arith.constant 0 : index
    %c0_364 = arith.constant 0 : index
    %807 = vector.load %arg23[%c1_362, %c0_363, %c0_364] : memref<2x32x64xf32, #tpu.memory_space<vmem>>, vector<1x32x64xf32>
    %808 = vector.shape_cast %807 : vector<1x32x64xf32> to vector<32x64xf32>
    %c1_365 = arith.constant 1 : index
    %c0_366 = arith.constant 0 : index
    %c0_367 = arith.constant 0 : index
    %809 = vector.load %arg24[%c1_365, %c0_366, %c0_367] : memref<2x64x32xf32, #tpu.memory_space<vmem>>, vector<1x64x32xf32>
    %810 = vector.shape_cast %809 : vector<1x64x32xf32> to vector<64x32xf32>
    %cst_368 = arith.constant dense<0.000000e+00> : vector<8x64xf32>
    %811 = tpu.matmul %806, %808, %cst_368 {dimension_numbers = #tpu.dot_dimension_numbers<[1], [0], [0], [1], [0, 0, 1, 1], [], []>} : vector<8x32xf32>, vector<32x64xf32>, vector<8x64xf32> -> vector<8x64xf32>
    %cst_369 = arith.constant 0.000000e+00 : f32
    %812 = vector.broadcast %cst_369 : f32 to vector<8x64xf32>
    %813 = arith.maximumf %811, %812 : vector<8x64xf32>
    %cst_370 = arith.constant dense<0.000000e+00> : vector<8x32xf32>
    %814 = tpu.matmul %813, %810, %cst_370 {dimension_numbers = #tpu.dot_dimension_numbers<[1], [0], [0], [1], [0, 0, 1, 1], [], []>} : vector<8x64xf32>, vector<64x32xf32>, vector<8x32xf32> -> vector<8x32xf32>
    %815 = arith.addf %806, %814 : vector<8x32xf32>
    %c5 = arith.constant 5 : index
    %c0_371 = arith.constant 0 : index
    %c0_372 = arith.constant 0 : index
    %816 = vector.load %arg25[%c5, %c0_371, %c0_372] : memref<6x1x32xf32, #tpu.memory_space<vmem>>, vector<1x1x32xf32>
    %817 = vector.shape_cast %816 : vector<1x1x32xf32> to vector<1x32xf32>
    %c5_373 = arith.constant 5 : index
    %c0_374 = arith.constant 0 : index
    %c0_375 = arith.constant 0 : index
    %818 = vector.load %arg26[%c5_373, %c0_374, %c0_375] : memref<6x1x32xf32, #tpu.memory_space<vmem>>, vector<1x1x32xf32>
    %819 = vector.shape_cast %818 : vector<1x1x32xf32> to vector<1x32xf32>
    %cst_376 = arith.constant dense<0.000000e+00> : vector<8xf32>
    %820 = vector.multi_reduction <add>, %815, %cst_376 [1] : vector<8x32xf32> to vector<8xf32>
    %821 = vector.shape_cast %820 : vector<8xf32> to vector<8x1xf32>
    %cst_377 = arith.constant 3.200000e+01 : f32
    %822 = vector.broadcast %cst_377 : f32 to vector<8x1xf32>
    %823 = arith.divf %821, %822 : vector<8x1xf32>
    %824 = vector.broadcast %823 : vector<8x1xf32> to vector<8x32xf32>
    %825 = arith.subf %815, %824 : vector<8x32xf32>
    %826 = arith.mulf %825, %825 : vector<8x32xf32>
    %cst_378 = arith.constant dense<0.000000e+00> : vector<8xf32>
    %827 = vector.multi_reduction <add>, %826, %cst_378 [1] : vector<8x32xf32> to vector<8xf32>
    %828 = vector.shape_cast %827 : vector<8xf32> to vector<8x1xf32>
    %cst_379 = arith.constant 3.200000e+01 : f32
    %829 = vector.broadcast %cst_379 : f32 to vector<8x1xf32>
    %830 = arith.divf %828, %829 : vector<8x1xf32>
    %cst_380 = arith.constant 9.99999974E-6 : f32
    %831 = vector.broadcast %cst_380 : f32 to vector<8x1xf32>
    %832 = arith.addf %830, %831 : vector<8x1xf32>
    %833 = math.rsqrt %832 : vector<8x1xf32>
    %834 = vector.broadcast %833 : vector<8x1xf32> to vector<8x32xf32>
    %835 = arith.mulf %825, %834 : vector<8x32xf32>
    %836 = vector.broadcast %817 : vector<1x32xf32> to vector<8x32xf32>
    %837 = arith.mulf %835, %836 : vector<8x32xf32>
    %838 = vector.broadcast %819 : vector<1x32xf32> to vector<8x32xf32>
    %839 = arith.addf %837, %838 : vector<8x32xf32>
    %c0_381 = arith.constant 0 : index
    %c0_382 = arith.constant 0 : index
    %840 = vector.load %arg27[%c0_381, %c0_382] : memref<32x64xf32, #tpu.memory_space<vmem>>, vector<32x64xf32>
    %cst_383 = arith.constant dense<0.000000e+00> : vector<8x64xf32>
    %841 = tpu.matmul %839, %840, %cst_383 {dimension_numbers = #tpu.dot_dimension_numbers<[1], [0], [0], [1], [0, 0, 1, 1], [], []>} : vector<8x32xf32>, vector<32x64xf32>, vector<8x64xf32> -> vector<8x64xf32>
    %c0_384 = arith.constant 0 : index
    %c0_385 = arith.constant 0 : index
    %c0_386 = arith.constant 0 : index
    %842 = vector.load %arg28[%c0_384, %c0_385, %c0_386] : memref<1x8x64xf32, #tpu.memory_space<vmem>>, vector<1x8x64xf32>
    %843 = vector.shape_cast %842 : vector<1x8x64xf32> to vector<8x64xf32>
    %844 = vector.shape_cast %841 : vector<8x64xf32> to vector<1x8x64xf32>
    tpu.vector_store %arg28[%c0_384, %c0_385, %c0_386], %844 {strides = array<i32>} : memref<1x8x64xf32, #tpu.memory_space<vmem>>, vector<1x8x64xf32>,
    return
  }
  func.func @transform_0(%arg0: i32) -> (i32, i32, i32) {
    %c0_i32 = arith.constant 0 : i32
    %c0_i32_0 = arith.constant 0 : i32
    %c0_i32_1 = arith.constant 0 : i32
    return %arg0, %c0_i32, %c0_i32_0 : i32, i32, i32
  }
  func.func @transform_1(%arg0: i32) -> (i32, i32, i32) {
    %c0_i32 = arith.constant 0 : i32
    %c0_i32_0 = arith.constant 0 : i32
    %c0_i32_1 = arith.constant 0 : i32
    return %arg0, %c0_i32, %c0_i32_0 : i32, i32, i32
  }
  func.func @transform_2(%arg0: i32) -> (i32, i32) {
    %c0_i32 = arith.constant 0 : i32
    %c0_i32_0 = arith.constant 0 : i32
    %c0_i32_1 = arith.constant 0 : i32
    return %c0_i32, %c0_i32_0 : i32, i32
  }
  func.func @transform_3(%arg0: i32) -> (i32, i32) {
    %c0_i32 = arith.constant 0 : i32
    %c0_i32_0 = arith.constant 0 : i32
    %c0_i32_1 = arith.constant 0 : i32
    return %c0_i32, %c0_i32_0 : i32, i32
  }
  func.func @transform_4(%arg0: i32) -> (i32, i32) {
    %c0_i32 = arith.constant 0 : i32
    %c0_i32_0 = arith.constant 0 : i32
    %c0_i32_1 = arith.constant 0 : i32
    return %c0_i32, %c0_i32_0 : i32, i32
  }
  func.func @transform_5(%arg0: i32) -> (i32, i32) {
    %c0_i32 = arith.constant 0 : i32
    %c0_i32_0 = arith.constant 0 : i32
    %c0_i32_1 = arith.constant 0 : i32
    return %c0_i32, %c0_i32_0 : i32, i32
  }
  func.func @transform_6(%arg0: i32) -> (i32, i32, i32) {
    %c0_i32 = arith.constant 0 : i32
    %c0_i32_0 = arith.constant 0 : i32
    %c0_i32_1 = arith.constant 0 : i32
    %c0_i32_2 = arith.constant 0 : i32
    return %c0_i32, %c0_i32_0, %c0_i32_1 : i32, i32, i32
  }
  func.func @transform_7(%arg0: i32) -> (i32, i32, i32) {
    %c0_i32 = arith.constant 0 : i32
    %c0_i32_0 = arith.constant 0 : i32
    %c0_i32_1 = arith.constant 0 : i32
    %c0_i32_2 = arith.constant 0 : i32
    return %c0_i32, %c0_i32_0, %c0_i32_1 : i32, i32, i32
  }
  func.func @transform_8(%arg0: i32) -> (i32, i32, i32) {
    %c0_i32 = arith.constant 0 : i32
    %c0_i32_0 = arith.constant 0 : i32
    %c0_i32_1 = arith.constant 0 : i32
    %c0_i32_2 = arith.constant 0 : i32
    return %c0_i32, %c0_i32_0, %c0_i32_1 : i32, i32, i32
  }
  func.func @transform_9(%arg0: i32) -> (i32, i32, i32) {
    %c0_i32 = arith.constant 0 : i32
    %c0_i32_0 = arith.constant 0 : i32
    %c0_i32_1 = arith.constant 0 : i32
    %c0_i32_2 = arith.constant 0 : i32
    return %c0_i32, %c0_i32_0, %c0_i32_1 : i32, i32, i32
  }
  func.func @transform_10(%arg0: i32) -> (i32, i32, i32) {
    %c0_i32 = arith.constant 0 : i32
    %c0_i32_0 = arith.constant 0 : i32
    %c0_i32_1 = arith.constant 0 : i32
    %c0_i32_2 = arith.constant 0 : i32
    return %c0_i32, %c0_i32_0, %c0_i32_1 : i32, i32, i32
  }
  func.func @transform_11(%arg0: i32) -> (i32, i32, i32) {
    %c0_i32 = arith.constant 0 : i32
    %c0_i32_0 = arith.constant 0 : i32
    %c0_i32_1 = arith.constant 0 : i32
    %c0_i32_2 = arith.constant 0 : i32
    return %c0_i32, %c0_i32_0, %c0_i32_1 : i32, i32, i32
  }
  func.func @transform_12(%arg0: i32) -> (i32, i32, i32) {
    %c0_i32 = arith.constant 0 : i32
    %c0_i32_0 = arith.constant 0 : i32
    %c0_i32_1 = arith.constant 0 : i32
    %c0_i32_2 = arith.constant 0 : i32
    return %c0_i32, %c0_i32_0, %c0_i32_1 : i32, i32, i32
  }
  func.func @transform_13(%arg0: i32) -> (i32, i32, i32) {
    %c0_i32 = arith.constant 0 : i32
    %c0_i32_0 = arith.constant 0 : i32
    %c0_i32_1 = arith.constant 0 : i32
    %c0_i32_2 = arith.constant 0 : i32
    return %c0_i32, %c0_i32_0, %c0_i32_1 : i32, i32, i32
  }
  func.func @transform_14(%arg0: i32) -> (i32, i32, i32) {
    %c0_i32 = arith.constant 0 : i32
    %c0_i32_0 = arith.constant 0 : i32
    %c0_i32_1 = arith.constant 0 : i32
    %c0_i32_2 = arith.constant 0 : i32
    return %c0_i32, %c0_i32_0, %c0_i32_1 : i32, i32, i32
  }
  func.func @transform_15(%arg0: i32) -> (i32, i32, i32) {
    %c0_i32 = arith.constant 0 : i32
    %c0_i32_0 = arith.constant 0 : i32
    %c0_i32_1 = arith.constant 0 : i32
    %c0_i32_2 = arith.constant 0 : i32
    return %c0_i32, %c0_i32_0, %c0_i32_1 : i32, i32, i32
  }
  func.func @transform_16(%arg0: i32) -> (i32, i32, i32) {
    %c0_i32 = arith.constant 0 : i32
    %c0_i32_0 = arith.constant 0 : i32
    %c0_i32_1 = arith.constant 0 : i32
    %c0_i32_2 = arith.constant 0 : i32
    return %c0_i32, %c0_i32_0, %c0_i32_1 : i32, i32, i32
  }
  func.func @transform_17(%arg0: i32) -> (i32, i32, i32) {
    %c0_i32 = arith.constant 0 : i32
    %c0_i32_0 = arith.constant 0 : i32
    %c0_i32_1 = arith.constant 0 : i32
    %c0_i32_2 = arith.constant 0 : i32
    return %c0_i32, %c0_i32_0, %c0_i32_1 : i32, i32, i32
  }
  func.func @transform_18(%arg0: i32) -> (i32, i32, i32) {
    %c0_i32 = arith.constant 0 : i32
    %c0_i32_0 = arith.constant 0 : i32
    %c0_i32_1 = arith.constant 0 : i32
    %c0_i32_2 = arith.constant 0 : i32
    return %c0_i32, %c0_i32_0, %c0_i32_1 : i32, i32, i32
  }
  func.func @transform_19(%arg0: i32) -> (i32, i32, i32) {
    %c0_i32 = arith.constant 0 : i32
    %c0_i32_0 = arith.constant 0 : i32
    %c0_i32_1 = arith.constant 0 : i32
    %c0_i32_2 = arith.constant 0 : i32
    return %c0_i32, %c0_i32_0, %c0_i32_1 : i32, i32, i32
  }
  func.func @transform_20(%arg0: i32) -> (i32, i32, i32) {
    %c0_i32 = arith.constant 0 : i32
    %c0_i32_0 = arith.constant 0 : i32
    %c0_i32_1 = arith.constant 0 : i32
    %c0_i32_2 = arith.constant 0 : i32
    return %c0_i32, %c0_i32_0, %c0_i32_1 : i32, i32, i32
  }
  func.func @transform_21(%arg0: i32) -> (i32, i32, i32) {
    %c0_i32 = arith.constant 0 : i32
    %c0_i32_0 = arith.constant 0 : i32
    %c0_i32_1 = arith.constant 0 : i32
    %c0_i32_2 = arith.constant 0 : i32
    return %c0_i32, %c0_i32_0, %c0_i32_1 : i32, i32, i32
  }
  func.func @transform_22(%arg0: i32) -> (i32, i32, i32) {
    %c0_i32 = arith.constant 0 : i32
    %c0_i32_0 = arith.constant 0 : i32
    %c0_i32_1 = arith.constant 0 : i32
    %c0_i32_2 = arith.constant 0 : i32
    return %c0_i32, %c0_i32_0, %c0_i32_1 : i32, i32, i32
  }
  func.func @transform_23(%arg0: i32) -> (i32, i32, i32) {
    %c0_i32 = arith.constant 0 : i32
    %c0_i32_0 = arith.constant 0 : i32
    %c0_i32_1 = arith.constant 0 : i32
    %c0_i32_2 = arith.constant 0 : i32
    return %c0_i32, %c0_i32_0, %c0_i32_1 : i32, i32, i32
  }
  func.func @transform_24(%arg0: i32) -> (i32, i32, i32) {
    %c0_i32 = arith.constant 0 : i32
    %c0_i32_0 = arith.constant 0 : i32
    %c0_i32_1 = arith.constant 0 : i32
    %c0_i32_2 = arith.constant 0 : i32
    return %c0_i32, %c0_i32_0, %c0_i32_1 : i32, i32, i32
  }
  func.func @transform_25(%arg0: i32) -> (i32, i32, i32) {
    %c0_i32 = arith.constant 0 : i32
    %c0_i32_0 = arith.constant 0 : i32
    %c0_i32_1 = arith.constant 0 : i32
    %c0_i32_2 = arith.constant 0 : i32
    return %c0_i32, %c0_i32_0, %c0_i32_1 : i32, i32, i32
  }
  func.func @transform_26(%arg0: i32) -> (i32, i32) {
    %c0_i32 = arith.constant 0 : i32
    %c0_i32_0 = arith.constant 0 : i32
    %c0_i32_1 = arith.constant 0 : i32
    return %c0_i32, %c0_i32_0 : i32, i32
  }
  func.func @transform_27(%arg0: i32) -> (i32, i32, i32) {
    %c0_i32 = arith.constant 0 : i32
    %c0_i32_0 = arith.constant 0 : i32
    %c0_i32_1 = arith.constant 0 : i32
    return %arg0, %c0_i32, %c0_i32_0 : i32, i32, i32
  }
}

</mosaic_0001>

<bundles_post_ra>
// kernel: transformer_forward.1
= control target key start
LH: loop header
LB: loop body
LE: loop exit
PB: predicated region body
PF: predicated region fallthrough
CT: control target
= control target key end

     0   :  { %s13274_s0 = inlined_call_operand.vmem [shape: s32[2,8,1], index: 0, kind: input, shape index: {}]   ;;  %s13275_s1 = inlined_call_operand.vmem [shape: s32[2,8,1], index: 1, kind: input, shape index: {}]   ;;  %s13276_s2 = inlined_call_operand.vmem [shape: f32[8,32], index: 2, kind: input, shape index: {}, may-alias: {2,3}]   ;;  %s13277_s3 = inlined_call_operand.vmem [shape: f32[8,32], index: 3, kind: input, shape index: {}, may-alias: {2,3}]   ;;  %s13278_s4 = inlined_call_operand.vmem [shape: f32[64,32], index: 4, kind: input, shape index: {}]   ;;  %s13279_s5 = inlined_call_operand.vmem [shape: f32[64,32], index: 5, kind: input, shape index: {}]   ;;  %s13280_s6 = inlined_call_operand.vmem [shape: f32[2,32,32], index: 6, kind: input, shape index: {}]   ;;  %s13281_s7 = inlined_call_operand.vmem [shape: f32[2,32,32], index: 7, kind: input, shape index: {}]   ;;  %s13282_s8 = inlined_call_operand.vmem [shape: f32[2,32,32], index: 8, kind: input, shape index: {}]   ;;  %s13283_s9 = inlined_call_operand.vmem [shape: f32[2,32,32], index: 9, kind: input, shape index: {}]   ;;  %s13284_s10 = inlined_call_operand.vmem [shape: f32[2,32,64], index: 10, kind: input, shape index: {}]   ;;  %s13285_s11 = inlined_call_operand.vmem [shape: f32[2,64,32], index: 11, kind: input, shape index: {}]   ;;  %s13286_s12 = inlined_call_operand.hbm [shape: f32[4,1,32], index: 12, kind: input, shape index: {}]   ;;  %s13287_s13 = inlined_call_operand.hbm [shape: f32[4,1,32], index: 13, kind: input, shape index: {}]   ;;  %s13288_s14 = inlined_call_operand.vmem [shape: f32[2,32,32], index: 14, kind: input, shape index: {}]   ;;  %s13289_s15 = inlined_call_operand.vmem [shape: f32[2,32,32], index: 15, kind: input, shape index: {}]   ;;  %s13290_s16 = inlined_call_operand.vmem [shape: f32[2,32,32], index: 16, kind: input, shape index: {}]   ;;  %s13291_s17 = inlined_call_operand.hbm [shape: f32[2,32,32], index: 17, kind: input, shape index: {}]   ;;  %s13292_s18 = inlined_call_operand.hbm [shape: f32[2,32,32], index: 18, kind: input, shape index: {}]   ;;  %s13293_s19 = inlined_call_operand.hbm [shape: f32[2,32,32], index: 19, kind: input, shape index: {}]   ;;  %s13294_s20 = inlined_call_operand.hbm [shape: f32[2,32,32], index: 20, kind: input, shape index: {}]   ;;  %s13295_s21 = inlined_call_operand.hbm [shape: f32[2,32,32], index: 21, kind: input, shape index: {}]   ;;  %s13296_s22 = inlined_call_operand.hbm [shape: f32[2,32,64], index: 22, kind: input, shape index: {}]   ;;  %s13297_s23 = inlined_call_operand.vmem [shape: f32[2,64,32], index: 23, kind: input, shape index: {}]   ;;  %s13298_s24 = inlined_call_operand.hbm [shape: f32[6,1,32], index: 24, kind: input, shape index: {}]   ;;  %s13299_s25 = inlined_call_operand.hbm [shape: f32[6,1,32], index: 25, kind: input, shape index: {}]   ;;  %s13300_s26 = inlined_call_operand.hbm [shape: f32[32,64], index: 26, kind: input, shape index: {}]   ;;  %s13301_s27 = inlined_call_operand.hbm [shape: f32[2,8,64], index: 27, kind: output, shape index: {}]  }
   0x1   :  { %13345 = sst [smem:[#allocation36_spill]] %s13274_s0 }
   0x2   :  { %13346 = sst [smem:[#allocation37_spill]] %s13275_s1 }
   0x3   :  { %13347 = sst [smem:[#allocation38_spill]] %s13276_s2 }
   0x4   :  { %13348 = sst [smem:[#allocation39_spill]] %s13277_s3 }
   0x5   :  { %13349 = sst [smem:[#allocation40_spill]] %s13278_s4 }
   0x6   :  { %13350 = sst [smem:[#allocation41_spill]] %s13279_s5 }
   0x7   :  { %13351 = sst [smem:[#allocation42_spill]] %s13280_s6 }
   0x8   :  { %13352 = sst [smem:[#allocation43_spill]] %s13281_s7 }
   0x9   :  { %13353 = sst [smem:[#allocation44_spill]] %s13282_s8 }
   0xa   :  { %13354 = sst [smem:[#allocation45_spill]] %s13283_s9 }
   0xb   :  { %13355 = sst [smem:[#allocation46_spill]] %s13284_s10 }
   0xc   :  { %13356 = sst [smem:[#allocation47_spill]] %s13285_s11 }
   0xd   :  { %13357 = sst [smem:[#allocation48_spill]] %s13286_s12 }
   0xe   :  { %13358 = sst [smem:[#allocation49_spill]] %s13287_s13 }
   0xf   :  { %13359 = sst [smem:[#allocation50_spill]] %s13288_s14 }
  0x10   :  { %13360 = sst [smem:[#allocation51_spill]] %s13290_s16 }
  0x11   :  { %13361 = sst [smem:[#allocation52_spill]] %s13297_s23 }
  0x12   :  { %13362 = sst [smem:[#allocation53_spill]] %s13301_s27 }
  0x13   :  { %32 = vsyncpa [#allocation3], 0 }
  0x14   :  { %33 = vsyncpa [#allocation6], 0 }
  0x15   :  { %34 = vsyncpa [#allocation9], 0 }
  0x16   :  { %35 = vsyncpa [#allocation12], 0 }
  0x17   :  { %36 = vsyncpa [#allocation15], 0 }
  0x18   :  { %37 = vsyncpa [#allocation18], 0 }
  0x19   :  { %38 = vsyncpa [#allocation4], 0 }
  0x1a   :  { %40 = vsyncpa [#allocation4 + $0x1], 0  ;;  %s11818_s7 = smov 0   ;;  %s11820_s4 = smov 0  }
  0x1b   :  { %s11822_s8 = smov 0   ;;  %s11824_s30 = smov 0  }
  0x1c LB: > { %13363 = sst [smem:[#allocation28_spill]] %s11640_s7  ;;  %s11839_s9 = sadd.s32 4294967295, %s11652_s30   ;;  %s11652_s30 = sphi %s11824_s30, %s13427_s30   ;;  %s11648_s8 = sphi %s11822_s8, %s13430_s8   ;;  %s11644_s4 = sphi %s11820_s4, %s13429_s4   ;;  %s11640_s7 = sphi %s11818_s7, %s13428_s7  }
  0x1d   : > { %13364 = sst [smem:[#allocation29_spill]] %s11644_s4  ;;  %s9500_s5 = sadd.s32 4294967294, %s11652_s30  }
  0x1e   : > { %13365 = sst [smem:[#allocation30_spill]] %s11648_s8  ;;  %s11843_s28 = sadd.s32 1, %s11652_s30  }
  0x1f   : > { %13366 = sst [smem:[#allocation31_spill]] %s11652_s30  ;;  %s630_s0 = sadd.s32 1, %s11648_s8 }
  0x20   : > { %13367 = sst [smem:[#allocation32_spill]] %s11843_s28  ;;  %s627_s10 = ssub.s32 %s11652_s30, %s11843_s28 }
  0x21   : > { %p640_p0 = scmp.ne.s32.totalorder %s11648_s8, %s11644_s4  ;;  %p628_p1 = scmp.eq.s32.totalorder %s627_s10, 0 }
  0x22   : > { %p641_p2 = scmp.eq.s32.totalorder %s11839_s9, 1  ;;  %p646_p3 = scmp.ne.s32.totalorder %s11644_s4, %s11640_s7 }
  0x23   : > { %p647_p4 = scmp.eq.s32.totalorder %s9500_s5, 1  ;;  %p9501_p7 = scmp.ge.s32.totalorder %s11652_s30, 1 }
  0x24   : > { %s11854_s29 = scalar_select %p628_p1, %s11648_s8, %s630_s0  }
  0x25   : > { %p11856_p5 = por %p641_p2, %p640_p0  ;;  %p11860_p6 = por %p647_p4, %p646_p3 }
  0x26   : > { %13368 = sst [smem:[#allocation33_spill]] %s11854_s29  ;;  %p654_p8 = scmp.lt.s32.totalorder %s11652_s30, 3 }
  0x27   : > { %s13369_s1 = scalar_select %p11856_p5, 1, 0 }
  0x28   : > { %s13371_s6 = scalar_select %p11860_p6, 1, 0 }
  0x29   : > { %13370 = sst [smem:[#allocation34_spill]] %s13369_s1  ;;  %p13317_p9 = scmp.eq.s32.totalorder %s11839_s9, 0 }
  0x2a   : > { %13372 = sst [smem:[#allocation35_spill]] %s13371_s6  ;;  %p11867_p10 = pnand %p9501_p7, %p654_p8 }
  0x2b   : > { %s11654_s2 = smov [#allocation5]   ;;  %s11655_s0 = smov [#allocation8]  }
  0x2c   : > { %s13373_s11 = scalar_select %p11867_p10, 1, 0 }
  0x2d   : > { %p11024_p11 = pneg %p11867_p10  ;;  %s709_s3 = sshll.u32 %s11654_s2, 4  ;;  %s710_s3 = int_to_ptr.vmem [resolvable:$true] %s709_s3 }
  0x2e   : > { %s744_s10 = sshll.u32 %s11655_s0, 4  ;;  %s13375_s13 = sld [smem:[#allocation49_spill]]  ;;  %s745_s10 = int_to_ptr.vmem [resolvable:$true] %s744_s10 }
  0x2f   : > { %p11875_p12 = pnand %p13317_p9, %p11024_p11 }
  0x31   : > { %p11887_p0 = pneg %p11875_p12 }
  0x34   : > { %s11258_s28 = scalar_lea.hbm %s13375_s13, 64 }
  0x35   : > { %p11259_p13 = scmp.ne.s32.totalorder %s13375_s13, %s11258_s28  ;;  %p11265_p3 = scmp.lt.u32.totalorder %s11258_s28, %s13375_s13 }
  0x37   : > { %p11261_p1 = pnand %p11887_p0, %p11259_p13 }
  0x39   : > { %p11262_p2 = pneg %p11261_p1 }
  0x3b   : > { %p11267_p4 = pnand %p11265_p3, %p11262_p2 }
  0x3d   : > { %11270 = shalt.err (!%p11267_p4)
}
  0x3e   : > { %s11271_s8 = scalar_lea.vmem %s710_s3, 64  ;;  %p11279_p9 = scmp.lt.s32.totalorder %s710_s3, %s710_s3 }
  0x3f   : > { %p11272_p7 = scmp.ne.s32.totalorder %s710_s3, %s11271_s8  ;;  %p11280_p6 = scmp.lt.s32.totalorder %s11271_s8, %s11271_s8 }
  0x41   : > { %p11274_p8 = pnand %p11272_p7, %p11887_p0  ;;  %p11281_p5 = por %p11280_p6, %p11279_p9 }
  0x43   : > { %p11275_p11 = pneg %p11274_p8 }
  0x45   : > { %p11282_p10 = pnand %p11281_p5, %p11275_p11 }
  0x47   : > { %11285 = shalt.err (!%p11282_p10)
}
  0x48   : > { %s13326_s7 = smov 16   ;;  %s13328_s29 = smov 1  }
  0x49   : > { %11030 = dma.hbm_to_vmem [thread:$0]  (!%p11875_p12), %s13375_s13, 64, %s710_s3, [#allocation6], %s13326_s7, %s13326_s7, %s13328_s29  }
  0x4a   : > { %s11658_s28 = smov [#allocation11]   ;;  %s11286_s1 = scalar_lea.hbm %s13292_s18, 1024 }
  0x4b   : > { %s770_s6 = sshll.u32 %s11658_s28, 4  ;;  %p11287_p5 = scmp.ne.s32.totalorder %s13292_s18, %s11286_s1  ;;  %s771_s6 = int_to_ptr.vmem [resolvable:$true] %s770_s6 }
  0x4c   : > { %p11293_p10 = scmp.lt.u32.totalorder %s11286_s1, %s13292_s18 }
  0x4d   : > { %p11289_p6 = pnand %p11287_p5, %p11887_p0 }
  0x4f   : > { %p11290_p9 = pneg %p11289_p6 }
  0x51   : > { %p11295_p13 = pnand %p11293_p10, %p11290_p9 }
  0x53   : > { %11298 = shalt.err (!%p11295_p13)
}
  0x54   : > { %s11299_s3 = scalar_lea.vmem %s745_s10, 1024  ;;  %p11307_p4 = scmp.lt.s32.totalorder %s745_s10, %s745_s10 }
  0x55   : > { %p11300_p1 = scmp.ne.s32.totalorder %s745_s10, %s11299_s3  ;;  %p11308_p7 = scmp.lt.s32.totalorder %s11299_s3, %s11299_s3 }
  0x57   : > { %p11302_p2 = pnand %p11300_p1, %p11887_p0  ;;  %p11309_p8 = por %p11308_p7, %p11307_p4 }
  0x59   : > { %p11303_p3 = pneg %p11302_p2 }
  0x5b   : > { %p11310_p11 = pnand %p11309_p8, %p11303_p3 }
  0x5d   : > { %11313 = shalt.err (!%p11310_p11)
}
  0x5e   : > { %s13330_s23 = smov 128   ;;  %s13332_s4 = smov 8  }
  0x5f   : > { %11036 = dma.hbm_to_vmem [thread:$0]  (!%p11875_p12), %s13292_s18, 1024, %s745_s10, [#allocation9], %s13330_s23, %s13330_s23, %s13332_s4  }
  0x60   : > { %s11314_s30 = scalar_lea.hbm %s13294_s20, 1024 }
  0x61   : > { %p11315_p5 = scmp.ne.s32.totalorder %s13294_s20, %s11314_s30  ;;  %p11321_p10 = scmp.lt.u32.totalorder %s11314_s30, %s13294_s20 }
  0x63   : > { %p11317_p6 = pnand %p11315_p5, %p11887_p0 }
  0x65   : > { %p11318_p9 = pneg %p11317_p6 }
  0x67   : > { %p11323_p13 = pnand %p11321_p10, %p11318_p9 }
  0x69   : > { %11326 = shalt.err (!%p11323_p13)
}
  0x6a   : > { %s11327_s14 = scalar_lea.vmem %s771_s6, 1024  ;;  %p11335_p4 = scmp.lt.s32.totalorder %s771_s6, %s771_s6 }
  0x6b   : > { %p11328_p1 = scmp.ne.s32.totalorder %s771_s6, %s11327_s14  ;;  %p11336_p7 = scmp.lt.s32.totalorder %s11327_s14, %s11327_s14 }
  0x6d   : > { %p11330_p2 = pnand %p11328_p1, %p11887_p0  ;;  %p11337_p8 = por %p11336_p7, %p11335_p4 }
  0x6f   : > { %p11331_p3 = pneg %p11330_p2 }
  0x71   : > { %p11338_p11 = pnand %p11337_p8, %p11331_p3 }
  0x73   : > { %11341 = shalt.err (!%p11338_p11)
}
  0x74   : > { %11042 = dma.hbm_to_vmem [thread:$0]  (!%p11875_p12), %s13294_s20, 1024, %s771_s6, [#allocation12], %s13330_s23, %s13330_s23, %s13332_s4  }
  0x75   : > { %s11661_s1 = smov [#allocation14]   ;;  %s11662_s30 = smov [#allocation17]  }
  0x76   : > { %s796_s27 = sshll.u32 %s11661_s1, 4  ;;  %s825_s28 = sshll.u32 %s11662_s30, 4  ;;  %s797_s27 = int_to_ptr.vmem [resolvable:$true] %s796_s27  ;;  %s826_s28 = int_to_ptr.vmem [resolvable:$true] %s825_s28 }
  0x77   : > { %s11342_s3 = scalar_lea.hbm %s13296_s22, 1024 }
  0x78   : > { %p11343_p5 = scmp.ne.s32.totalorder %s13296_s22, %s11342_s3  ;;  %p11349_p10 = scmp.lt.u32.totalorder %s11342_s3, %s13296_s22 }
  0x7a   : > { %p11345_p6 = pnand %p11343_p5, %p11887_p0 }
  0x7c   : > { %p11346_p9 = pneg %p11345_p6 }
  0x7e   : > { %p11351_p13 = pnand %p11349_p10, %p11346_p9 }
  0x80   : > { %11354 = shalt.err (!%p11351_p13)
}
  0x81   : > { %s11355_s6 = scalar_lea.vmem %s797_s27, 1024  ;;  %p11363_p4 = scmp.lt.s32.totalorder %s797_s27, %s797_s27 }
  0x82   : > { %p11356_p1 = scmp.ne.s32.totalorder %s797_s27, %s11355_s6  ;;  %p11364_p7 = scmp.lt.s32.totalorder %s11355_s6, %s11355_s6 }
  0x84   : > { %p11358_p2 = pnand %p11356_p1, %p11887_p0  ;;  %p11365_p8 = por %p11364_p7, %p11363_p4 }
  0x86   : > { %p11359_p3 = pneg %p11358_p2 }
  0x88   : > { %p11366_p11 = pnand %p11365_p8, %p11359_p3 }
  0x8a   : > { %11369 = shalt.err (!%p11366_p11)
}
  0x8b   : > { %11048 = dma.hbm_to_vmem [thread:$0]  (!%p11875_p12), %s13296_s22, 1024, %s797_s27, [#allocation15], %s13330_s23, %s13330_s23, %s13332_s4  }
  0x8c   : > { %s11370_s30 = scalar_lea.hbm %s13299_s25, 96 }
  0x8d   : > { %p11371_p5 = scmp.ne.s32.totalorder %s13299_s25, %s11370_s30  ;;  %p11377_p10 = scmp.lt.u32.totalorder %s11370_s30, %s13299_s25 }
  0x8f   : > { %p11373_p6 = pnand %p11371_p5, %p11887_p0 }
  0x91   : > { %p11374_p9 = pneg %p11373_p6 }
  0x93   : > { %p11379_p13 = pnand %p11377_p10, %p11374_p9 }
  0x95   : > { %11382 = shalt.err (!%p11379_p13)
}
  0x96   : > { %s11383_s10 = scalar_lea.vmem %s826_s28, 96  ;;  %p11391_p4 = scmp.lt.s32.totalorder %s826_s28, %s826_s28 }
  0x97   : > { %p11384_p1 = scmp.ne.s32.totalorder %s826_s28, %s11383_s10  ;;  %p11392_p7 = scmp.lt.s32.totalorder %s11383_s10, %s11383_s10 }
  0x99   : > { %p11386_p2 = pnand %p11384_p1, %p11887_p0  ;;  %p11393_p8 = por %p11392_p7, %p11391_p4 }
  0x9b   : > { %p11387_p3 = pneg %p11386_p2 }
  0x9d   : > { %p11394_p11 = pnand %p11393_p8, %p11387_p3 }
  0x9f   : > { %11397 = shalt.err (!%p11394_p11)
}
  0xa0   : > { %s13377_s27 = smov 1   ;;  %s13378_s6 = smov 16  }
  0xa1   : > { %11054 = dma.hbm_to_vmem [thread:$0]  (!%p11875_p12), %s13299_s25, 96, %s826_s28, [#allocation18], %s13378_s6, %s13378_s6, %s13377_s27  }
  0xa2   : > { %s11663_s16 = smov [#allocation2]   ;;  %s11664_s30 = smov [#allocation7]  }
  0xa3   : > { %s696_s1 = sshll.u32 %s11663_s16, 4  ;;  %s731_s0 = sshll.u32 %s11664_s30, 4  ;;  %s697_s1 = int_to_ptr.vmem [resolvable:$true] %s696_s1  ;;  %s732_s0 = int_to_ptr.vmem [resolvable:$true] %s731_s0 }
  0xa4   : > { %s13379_s12 = sld [smem:[#allocation48_spill]] }
  0xaa   : > { %s11398_s14 = scalar_lea.hbm %s13379_s12, 64 }
  0xab   : > { %p11399_p5 = scmp.ne.s32.totalorder %s13379_s12, %s11398_s14  ;;  %p11405_p10 = scmp.lt.u32.totalorder %s11398_s14, %s13379_s12 }
  0xad   : > { %p11401_p6 = pnand %p11399_p5, %p11887_p0 }
  0xaf   : > { %p11402_p9 = pneg %p11401_p6 }
  0xb1   : > { %p11407_p13 = pnand %p11405_p10, %p11402_p9 }
  0xb3   : > { %11410 = shalt.err (!%p11407_p13)
}
  0xb4   : > { %s11411_s28 = scalar_lea.vmem %s697_s1, 64  ;;  %p11419_p4 = scmp.lt.s32.totalorder %s697_s1, %s697_s1 }
  0xb5   : > { %p11412_p1 = scmp.ne.s32.totalorder %s697_s1, %s11411_s28  ;;  %p11420_p7 = scmp.lt.s32.totalorder %s11411_s28, %s11411_s28 }
  0xb7   : > { %p11414_p2 = pnand %p11412_p1, %p11887_p0  ;;  %p11421_p8 = por %p11420_p7, %p11419_p4 }
  0xb9   : > { %p11415_p3 = pneg %p11414_p2 }
  0xbb   : > { %p11422_p11 = pnand %p11421_p8, %p11415_p3 }
  0xbd   : > { %11425 = shalt.err (!%p11422_p11)
}
  0xbe   : > { %11027 = dma.hbm_to_vmem [thread:$0]  (!%p11875_p12), %s13379_s12, 64, %s697_s1, [#allocation3], %s13378_s6, %s13378_s6, %s13377_s27  }
  0xbf   : > { %s11426_s30 = scalar_lea.hbm %s13291_s17, 1024 }
  0xc0   : > { %p11427_p5 = scmp.ne.s32.totalorder %s13291_s17, %s11426_s30  ;;  %p11433_p10 = scmp.lt.u32.totalorder %s11426_s30, %s13291_s17 }
  0xc2   : > { %p11429_p6 = pnand %p11427_p5, %p11887_p0 }
  0xc4   : > { %p11430_p9 = pneg %p11429_p6 }
  0xc6   : > { %p11435_p13 = pnand %p11433_p10, %p11430_p9 }
  0xc8   : > { %11438 = shalt.err (!%p11435_p13)
}
  0xc9   : > { %s11439_s7 = scalar_lea.vmem %s732_s0, 1024  ;;  %p11447_p4 = scmp.lt.s32.totalorder %s732_s0, %s732_s0 }
  0xca   : > { %p11440_p1 = scmp.ne.s32.totalorder %s732_s0, %s11439_s7  ;;  %p11448_p7 = scmp.lt.s32.totalorder %s11439_s7, %s11439_s7 }
  0xcc   : > { %p11442_p2 = pnand %p11440_p1, %p11887_p0  ;;  %p11449_p8 = por %p11448_p7, %p11447_p4 }
  0xce   : > { %p11443_p3 = pneg %p11442_p2 }
  0xd0   : > { %p11450_p11 = pnand %p11449_p8, %p11443_p3 }
  0xd2   : > { %11453 = shalt.err (!%p11450_p11)
}
  0xd3   : > { %s13380_s1 = smov 8   ;;  %s13381_s28 = smov 128  }
  0xd4   : > { %11033 = dma.hbm_to_vmem [thread:$0]  (!%p11875_p12), %s13291_s17, 1024, %s732_s0, [#allocation6], %s13381_s28, %s13381_s28, %s13380_s1  }
  0xd5   : > { %s11665_s29 = smov [#allocation10]   ;;  %s11666_s30 = smov [#allocation13]  }
  0xd6   : > { %s757_s16 = sshll.u32 %s11665_s29, 4  ;;  %s783_s8 = sshll.u32 %s11666_s30, 4  ;;  %s758_s16 = int_to_ptr.vmem [resolvable:$true] %s757_s16  ;;  %s784_s8 = int_to_ptr.vmem [resolvable:$true] %s783_s8 }
  0xd7   : > { %s11454_s10 = scalar_lea.hbm %s13293_s19, 1024 }
  0xd8   : > { %p11455_p5 = scmp.ne.s32.totalorder %s13293_s19, %s11454_s10  ;;  %p11461_p10 = scmp.lt.u32.totalorder %s11454_s10, %s13293_s19 }
  0xda   : > { %p11457_p6 = pnand %p11455_p5, %p11887_p0 }
  0xdc   : > { %p11458_p9 = pneg %p11457_p6 }
  0xde   : > { %p11463_p13 = pnand %p11461_p10, %p11458_p9 }
  0xe0   : > { %11466 = shalt.err (!%p11463_p13)
}
  0xe1   : > { %s11467_s0 = scalar_lea.vmem %s758_s16, 1024  ;;  %p11475_p4 = scmp.lt.s32.totalorder %s758_s16, %s758_s16 }
  0xe2   : > { %p11468_p1 = scmp.ne.s32.totalorder %s758_s16, %s11467_s0  ;;  %p11476_p7 = scmp.lt.s32.totalorder %s11467_s0, %s11467_s0 }
  0xe4   : > { %p11470_p2 = pnand %p11468_p1, %p11887_p0  ;;  %p11477_p8 = por %p11476_p7, %p11475_p4 }
  0xe6   : > { %p11471_p3 = pneg %p11470_p2 }
  0xe8   : > { %p11478_p11 = pnand %p11477_p8, %p11471_p3 }
  0xea   : > { %11481 = shalt.err (!%p11478_p11)
}
  0xeb   : > { %11039 = dma.hbm_to_vmem [thread:$0]  (!%p11875_p12), %s13293_s19, 1024, %s758_s16, [#allocation9], %s13381_s28, %s13381_s28, %s13380_s1  }
  0xec   : > { %s11482_s30 = scalar_lea.hbm %s13295_s21, 1024 }
  0xed   : > { %p11483_p5 = scmp.ne.s32.totalorder %s13295_s21, %s11482_s30  ;;  %p11489_p10 = scmp.lt.u32.totalorder %s11482_s30, %s13295_s21 }
  0xef   : > { %p11485_p6 = pnand %p11483_p5, %p11887_p0 }
  0xf1   : > { %p11486_p9 = pneg %p11485_p6 }
  0xf3   : > { %p11491_p13 = pnand %p11489_p10, %p11486_p9 }
  0xf5   : > { %11494 = shalt.err (!%p11491_p13)
}
  0xf6   : > { %s11495_s23 = scalar_lea.vmem %s784_s8, 1024  ;;  %p11503_p4 = scmp.lt.s32.totalorder %s784_s8, %s784_s8 }
  0xf7   : > { %p11496_p1 = scmp.ne.s32.totalorder %s784_s8, %s11495_s23  ;;  %p11504_p7 = scmp.lt.s32.totalorder %s11495_s23, %s11495_s23 }
  0xf9   : > { %p11498_p2 = pnand %p11496_p1, %p11887_p0  ;;  %p11505_p8 = por %p11504_p7, %p11503_p4 }
  0xfb   : > { %p11499_p3 = pneg %p11498_p2 }
  0xfd   : > { %p11506_p11 = pnand %p11505_p8, %p11499_p3 }
  0xff   : > { %11509 = shalt.err (!%p11506_p11)
}
 0x100   : > { %11045 = dma.hbm_to_vmem [thread:$0]  (!%p11875_p12), %s13295_s21, 1024, %s784_s8, [#allocation12], %s13381_s28, %s13381_s28, %s13380_s1  }
 0x101   : > { %s11667_s12 = smov [#allocation16]   ;;  %s11668_s4 = smov [#allocation19]  }
 0x102   : > { %s812_s13 = sshll.u32 %s11667_s12, 4  ;;  %s838_s29 = sshll.u32 %s11668_s4, 4  ;;  %s813_s13 = int_to_ptr.vmem [resolvable:$true] %s812_s13  ;;  %s839_s29 = int_to_ptr.vmem [resolvable:$true] %s838_s29 }
 0x103   : > { %s11510_s14 = scalar_lea.hbm %s13298_s24, 96 }
 0x104   : > { %p11511_p5 = scmp.ne.s32.totalorder %s13298_s24, %s11510_s14  ;;  %p11517_p10 = scmp.lt.u32.totalorder %s11510_s14, %s13298_s24 }
 0x106   : > { %p11513_p6 = pnand %p11511_p5, %p11887_p0 }
 0x108   : > { %p11514_p9 = pneg %p11513_p6 }
 0x10a   : > { %p11519_p13 = pnand %p11517_p10, %p11514_p9 }
 0x10c   : > { %11522 = shalt.err (!%p11519_p13)
}
 0x10d   : > { %s11523_s8 = scalar_lea.vmem %s813_s13, 96  ;;  %p11531_p4 = scmp.lt.s32.totalorder %s813_s13, %s813_s13 }
 0x10e   : > { %p11524_p1 = scmp.ne.s32.totalorder %s813_s13, %s11523_s8  ;;  %p11532_p7 = scmp.lt.s32.totalorder %s11523_s8, %s11523_s8 }
 0x110   : > { %p11526_p2 = pnand %p11524_p1, %p11887_p0  ;;  %p11533_p8 = por %p11532_p7, %p11531_p4 }
 0x112   : > { %p11527_p3 = pneg %p11526_p2 }
 0x114   : > { %p11534_p11 = pnand %p11533_p8, %p11527_p3 }
 0x116   : > { %11537 = shalt.err (!%p11534_p11)
}
 0x117   : > { %11051 = dma.hbm_to_vmem [thread:$0]  (!%p11875_p12), %s13298_s24, 96, %s813_s13, [#allocation15], %s13378_s6, %s13378_s6, %s13377_s27  }
 0x118   : > { %s11538_s3 = scalar_lea.hbm %s13300_s26, 512 }
 0x119   : > { %p11539_p5 = scmp.ne.s32.totalorder %s13300_s26, %s11538_s3  ;;  %p11545_p10 = scmp.lt.u32.totalorder %s11538_s3, %s13300_s26 }
 0x11b   : > { %p11541_p6 = pnand %p11539_p5, %p11887_p0 }
 0x11d   : > { %p11542_p9 = pneg %p11541_p6 }
 0x11f   : > { %p11547_p13 = pnand %p11545_p10, %p11542_p9 }
 0x121   : > { %11550 = shalt.err (!%p11547_p13)
}
 0x122   : > { %s11551_s16 = scalar_lea.vmem %s839_s29, 512  ;;  %p11559_p4 = scmp.lt.s32.totalorder %s839_s29, %s839_s29 }
 0x123   : > { %p11552_p1 = scmp.ne.s32.totalorder %s839_s29, %s11551_s16  ;;  %p11560_p7 = scmp.lt.s32.totalorder %s11551_s16, %s11551_s16 }
 0x125   : > { %p11554_p2 = pnand %p11552_p1, %p11887_p0  ;;  %p11561_p8 = por %p11560_p7, %p11559_p4 }
 0x127   : > { %p11555_p3 = pneg %p11554_p2 }
 0x129   : > { %p11562_p11 = pnand %p11561_p8, %p11555_p3 }
 0x12b   : > { %11565 = shalt.err (!%p11562_p11)
}
 0x12c   : > { %11057 = dma.hbm_to_vmem [thread:$0]  (!%p11875_p12), %s13300_s26, 512, %s839_s29, [#allocation18], %s13381_s28, %s13381_s28, %s13380_s1  }
 0x12d   : > { %p13382_p5 = scmp.ne.s32.totalorder %s13373_s11, 0 }
 0x12e   : > { %p13383_p0 = scmp.eq.s32.totalorder (!%p13382_p5), %s11839_s9, 0 }
 0x12f   : > { %868 = sbr.rel (%p13382_p5) target bundleno = 17822 (0x459e), region = 128 }
 0x136   : > { %11611 = dma.done.wait (%p13383_p0), [#allocation3], 64   ;;  %p13384_p6 = pmov %p13383_p0 }
 0x137   : > { %p13385_p9 = pmov %p13383_p0 }
 0x138   : > { %11613 = vsyncadd (%p13384_p6), [#allocation3], 4294967232 }
 0x139   : > { %11615 = dma.done.wait (%p13385_p9), [#allocation6], 1088   ;;  %p13386_p10 = pmov %p13383_p0 }
 0x13a   : > { %p13387_p13 = pmov %p13383_p0 }
 0x13b   : > { %11617 = vsyncadd (%p13386_p10), [#allocation6], 4294966208 }
 0x13c   : > { %11619 = dma.done.wait (%p13387_p13), [#allocation9], 2048   ;;  %p13388_p12 = pmov %p13383_p0 }
 0x13d   : > { %p13389_p1 = pmov %p13383_p0 }
 0x13e   : > { %11621 = vsyncadd (%p13388_p12), [#allocation9], 4294965248 }
 0x13f   : > { %11623 = dma.done.wait (%p13389_p1), [#allocation12], 2048   ;;  %p13390_p2 = pmov %p13383_p0 }
 0x140   : > { %p13391_p3 = pmov %p13383_p0 }
 0x141   : > { %11625 = vsyncadd (%p13390_p2), [#allocation12], 4294965248 }
 0x142   : > { %11627 = dma.done.wait (%p13391_p3), [#allocation15], 1120   ;;  %p13392_p4 = pmov %p13383_p0 }
 0x143   : > { %p13393_p7 = pmov %p13383_p0 }
 0x144   : > { %11629 = vsyncadd (%p13392_p4), [#allocation15], 4294966176 }
 0x145   : > { %11631 = dma.done.wait (%p13393_p7), [#allocation18], 608   ;;  %p13394_p8 = pmov %p13383_p0 }
 0x146   : > { %p983_p11 = scmp.lt.s32.totalorder %s11839_s9, 1  ;;  %v11669_v0 = vmov 0   ;;  %v11670_v1 = vmov 0.0|0.0   ;;  %s13395_s28 = sld [smem:[#allocation36_spill]]  ;;  %vm11671_vm0 = vmmov 0   ;;  %v11672_v8 = vmov 0.0  }
 0x147   : > { %11633 = vsyncadd (%p13394_p8), [#allocation18], 4294966688  ;;  %11140 = vset.pattern.permute.xlu0 %v11669_v0  ;;  %10768 = vmatprep.subr.bf16.mxu0 %v11670_v1  ;;  %s13396_s0 = sld [smem:[#allocation40_spill]]  ;;  %s13397_s6 = sld [smem:[#allocation42_spill]]  ;;  %v992_v22 = vlaneseq  ;;  %vm1009_vm1 = vcmask 523264   ;;  %vm1099_vm3 = vcmask 261120  }
 0x148   : > { %s12145_s11 = scalar_select %p983_p11, %s11839_s9, 1  ;;  %10780 = vmatprep.subr.bf16.mxu1 %v11670_v1  ;;  %11141 = vset.pattern.permute.xlu1 %v11669_v0  ;;  %vm1314_vm4 = vcmask 64512  }
 0x149   : > { %10057 = vmatprep.mubr.msk.f32.mxu0 %vm11671_vm0, %v11672_v8  ;;  %10068 = vmatprep.mubr.msk.f32.mxu1 %vm11671_vm0, %v11672_v8  ;;  %v12201_v23 = vand.u32 127, %v992_v22  ;;  %s13398_s16 = sld [smem:[#allocation44_spill]]  ;;  %s13399_s4 = sld [smem:[#allocation43_spill]] }
 0x14a   : > { %s13334_s5 = sshll.u32 %s12145_s11, 3  ;;  %s13401_s23 = sld [smem:[#allocation38_spill]] }
 0x14b   : > { %s13337_s29 = smov 112   ;;  %s13335_s8 = smov 104  }
 0x14c   : > { %s986_s13 = scalar_lea.vmem %s13395_s28, %s13334_s5  ;;  %s13402_s30 = sld [smem:[#allocation45_spill]] }
 0x14d   : > { %v991_v2 = vld [vmem:[%s986_s13] sm:$0xff]  ;;  %v1001_v4 = vld [vmem:[%s13396_s0 + $0x8] sm:$0xff]  ;;  %v1002_v6 = vld [vmem:[%s13396_s0 + $0x10] sm:$0xff]  ;;  %s13339_s13 = smov 120   ;;  %s13408_s12 = smov 104  }
 0x14e   : > { %v1000_v3 = vld [vmem:[%s13396_s0] sm:$0xff]  ;;  %995 = vperm.xlu0 %11140, %v991_v2   ;;  %v1003_v7 = vld [vmem:[%s13396_s0 + $0x18] sm:$0xff]  ;;  %v1084_v12 = vld [vmem:[%s13397_s6 + $0x8] sm:$0xff]  ;;  %s13409_s28 = sshll.u32 %s12145_s11, 3  ;;  %s13411_s2 = sld [smem:[#allocation41_spill]] }
 0x14f   : > { %v10769_v5 = vpack.c.bf16 %v1001_v4, %v1000_v3  ;;  %v10772_v9 = vpack.c.bf16 %v1003_v7, %v1002_v6  ;;  %v1004_v10 = vld [vmem:[%s13396_s0 + $0x20] sm:$0xff]  ;;  %v1005_v13 = vld [vmem:[%s13396_s0 + $0x28] sm:$0xff]  ;;  %v1085_v15 = vld [vmem:[%s13397_s6 + $0x10] sm:$0xff]  ;;  %s13400_s3 = smov %s13399_s4  ;;  %s13412_s11 = sld [smem:[#allocation50_spill]] }
 0x150   : > { %v1083_v11 = vld [vmem:[%s13397_s6] sm:$0xff]  ;;  %v1086_v16 = vld [vmem:[%s13397_s6 + $0x18] sm:$0xff]  ;;  %v10775_v18 = vpack.c.bf16 %v1005_v13, %v1004_v10  ;;  %v1006_v19 = vld [vmem:[%s13396_s0 + $0x30] sm:$0xff]  ;;  %s13419_s1 = sld [smem:[#allocation29_spill]] }
 0x151   : > { %10770 = vmatpush3.bf16.msra.mxu0 %v10769_v5  ;;  %v10781_v14 = vpack.c.bf16 %v1084_v12, %v1083_v11  ;;  %v10784_v17 = vpack.c.bf16 %v1086_v16, %v1085_v15  ;;  %v1007_v20 = vld [vmem:[%s13396_s0 + $0x38] sm:$0xff]  ;;  %v1091_v24 = vld [vmem:[%s13398_s16] sm:$0xff]  ;;  %v1092_v25 = vld [vmem:[%s13398_s16 + $0x8] sm:$0xff]  ;;  %s13415_s0 = smov 120  }
 0x152   : > { %10771 = vmatprep.subr.bf16.mxu0 %v11670_v1  ;;  %v10778_v21 = vpack.c.bf16 %v1007_v20, %v1006_v19  ;;  %v10793_v27 = vpack.c.bf16 %v1092_v25, %v1091_v24  ;;  %v1093_v29 = vld [vmem:[%s13398_s16 + $0x10] sm:$0xff]  ;;  %v1094_v30 = vld [vmem:[%s13398_s16 + $0x18] sm:$0xff]  ;;  %v1087_v32 = vld [vmem:[%s13399_s4] sm:$0xff]  ;;  %s13403_s14 = smov %s13402_s30  ;;  %s13404_s4 = sld [smem:[#allocation46_spill]] }
 0x153   : > { %10782 = vmatpush3.bf16.msra.mxu1 %v10781_v14  ;;  %v10796_v31 = vpack.c.bf16 %v1094_v30, %v1093_v29  ;;  %v1088_v33 = vld [vmem:[%s13400_s3 + $0x8] sm:$0xff]  ;;  %v1008_v34 = vld [vmem:[%s13401_s23] sm:$0xff]  ;;  %v1089_v39 = vld [vmem:[%s13400_s3 + $0x10] sm:$0xff]  ;;  %s13414_s23 = sld [smem:[#allocation39_spill]] }
 0x154   : > { %10783 = vmatprep.subr.bf16.mxu1 %v11670_v1  ;;  %v10787_v36 = vpack.c.bf16 %v1088_v33, %v1087_v32  ;;  %v1090_v40 = vld [vmem:[%s13400_s3 + $0x18] sm:$0xff]  ;;  %v1096_v5 = vld [vmem:[%s13402_s30 + $0x8] sm:$0xff]  ;;  %v1095_v6 = vld [vmem:[%s13403_s14] sm:$0xff]  ;;  %s13410_s30 = sld [smem:[#allocation37_spill]] }
 0x155   : > { %10773 = vmatpush3.bf16.msra.mxu0 %v10772_v9  ;;  %v10790_v41 = vpack.c.bf16 %v1090_v40, %v1089_v39  ;;  %v1097_v39 = vld [vmem:[%s13403_s14 + $0x10] sm:$0xff] }
 0x156   : > { %10774 = vmatprep.subr.bf16.mxu0 %v11670_v1 }
 0x157   : > { %10785 = vmatpush3.bf16.msra.mxu1 %v10784_v17 }
 0x158   : > { %10786 = vmatprep.subr.bf16.mxu1 %v11670_v1  ;;  %s13405_s10 = smov %s13404_s4 }
 0x159   : > { %10776 = vmatpush3.bf16.msra.mxu0 %v10775_v18 }
 0x15a   : > { %10777 = vmatprep.subr.bf16.mxu0 %v11670_v1  ;;  %s990_s7 = scalar_lea.vmem %s13410_s30, %s13409_s28  ;;  %s13413_s28 = sld [smem:[#allocation51_spill]] }
 0x15d   : > { %10779 = vmatpush3.bf16.msra.mxu0 %v10778_v21 }
 0x15e   : > { %10792 = vmatprep.subr.bf16.mxu0 %v11670_v1 }
 0x1cd   : > { %v996_v26 = vpop.permute.xlu0 %995 }
 0x1ce   : > { %vm997_vm2 = vcmp.eq.s32.totalorder %v12201_v23, %v996_v26 }
 0x1cf   : > { %v9529_v28 = vsel %vm997_vm2, 1.0, %v11672_v8 }
 0x1d0   : > { %10058 = vmatmul.mubr.msk.f32.vlgmr.msra.gmra.mrb[0].mxu0 %vm1009_vm1, %v9529_v28 }
 0x1d1   : > { %10794 = vmatpush3.bf16.msra.mxu0 %v10793_v27  ;;  %10090 = vmatprep.mubr.msk.f32.mxu0 %vm11671_vm0, %v11672_v8 }
 0x1d2   : > { %10795 = vmatprep.subr.bf16.mxu0 %v11670_v1 }
 0x1d5   : > { %10797 = vmatpush3.bf16.msra.mxu0 %v10796_v31 }
 0x1d6   : > { %10103 = vmatprep.subr.mxu0 %v11672_v8 }
 0x2a3   : > { %v1079_v35 = vpop.f32.mrb[0].mxu0 }
 0x2a4   : > { %v12231_v37 = vadd.f32 %v1079_v35, %v1008_v34  ;;  %v10059_v38 = vpop.f32.mrb[1].mxu0 }
 0x2a6   : > { %10069 = vmatmul.mubr.msk.f32.vlgmr.msra.gmra.mrb[0].mxu1 %vm1099_vm3, %v12231_v37  ;;  %10091 = vmatmul.mubr.msk.f32.vlgmr.msra.gmra.mrb[2].mxu0 %vm1099_vm3, %v12231_v37 }
 0x2a7   : > { %10788 = vmatpush3.bf16.msra.mxu1 %v10787_v36  ;;  %10079 = vmatprep.mubr.msk.f32.mxu1 %vm11671_vm0, %v11672_v8 }
 0x2a8   : > { %10789 = vmatprep.subr.bf16.mxu1 %v11670_v1  ;;  %10105 = vmatprep.mubr.msk.f32.mxu0 %vm11671_vm0, %v11672_v8 }
 0x2ab   : > { %10791 = vmatpush3.bf16.msra.mxu1 %v10790_v41 }
 0x2ac   : > { %10093 = vmatprep.subr.mxu1 %v11672_v8 }
 0x2ae   : > { %10080 = vmatmul.mubr.msk.f32.vlgmr.msra.gmra.mrb[2].mxu1 %vm1099_vm3, %v12231_v37 }
 0x2af   : > { %10095 = vmatprep.mubr.msk.f32.mxu1 %vm11671_vm0, %v11672_v8 }
 0x379   : > { %v1169_v42 = vpop.f32.mrb[0].mxu1  ;;  %v12253_v43 = vpop.f32.mrb[2].mxu0 }
 0x37a   : > { %v1173_v44 = vmul.f32 0.35355338, %v1169_v42  ;;  %v10070_v45 = vpop.f32.mrb[1].mxu1  ;;  %v10092_v46 = vpop.f32.mrb[3].mxu0 }
 0x37c   : > { %1475 = vrot.lane.b32.xlu1 %v1173_v44, %s13339_s13 }
 0x381   : > { %v1240_v47 = vpop.f32.mrb[2].mxu1 }
 0x382   : > { %1477 = vrot.lane.b32.xlu0 %v1240_v47, %s13339_s13  ;;  %v10081_v48 = vpop.f32.mrb[3].mxu1  ;;  %10094 = vmatpush3.xpose.msk.msra.mxu1 %vm1314_vm4, %v1240_v47 }
 0x383   : > { %10098 = vmatprep.subr.mxu1 %v11672_v8 }
 0x385   : > { %10096 = vmatmul.mubr.msk.f32.vlgmr.msra.gmra.mrb[4].mxu1 %vm1314_vm4, %v1173_v44 }
 0x386   : > { %10099 = vmatpush3.msra.mxu1 %v12253_v43  ;;  %10100 = vmatprep.mubr.msk.f32.mxu1 %vm11671_vm0, %v11672_v8 }
 0x387   : > { %10108 = vmatprep.subr.mxu1 %v11672_v8 }
 0x3ee   : > { %v1476_v50 = vpop.permute.xlu1 %1475 }
 0x3f4   : > { %v1478_v49 = vpop.permute.xlu0 %1477 }
 0x3f5   : > { %10104 = vmatpush3.xpose.msk.msra.mxu0 %vm1314_vm4, %v1478_v49 }
 0x3f6   : > { %10113 = vmatprep.subr.mxu0 %v11672_v8 }
 0x3f8   : > { %10106 = vmatmul.mubr.msk.f32.vlgmr.msra.gmra.mrb[4].mxu0 %vm1314_vm4, %v1476_v50 }
 0x3f9   : > { %10115 = vmatprep.mubr.msk.f32.mxu0 %vm11671_vm0, %v11672_v8  ;;  %10114 = vmatpush3.msra.mxu0 %v1096_v5 }
 0x3fa   : > { %10123 = vmatprep.subr.mxu0 %v11672_v8 }
 0x458   : > { %v1387_v51 = vpop.f32.mrb[4].mxu1 }
 0x459   : > { %v10097_v52 = vpop.f32.mrb[5].mxu1  ;;  %v1391_v53 = vsel %vm1314_vm4, %v1387_v51, -inf }
 0x45a   : > { %1392 = vmax.xlane.f32.xlu1 %v1391_v53 }
 0x4cb   : > { %v1549_v54 = vpop.f32.mrb[4].mxu0 }
 0x4cc   : > { %v10107_v55 = vpop.f32.mrb[5].mxu0  ;;  %v1553_v56 = vsel %vm1314_vm4, %v1549_v54, -inf }
 0x4cd   : > { %1554 = vmax.xlane.f32.xlu0 %v1553_v56 }
 0x4e3   : > { %1563 = vrot.lane.b32.xlu0 %v12253_v43, %s13339_s13 }
 0x4e7   : > { %v1393_v57 = vpop.xlane.xlu1 %1392  ;;  %1787 = vrot.lane.b32.xlu0 %v1173_v44, %s13337_s29 }
 0x4e8   : > { %v1394_v58 = vsub.f32 %v1387_v51, %v1393_v57  ;;  %v1098_v57 = vld [vmem:[%s13403_s14 + $0x18] sm:$0xff] }
 0x4ea   : > { %v1395_v59 = vmul.f32 1.442695, %v1394_v58 }
 0x4ec   : > { %11142 = vpow2.f32 %v1395_v59 }
 0x4f6   : > { %v11143_v60 = vpop.eup %11142 }
 0x4f7   : > { %10101 = vmatmul.mubr.msk.f32.vlgmr.msra.gmra.mrb[6].mxu1 %vm1314_vm4, %v11143_v60  ;;  %v1397_v4 = vsel %vm1314_vm4, %v11143_v60, 0.0 }
 0x4f8   : > { %10110 = vmatprep.mubr.msk.f32.mxu1 %vm11671_vm0, %v11672_v8 }
 0x55a   : > { %v1555_v61 = vpop.xlane.xlu0 %1554 }
 0x55b   : > { %v1556_v62 = vsub.f32 %v1549_v54, %v1555_v61 }
 0x55d   : > { %v1557_v63 = vmul.f32 1.442695, %v1556_v62 }
 0x55e   : > { %v1564_v0 = vpop.permute.xlu0 %1563 }
 0x55f   : > { %11144 = vpow2.f32 %v1557_v63  ;;  %10109 = vmatpush3.msra.mxu1 %v1564_v0 }
 0x560   : > { %10118 = vmatprep.subr.mxu1 %v11672_v8 }
 0x562   : > { %v1788_v19 = vpop.permute.xlu0 %1787 }
 0x569   : > { %v11145_v2 = vpop.eup %11144 }
 0x56a   : > { %10111 = vmatmul.mubr.msk.f32.vlgmr.msra.gmra.mrb[8].mxu1 %vm1314_vm4, %v11145_v2  ;;  %v1559_v3 = vsel %vm1314_vm4, %v11145_v2, 0.0 }
 0x56b   : > { %1560 = vadd.xlane.f32.xlu1 %v1559_v3  ;;  %10120 = vmatprep.mubr.msk.f32.mxu1 %vm11671_vm0, %v11672_v8 }
 0x56c   : > { %10119 = vmatpush3.msra.mxu1 %v1095_v6 }
 0x56d   : > { %10128 = vmatprep.subr.mxu1 %v11672_v8 }
 0x57c   : > { %1789 = vrot.lane.b32.xlu1 %v1240_v47, %s13337_s29 }
 0x5a0   : > { %1398 = vadd.xlane.f32.xlu1 %v1397_v4 }
 0x5b1   : > { %2028 = vrot.lane.b32.xlu1 %v1240_v47, %s13335_s8 }
 0x5b5   : > { %2026 = vrot.lane.b32.xlu1 %v1173_v44, %s13335_s8 }
 0x5ca   : > { %v1469_v7 = vpop.f32.mrb[6].mxu1 }
 0x5cb   : > { %v10102_v9 = vpop.f32.mrb[7].mxu1 }
 0x5f8   : > { %v1561_v10 = vpop.xlane.xlu1 %1560 }
 0x5fc   : > { %v1790_v11 = vpop.permute.xlu1 %1789 }
 0x62d   : > { %v1399_v12 = vpop.xlane.xlu1 %1398 }
 0x62e   : > { %11146 = vrcp.f32 %v1399_v12  ;;  %v2297_v12 = vld [vmem:[%s13405_s10 + $0x8] sm:$0xff] }
 0x62f   : > { %11148 = vrcp.f32 %v1561_v10 }
 0x631   : > { %v2029_v34 = vpop.permute.xlu1 %2028 }
 0x635   : > { %v2027_v38 = vpop.permute.xlu1 %2026 }
 0x638   : > { %v11147_v13 = vpop.eup %11146 }
 0x639   : > { %v1474_v14 = vmul.f32 %v11147_v13, %v1469_v7  ;;  %v11149_v15 = vpop.eup %11148 }
 0x63b   : > { %10121 = vmatmul.mubr.msk.f32.vlgmr.msra.gmra.mrb[10].mxu1 %vm1314_vm4, %v1474_v14  ;;  %v2299_v14 = vld [vmem:[%s13405_s10 + $0x18] sm:$0xff] }
 0x63c   : > { %10130 = vmatprep.mubr.msk.f32.mxu1 %vm11671_vm0, %v11672_v8 }
 0x63d   : > { %v1635_v16 = vpop.f32.mrb[8].mxu1 }
 0x63e   : > { %v1640_v17 = vmul.f32 %v11149_v15, %v1635_v16  ;;  %v10112_v18 = vpop.f32.mrb[9].mxu1 }
 0x640   : > { %10116 = vmatmul.mubr.msk.f32.vlgmr.msra.gmra.mrb[6].mxu0 %vm1314_vm4, %v1640_v17 }
 0x641   : > { %10124 = vmatpush3.xpose.msk.msra.mxu0 %vm1314_vm4, %v1790_v11  ;;  %10125 = vmatprep.mubr.msk.f32.mxu0 %vm11671_vm0, %v11672_v8  ;;  %v2296_v11 = vld [vmem:[%s13404_s4] sm:$0xff]  ;;  %s13406_s4 = sld [smem:[#allocation47_spill]] }
 0x642   : > { %10133 = vmatprep.subr.mxu0 %v11672_v8  ;;  %v10799_v13 = vpack.c.bf16 %v2297_v12, %v2296_v11 }
 0x644   : > { %10126 = vmatmul.mubr.msk.f32.vlgmr.msra.gmra.mrb[8].mxu0 %vm1314_vm4, %v1788_v19 }
 0x645   : > { %10135 = vmatprep.mubr.msk.f32.mxu0 %vm11671_vm0, %v11672_v8  ;;  %10134 = vmatpush3.msra.mxu0 %v1097_v39 }
 0x646   : > { %10143 = vmatprep.subr.mxu0 %v11672_v8 }
 0x647   : > { %s13407_s5 = smov %s13406_s4  ;;  %v2300_v16 = vld [vmem:[%s13406_s4] sm:$0xff]  ;;  %s13417_s4 = sld [smem:[#allocation52_spill]] }
 0x648   : > { %v2301_v17 = vld [vmem:[%s13407_s5 + $0x8] sm:$0xff]  ;;  %v2302_v18 = vld [vmem:[%s13407_s5 + $0x10] sm:$0xff] }
 0x649   : > { %v10805_v19 = vpack.c.bf16 %v2301_v17, %v2300_v16 }
 0x70e   : > { %v1783_v20 = vpop.f32.mrb[10].mxu1 }
 0x70f   : > { %v10122_v21 = vpop.f32.mrb[11].mxu1 }
 0x713   : > { %v1710_v24 = vpop.f32.mrb[6].mxu0 }
 0x714   : > { %v1784_v25 = vadd.f32 %v1783_v20, %v1710_v24  ;;  %v10117_v26 = vpop.f32.mrb[7].mxu0  ;;  %v2303_v20 = vld [vmem:[%s13407_s5 + $0x18] sm:$0xff]  ;;  %v2304_v24 = vld [vmem:[%s13407_s5 + $0x20] sm:$0xff] }
 0x715   : > { %v10808_v21 = vpack.c.bf16 %v2303_v20, %v2302_v18 }
 0x717   : > { %v1861_v27 = vpop.f32.mrb[8].mxu0 }
 0x718   : > { %v10127_v28 = vpop.f32.mrb[9].mxu0  ;;  %v1865_v29 = vsel %vm1314_vm4, %v1861_v27, -inf }
 0x719   : > { %1866 = vmax.xlane.f32.xlu0 %v1865_v29 }
 0x72f   : > { %1874 = vrot.lane.b32.xlu0 %v12253_v43, %s13337_s29 }
 0x7a6   : > { %v1867_v30 = vpop.xlane.xlu0 %1866 }
 0x7a7   : > { %v1868_v31 = vsub.f32 %v1861_v27, %v1867_v30 }
 0x7a9   : > { %v1869_v32 = vmul.f32 1.442695, %v1868_v31  ;;  %v9550_v31 = vld [vmem:[#allocation2] ss:$0 sm:$0xff] }
 0x7aa   : > { %v1875_v33 = vpop.permute.xlu0 %1874 }
 0x7ab   : > { %11150 = vpow2.f32 %v1869_v32  ;;  %10129 = vmatpush3.msra.mxu1 %v1875_v33  ;;  %v9551_v33 = vld [vmem:[#allocation5] ss:$0 sm:$0xff] }
 0x7ac   : > { %10138 = vmatprep.subr.mxu1 %v11672_v8 }
 0x7b5   : > { %v11151_v35 = vpop.eup %11150 }
 0x7b6   : > { %10131 = vmatmul.mubr.msk.f32.vlgmr.msra.gmra.mrb[12].mxu1 %vm1314_vm4, %v11151_v35  ;;  %v1871_v36 = vsel %vm1314_vm4, %v11151_v35, 0.0 }
 0x7b7   : > { %10139 = vmatpush3.xpose.msk.msra.mxu1 %vm1314_vm4, %v2029_v34  ;;  %1872 = vadd.xlane.f32.xlu0 %v1871_v36  ;;  %v2306_v36 = vld [vmem:[%s13407_s5 + $0x30] sm:$0xff] }
 0x7b8   : > { %10140 = vmatprep.mubr.msk.f32.mxu1 %vm11671_vm0, %v11672_v8  ;;  %10148 = vmatprep.subr.mxu1 %v11672_v8 }
 0x7ba   : > { %10141 = vmatmul.mubr.msk.f32.vlgmr.msra.gmra.mrb[14].mxu1 %vm1314_vm4, %v2027_v38  ;;  %v2307_v38 = vld [vmem:[%s13407_s5 + $0x38] sm:$0xff] }
 0x7bb   : > { %10150 = vmatprep.mubr.msk.f32.mxu1 %vm11671_vm0, %v11672_v8  ;;  %10149 = vmatpush3.msra.mxu1 %v1098_v57  ;;  %v10814_v39 = vpack.c.bf16 %v2307_v38, %v2306_v36 }
 0x7bc   : > { %10804 = vmatprep.subr.bf16.mxu1 %v11670_v1 }
 0x7cd   : > { %2113 = vrot.lane.b32.xlu0 %v12253_v43, %s13335_s8 }
 0x844   : > { %v1873_v40 = vpop.xlane.xlu0 %1872 }
 0x845   : > { %11152 = vrcp.f32 %v1873_v40 }
 0x848   : > { %v2114_v46 = vpop.permute.xlu0 %2113 }
 0x84f   : > { %v11153_v41 = vpop.eup %11152 }
 0x889   : > { %v1946_v42 = vpop.f32.mrb[12].mxu1 }
 0x88a   : > { %v1951_v44 = vmul.f32 %v11153_v41, %v1946_v42  ;;  %v10132_v45 = vpop.f32.mrb[13].mxu1 }
 0x88c   : > { %10136 = vmatmul.mubr.msk.f32.vlgmr.msra.gmra.mrb[10].mxu0 %vm1314_vm4, %v1951_v44 }
 0x88d   : > { %10144 = vmatpush3.msra.mxu0 %v2114_v46  ;;  %v2100_v47 = vpop.f32.mrb[14].mxu1  ;;  %10145 = vmatprep.mubr.msk.f32.mxu0 %vm11671_vm0, %v11672_v8 }
 0x88e   : > { %v10142_v43 = vpop.f32.mrb[15].mxu1  ;;  %v2104_v48 = vsel %vm1314_vm4, %v2100_v47, -inf  ;;  %10798 = vmatprep.subr.bf16.mxu0 %v11670_v1 }
 0x88f   : > { %2105 = vmax.xlane.f32.xlu1 %v2104_v48 }
 0x91c   : > { %v2106_v49 = vpop.xlane.xlu1 %2105 }
 0x91d   : > { %v2107_v50 = vsub.f32 %v2100_v47, %v2106_v49 }
 0x91f   : > { %v2108_v51 = vmul.f32 1.442695, %v2107_v50 }
 0x921   : > { %11154 = vpow2.f32 %v2108_v51 }
 0x92b   : > { %v11155_v52 = vpop.eup %11154 }
 0x92c   : > { %10146 = vmatmul.mubr.msk.f32.vlgmr.msra.gmra.mrb[12].mxu0 %vm1314_vm4, %v11155_v52  ;;  %v2110_v53 = vsel %vm1314_vm4, %v11155_v52, 0.0  ;;  %v9556_v52 = vld [vmem:[%s13397_s6 + $0x20] sm:$0xff] }
 0x92d   : > { %2111 = vadd.xlane.f32.xlu1 %v2110_v53  ;;  %10161 = vmatprep.mubr.msk.f32.mxu0 %vm11671_vm0, %v11672_v8  ;;  %v9557_v53 = vld [vmem:[%s13397_s6 + $0x28] sm:$0xff] }
 0x92e   : > { %10800 = vmatpush3.bf16.msra.mxu0 %v10799_v13 }
 0x92f   : > { %10801 = vmatprep.subr.bf16.mxu0 %v11670_v1 }
 0x95f   : > { %v2021_v54 = vpop.f32.mrb[10].mxu0 }
 0x960   : > { %v2025_v55 = vadd.f32 %v2021_v54, %v1784_v25  ;;  %v10137_v56 = vpop.f32.mrb[11].mxu0  ;;  %v2305_v25 = vld [vmem:[%s13407_s5 + $0x28] sm:$0xff]  ;;  %v10817_v54 = vpack.c.bf16 %v9557_v53, %v9556_v52 }
 0x961   : > { %v10811_v26 = vpack.c.bf16 %v2305_v25, %v2304_v24  ;;  %v9565_v56 = vld [vmem:[%s13398_s16 + $0x28] sm:$0xff] }
 0x9ba   : > { %v2112_v58 = vpop.xlane.xlu1 %2111 }
 0x9bb   : > { %11156 = vrcp.f32 %v2112_v58  ;;  %v9558_v58 = vld [vmem:[%s13397_s6 + $0x30] sm:$0xff] }
 0x9c5   : > { %v11157_v59 = vpop.eup %11156 }
 0x9ff   : > { %v2185_v60 = vpop.f32.mrb[12].mxu0 }
 0xa00   : > { %v2190_v61 = vmul.f32 %v11157_v59, %v2185_v60  ;;  %v10147_v62 = vpop.f32.mrb[13].mxu0  ;;  %v9559_v59 = vld [vmem:[%s13397_s6 + $0x38] sm:$0xff]  ;;  %v9566_v60 = vld [vmem:[%s13398_s16 + $0x30] sm:$0xff] }
 0xa01   : > { %v9567_v62 = vld [vmem:[%s13398_s16 + $0x38] sm:$0xff] }
 0xa02   : > { %10151 = vmatmul.mubr.msk.f32.vlgmr.msra.gmra.mrb[16].mxu1 %vm1314_vm4, %v2190_v61  ;;  %v10820_v61 = vpack.c.bf16 %v9559_v59, %v9558_v58 }
 0xa03   : > { %10180 = vmatprep.mubr.msk.f32.mxu1 %vm11671_vm0, %v11672_v8  ;;  %10806 = vmatpush3.bf16.msra.mxu1 %v10805_v19 }
 0xa04   : > { %10807 = vmatprep.subr.bf16.mxu1 %v11670_v1 }
 0xa07   : > { %10809 = vmatpush3.bf16.msra.mxu1 %v10808_v21 }
 0xa08   : > { %10810 = vmatprep.subr.bf16.mxu1 %v11670_v1 }
 0xa0b   : > { %10812 = vmatpush3.bf16.msra.mxu1 %v10811_v26 }
 0xa0c   : > { %10813 = vmatprep.subr.bf16.mxu1 %v11670_v1 }
 0xa0f   : > { %10815 = vmatpush3.bf16.msra.mxu1 %v10814_v39 }
 0xa10   : > { %10828 = vmatprep.subr.bf16.mxu1 %v11670_v1 }
 0xad5   : > { %v2260_v63 = vpop.f32.mrb[16].mxu1 }
 0xad6   : > { %v2264_v0 = vadd.f32 %v2260_v63, %v2025_v55  ;;  %v10152_v2 = vpop.f32.mrb[17].mxu1  ;;  %v9564_v55 = vld [vmem:[%s13398_s16 + $0x20] sm:$0xff]  ;;  %v10832_v63 = vpack.c.bf16 %v9567_v62, %v9566_v60 }
 0xad7   : > { %v10829_v57 = vpack.c.bf16 %v9565_v56, %v9564_v55 }
 0xad8   : > { %v2265_v3 = vadd.f32 %v2264_v0, %v12231_v37  ;;  %v2298_v37 = vld [vmem:[%s13405_s10 + $0x10] sm:$0xff] }
 0xad9   : > { %v10802_v15 = vpack.c.bf16 %v2299_v14, %v2298_v37  ;;  %v9562_v37 = vld [vmem:[%s13400_s3 + $0x30] sm:$0xff]  ;;  %v9563_v14 = vld [vmem:[%s13400_s3 + $0x38] sm:$0xff] }
 0xada   : > { %v2268_v4 = vsel %vm1099_vm3, %v2265_v3, 0.0 }
 0xadb   : > { %2269 = vadd.xlane.f32.xlu1 %v2268_v4  ;;  %10803 = vmatpush3.bf16.msra.mxu0 %v10802_v15  ;;  %v10826_v15 = vpack.c.bf16 %v9563_v14, %v9562_v37  ;;  %v9570_v37 = vld [vmem:[%s13403_s14 + $0x30] sm:$0xff] }
 0xadc   : > { %10816 = vmatprep.subr.bf16.mxu0 %v11670_v1 }
 0xb68   : > { %v2270_v5 = vpop.xlane.xlu1 %2269 }
 0xb69   : > { %v2272_v6 = vmul.f32 0.03125, %v2270_v5  ;;  %v9554_v5 = vld [vmem:[#allocation2 + $0x1] ss:$0 sm:$0xff] }
 0xb6b   : > { %v2273_v7 = vsub.f32 %v2265_v3, %v2272_v6 }
 0xb6d   : > { %v2274_v9 = vmul.f32 %v2273_v7, %v2273_v7 }
 0xb6f   : > { %v2275_v10 = vsel %vm1099_vm3, %v2274_v9, 0.0  ;;  %v9561_v9 = vld [vmem:[%s13400_s3 + $0x28] sm:$0xff] }
 0xb70   : > { %2276 = vadd.xlane.f32.xlu1 %v2275_v10  ;;  %v9555_v10 = vld [vmem:[#allocation5 + $0x1] ss:$0 sm:$0xff] }
 0xbfd   : > { %v2277_v27 = vpop.xlane.xlu1 %2276 }
 0xbfe   : > { %v2278_v28 = vmul.f32 0.03125, %v2277_v27 }
 0xc00   : > { %v2279_v29 = vadd.f32 1e-05, %v2278_v28 }
 0xc02   : > { %11158 = vrsqrt.f32 %v2279_v29 }
 0xc0c   : > { %v11159_v30 = vpop.eup %11158 }
 0xc0d   : > { %v2281_v32 = vmul.f32 %v11159_v30, %v2273_v7  ;;  %v9560_v7 = vld [vmem:[%s13400_s3 + $0x20] sm:$0xff] }
 0xc0e   : > { %v10823_v12 = vpack.c.bf16 %v9561_v9, %v9560_v7 }
 0xc0f   : > { %v2288_v34 = vmul.f32 %v9550_v31, %v2281_v32 }
 0xc11   : > { %v2295_v35 = vadd.f32 %v9551_v33, %v2288_v34 }
 0xc13   : > { %10162 = vmatmul.mubr.msk.f32.vlgmr.msra.gmra.mrb[14].mxu0 %vm1099_vm3, %v2295_v35 }
 0xc14   : > { %10191 = vmatprep.mubr.msk.f32.mxu0 %vm11671_vm0, %v11672_v8  ;;  %10818 = vmatpush3.bf16.msra.mxu0 %v10817_v54 }
 0xc15   : > { %10819 = vmatprep.subr.bf16.mxu0 %v11670_v1 }
 0xc18   : > { %10821 = vmatpush3.bf16.msra.mxu0 %v10820_v61 }
 0xc19   : > { %10822 = vmatprep.subr.bf16.mxu0 %v11670_v1 }
 0xce6   : > { %v2377_v40 = vpop.f32.mrb[14].mxu0 }
 0xce7   : > { %v2381_v41 = vmax.f32 %v2377_v40, 0.0  ;;  %v10163_v42 = vpop.f32.mrb[15].mxu0 }
 0xce9   : > { %10181 = vmatmul.mubr.msk.f32.vlgmr.msra.gmra.mrb[18].mxu1 %vm1009_vm1, %v2381_v41 }
 0xcea   : > { %10213 = vmatprep.mubr.msk.f32.mxu1 %vm11671_vm0, %v11672_v8  ;;  %10830 = vmatpush3.bf16.msra.mxu1 %v10829_v57 }
 0xceb   : > { %10831 = vmatprep.subr.bf16.mxu1 %v11670_v1 }
 0xcee   : > { %10833 = vmatpush3.bf16.msra.mxu1 %v10832_v63 }
 0xcef   : > { %10221 = vmatprep.subr.mxu1 %v11672_v8 }
 0xdbc   : > { %v2451_v44 = vpop.f32.mrb[18].mxu1 }
 0xdbd   : > { %v2455_v45 = vadd.f32 %v2451_v44, %v2295_v35  ;;  %v10182_v46 = vpop.f32.mrb[19].mxu1  ;;  %v9568_v44 = vld [vmem:[%s13403_s14 + $0x20] sm:$0xff] }
 0xdbf   : > { %v2460_v47 = vsel %vm1099_vm3, %v2455_v45, 0.0 }
 0xdc0   : > { %2461 = vadd.xlane.f32.xlu1 %v2460_v47  ;;  %v9569_v47 = vld [vmem:[%s13403_s14 + $0x28] sm:$0xff] }
 0xe4d   : > { %v2462_v43 = vpop.xlane.xlu1 %2461 }
 0xe4e   : > { %v2463_v48 = vmul.f32 0.03125, %v2462_v43 }
 0xe50   : > { %v2464_v49 = vsub.f32 %v2455_v45, %v2463_v48 }
 0xe52   : > { %v2465_v50 = vmul.f32 %v2464_v49, %v2464_v49 }
 0xe54   : > { %v2466_v51 = vsel %vm1099_vm3, %v2465_v50, 0.0 }
 0xe55   : > { %2467 = vadd.xlane.f32.xlu1 %v2466_v51 }
 0xee2   : > { %v2468_v0 = vpop.xlane.xlu1 %2467 }
 0xee3   : > { %v2469_v2 = vmul.f32 0.03125, %v2468_v0 }
 0xee5   : > { %v2470_v3 = vadd.f32 1e-05, %v2469_v2 }
 0xee7   : > { %11160 = vrsqrt.f32 %v2470_v3 }
 0xef1   : > { %v11161_v4 = vpop.eup %11160 }
 0xef2   : > { %v2472_v6 = vmul.f32 %v11161_v4, %v2464_v49 }
 0xef4   : > { %v2479_v11 = vmul.f32 %v9554_v5, %v2472_v6 }
 0xef6   : > { %v12427_v13 = vadd.f32 %v9555_v10, %v2479_v11 }
 0xef8   : > { %10192 = vmatmul.mubr.msk.f32.vlgmr.msra.gmra.mrb[16].mxu0 %vm1099_vm3, %v12427_v13  ;;  %10214 = vmatmul.mubr.msk.f32.vlgmr.msra.gmra.mrb[20].mxu1 %vm1099_vm3, %v12427_v13 }
 0xef9   : > { %10824 = vmatpush3.bf16.msra.mxu0 %v10823_v12  ;;  %10202 = vmatprep.mubr.msk.f32.mxu0 %vm11671_vm0, %v11672_v8 }
 0xefa   : > { %10825 = vmatprep.subr.bf16.mxu0 %v11670_v1  ;;  %10223 = vmatprep.mubr.msk.f32.mxu1 %vm11671_vm0, %v11672_v8 }
 0xefd   : > { %10827 = vmatpush3.bf16.msra.mxu0 %v10826_v15 }
 0xefe   : > { %10216 = vmatprep.subr.mxu0 %v11672_v8 }
 0xf00   : > { %10203 = vmatmul.mubr.msk.f32.vlgmr.msra.gmra.mrb[18].mxu0 %vm1099_vm3, %v12427_v13 }
 0xf01   : > { %10218 = vmatprep.mubr.msk.f32.mxu0 %vm11671_vm0, %v11672_v8 }
 0xfcb   : > { %v2576_v16 = vpop.f32.mrb[16].mxu0  ;;  %v12449_v17 = vpop.f32.mrb[20].mxu1 }
 0xfcc   : > { %v2580_v18 = vmul.f32 0.35355338, %v2576_v16  ;;  %v10193_v19 = vpop.f32.mrb[17].mxu0  ;;  %v10215_v20 = vpop.f32.mrb[21].mxu1  ;;  %10222 = vmatpush3.msra.mxu1 %v12449_v17 }
 0xfcd   : > { %10231 = vmatprep.subr.mxu1 %v11672_v8 }
 0xfce   : > { %2881 = vrot.lane.b32.xlu1 %v2580_v18, %s13339_s13 }
 0xfd3   : > { %v12454_v21 = vpop.f32.mrb[18].mxu0 }
 0xfd4   : > { %2883 = vrot.lane.b32.xlu0 %v12454_v21, %s13339_s13  ;;  %v10204_v24 = vpop.f32.mrb[19].mxu0  ;;  %10217 = vmatpush3.xpose.msk.msra.mxu0 %vm1314_vm4, %v12454_v21 }
 0xfd5   : > { %10226 = vmatprep.subr.mxu0 %v11672_v8 }
 0xfd7   : > { %10219 = vmatmul.mubr.msk.f32.vlgmr.msra.gmra.mrb[20].mxu0 %vm1314_vm4, %v2580_v18 }
 0xfd8   : > { %10228 = vmatprep.mubr.msk.f32.mxu0 %vm11671_vm0, %v11672_v8 }
0x1040   : > { %v2882_v26 = vpop.permute.xlu1 %2881 }
0x1046   : > { %v2884_v25 = vpop.permute.xlu0 %2883 }
0x1047   : > { %10227 = vmatpush3.xpose.msk.msra.mxu0 %vm1314_vm4, %v2884_v25 }
0x1048   : > { %10236 = vmatprep.subr.mxu0 %v11672_v8 }
0x104a   : > { %10229 = vmatmul.mubr.msk.f32.vlgmr.msra.gmra.mrb[22].mxu0 %vm1314_vm4, %v2882_v26 }
0x104b   : > { %10238 = vmatprep.mubr.msk.f32.mxu0 %vm11671_vm0, %v11672_v8  ;;  %10237 = vmatpush3.msra.mxu0 %v9569_v47 }
0x104c   : > { %10246 = vmatprep.subr.mxu0 %v11672_v8 }
0x10aa   : > { %v2793_v27 = vpop.f32.mrb[20].mxu0 }
0x10ab   : > { %v10220_v28 = vpop.f32.mrb[21].mxu0  ;;  %v2797_v29 = vsel %vm1314_vm4, %v2793_v27, -inf }
0x10ac   : > { %2798 = vmax.xlane.f32.xlu0 %v2797_v29 }
0x10c2   : > { %2969 = vrot.lane.b32.xlu0 %v12449_v17, %s13339_s13  ;;  %s13416_s13 = smov 112  }
0x10c6   : > { %3195 = vrot.lane.b32.xlu0 %v12454_v21, %s13337_s29 }
0x111d   : > { %v2955_v30 = vpop.f32.mrb[22].mxu0 }
0x111e   : > { %v10230_v31 = vpop.f32.mrb[23].mxu0  ;;  %v2959_v32 = vsel %vm1314_vm4, %v2955_v30, -inf }
0x111f   : > { %2960 = vmax.xlane.f32.xlu1 %v2959_v32 }
0x1139   : > { %v2799_v33 = vpop.xlane.xlu0 %2798 }
0x113a   : > { %v2800_v34 = vsub.f32 %v2793_v27, %v2799_v33  ;;  %v9571_v33 = vld [vmem:[%s13403_s14 + $0x38] sm:$0xff] }
0x113c   : > { %v2801_v35 = vmul.f32 1.442695, %v2800_v34 }
0x113d   : > { %v2970_v38 = vpop.permute.xlu0 %2969 }
0x113e   : > { %11162 = vpow2.f32 %v2801_v35 }
0x1141   : > { %v3196_v43 = vpop.permute.xlu0 %3195 }
0x1148   : > { %v11163_v36 = vpop.eup %11162 }
0x1149   : > { %10224 = vmatmul.mubr.msk.f32.vlgmr.msra.gmra.mrb[22].mxu1 %vm1314_vm4, %v11163_v36  ;;  %v2803_v39 = vsel %vm1314_vm4, %v11163_v36, 0.0 }
0x114a   : > { %10232 = vmatpush3.msra.mxu1 %v2970_v38  ;;  %2804 = vadd.xlane.f32.xlu0 %v2803_v39 }
0x114b   : > { %10233 = vmatprep.mubr.msk.f32.mxu1 %vm11671_vm0, %v11672_v8  ;;  %10241 = vmatprep.subr.mxu1 %v11672_v8 }
0x1160   : > { %3280 = vrot.lane.b32.xlu0 %v12449_v17, %s13337_s29 }
0x1164   : > { %3432 = vrot.lane.b32.xlu0 %v2580_v18, %s13408_s12 }
0x11ac   : > { %v2961_v40 = vpop.xlane.xlu1 %2960 }
0x11ad   : > { %v2962_v41 = vsub.f32 %v2955_v30, %v2961_v40 }
0x11af   : > { %v2963_v42 = vmul.f32 1.442695, %v2962_v41 }
0x11b1   : > { %11164 = vpow2.f32 %v2963_v42 }
0x11bb   : > { %v11165_v45 = vpop.eup %11164 }
0x11bc   : > { %10234 = vmatmul.mubr.msk.f32.vlgmr.msra.gmra.mrb[24].mxu1 %vm1314_vm4, %v11165_v45  ;;  %v2965_v46 = vsel %vm1314_vm4, %v11165_v45, 0.0 }
0x11bd   : > { %2966 = vadd.xlane.f32.xlu1 %v2965_v46  ;;  %10242 = vmatpush3.msra.mxu1 %v9568_v44  ;;  %v3896_v46 = vld [vmem:[%s990_s7] sm:$0xff] }
0x11be   : > { %10243 = vmatprep.mubr.msk.f32.mxu1 %vm11671_vm0, %v11672_v8  ;;  %10251 = vmatprep.subr.mxu1 %v11672_v8 }
0x11ce   : > { %3193 = vrot.lane.b32.xlu1 %v2580_v18, %s13337_s29  ;;  %s13421_s29 = sld [smem:[#allocation53_spill]] }
0x11d7   : > { %v2805_v48 = vpop.xlane.xlu0 %2804 }
0x11d8   : > { %11166 = vrcp.f32 %v2805_v48 }
0x11db   : > { %v3281_v53 = vpop.permute.xlu0 %3280 }
0x11df   : > { %v3433_v12 = vpop.permute.xlu0 %3432 }
0x11e2   : > { %v11167_v49 = vpop.eup %11166 }
0x121c   : > { %v2875_v50 = vpop.f32.mrb[22].mxu1 }
0x121d   : > { %v2880_v51 = vmul.f32 %v11167_v49, %v2875_v50  ;;  %v10225_v52 = vpop.f32.mrb[23].mxu1 }
0x121f   : > { %10244 = vmatmul.mubr.msk.f32.vlgmr.msra.gmra.mrb[26].mxu1 %vm1314_vm4, %v2880_v51  ;;  %v9594_v51 = vld [vmem:[%s13405_s10 + $0x28] sm:$0xff] }
0x1220   : > { %10252 = vmatpush3.msra.mxu1 %v3281_v53  ;;  %10253 = vmatprep.mubr.msk.f32.mxu1 %vm11671_vm0, %v11672_v8  ;;  %v9595_v53 = vld [vmem:[%s13405_s10 + $0x30] sm:$0xff] }
0x1221   : > { %10261 = vmatprep.subr.mxu1 %v11672_v8 }
0x124a   : > { %v2967_v54 = vpop.xlane.xlu1 %2966 }
0x124b   : > { %11168 = vrcp.f32 %v2967_v54  ;;  %v9596_v54 = vld [vmem:[%s13405_s10 + $0x38] sm:$0xff] }
0x124e   : > { %v3194_v59 = vpop.permute.xlu1 %3193 }
0x1255   : > { %v11169_v55 = vpop.eup %11168 }
0x128f   : > { %v3041_v56 = vpop.f32.mrb[24].mxu1 }
0x1290   : > { %v3046_v57 = vmul.f32 %v11169_v55, %v3041_v56  ;;  %v10235_v58 = vpop.f32.mrb[25].mxu1  ;;  %v10838_v55 = vpack.c.bf16 %v9596_v54, %v9595_v53  ;;  %v9597_v56 = vld [vmem:[%s13407_s5 + $0x40] sm:$0xff]  ;;  %v3995_v53 = vld [vmem:[%s13413_s28 + $0x10] sm:$0xff]  ;;  %v3996_v54 = vld [vmem:[%s13413_s28 + $0x18] sm:$0xff] }
0x1291   : > { %v9599_v58 = vld [vmem:[%s13407_s5 + $0x50] sm:$0xff] }
0x1292   : > { %10239 = vmatmul.mubr.msk.f32.vlgmr.msra.gmra.mrb[24].mxu0 %vm1314_vm4, %v3046_v57  ;;  %v9598_v57 = vld [vmem:[%s13407_s5 + $0x48] sm:$0xff] }
0x1293   : > { %10247 = vmatpush3.xpose.msk.msra.mxu0 %vm1314_vm4, %v3196_v43  ;;  %10248 = vmatprep.mubr.msk.f32.mxu0 %vm11671_vm0, %v11672_v8 }
0x1294   : > { %10256 = vmatprep.subr.mxu0 %v11672_v8 }
0x1296   : > { %10249 = vmatmul.mubr.msk.f32.vlgmr.msra.gmra.mrb[26].mxu0 %vm1314_vm4, %v3194_v59  ;;  %v10841_v59 = vpack.c.bf16 %v9598_v57, %v9597_v56 }
0x1297   : > { %10258 = vmatprep.mubr.msk.f32.mxu0 %vm11671_vm0, %v11672_v8  ;;  %10257 = vmatpush3.msra.mxu0 %v9570_v37 }
0x1298   : > { %10266 = vmatprep.subr.mxu0 %v11672_v8 }
0x12f2   : > { %v3189_v60 = vpop.f32.mrb[26].mxu1 }
0x12f3   : > { %v10245_v61 = vpop.f32.mrb[27].mxu1 }
0x1365   : > { %v3116_v62 = vpop.f32.mrb[24].mxu0 }
0x1366   : > { %v3190_v63 = vadd.f32 %v3189_v60, %v3116_v62  ;;  %v10240_v0 = vpop.f32.mrb[25].mxu0  ;;  %v9600_v60 = vld [vmem:[%s13407_s5 + $0x58] sm:$0xff]  ;;  %v9601_v62 = vld [vmem:[%s13407_s5 + $0x60] sm:$0xff] }
0x1367   : > { %v10844_v61 = vpack.c.bf16 %v9600_v60, %v9599_v58 }
0x1369   : > { %v3267_v2 = vpop.f32.mrb[26].mxu0 }
0x136a   : > { %v10250_v3 = vpop.f32.mrb[27].mxu0  ;;  %v3271_v4 = vsel %vm1314_vm4, %v3267_v2, -inf }
0x136b   : > { %3272 = vmax.xlane.f32.xlu1 %v3271_v4 }
0x137c   : > { %3434 = vrot.lane.b32.xlu1 %v12454_v21, %s13408_s12 }
0x13f8   : > { %v3273_v5 = vpop.xlane.xlu1 %3272 }
0x13f9   : > { %v3274_v6 = vsub.f32 %v3267_v2, %v3273_v5 }
0x13fb   : > { %v3275_v7 = vmul.f32 1.442695, %v3274_v6  ;;  %v9591_v6 = vld [vmem:[#allocation2 + $0x2] ss:$0 sm:$0xff] }
0x13fc   : > { %v3435_v10 = vpop.permute.xlu1 %3434 }
0x13fd   : > { %11170 = vpow2.f32 %v3275_v7 }
0x1407   : > { %v11171_v9 = vpop.eup %11170 }
0x1408   : > { %10254 = vmatmul.mubr.msk.f32.vlgmr.msra.gmra.mrb[28].mxu1 %vm1314_vm4, %v11171_v9  ;;  %v3277_v11 = vsel %vm1314_vm4, %v11171_v9, 0.0  ;;  %v3903_v9 = vld [vmem:[%s13411_s2] sm:$0xff] }
0x1409   : > { %10262 = vmatpush3.xpose.msk.msra.mxu1 %vm1314_vm4, %v3435_v10  ;;  %3278 = vadd.xlane.f32.xlu0 %v3277_v11  ;;  %v3904_v10 = vld [vmem:[%s13411_s2 + $0x8] sm:$0xff]  ;;  %v9592_v11 = vld [vmem:[#allocation5 + $0x2] ss:$0 sm:$0xff] }
0x140a   : > { %10263 = vmatprep.mubr.msk.f32.mxu1 %vm11671_vm0, %v11672_v8  ;;  %10271 = vmatprep.subr.mxu1 %v11672_v8  ;;  %v10853_v37 = vpack.c.bf16 %v3904_v10, %v3903_v9 }
0x140c   : > { %10264 = vmatmul.mubr.msk.f32.vlgmr.msra.gmra.mrb[30].mxu1 %vm1314_vm4, %v3433_v12 }
0x140d   : > { %10273 = vmatprep.mubr.msk.f32.mxu1 %vm11671_vm0, %v11672_v8  ;;  %10272 = vmatpush3.msra.mxu1 %v9571_v33 }
0x140e   : > { %10840 = vmatprep.subr.bf16.mxu1 %v11670_v1 }
0x141f   : > { %3519 = vrot.lane.b32.xlu0 %v12449_v17, %s13408_s12 }
0x1496   : > { %v3279_v14 = vpop.xlane.xlu0 %3278 }
0x1497   : > { %11172 = vrcp.f32 %v3279_v14 }
0x149a   : > { %v3520_v20 = vpop.permute.xlu0 %3519 }
0x14a1   : > { %v11173_v15 = vpop.eup %11172 }
0x14db   : > { %v3352_v16 = vpop.f32.mrb[28].mxu1 }
0x14dc   : > { %v3357_v18 = vmul.f32 %v11173_v15, %v3352_v16  ;;  %v10255_v19 = vpop.f32.mrb[29].mxu1  ;;  %v3905_v15 = vld [vmem:[%s13411_s2 + $0x10] sm:$0xff]  ;;  %v3906_v16 = vld [vmem:[%s13411_s2 + $0x18] sm:$0xff] }
0x14dd   : > { %v3907_v19 = vld [vmem:[%s13411_s2 + $0x20] sm:$0xff] }
0x14de   : > { %10259 = vmatmul.mubr.msk.f32.vlgmr.msra.gmra.mrb[28].mxu0 %vm1314_vm4, %v3357_v18  ;;  %v10856_v18 = vpack.c.bf16 %v3906_v16, %v3905_v15 }
0x14df   : > { %10267 = vmatpush3.msra.mxu0 %v3520_v20  ;;  %v3506_v21 = vpop.f32.mrb[30].mxu1  ;;  %10268 = vmatprep.mubr.msk.f32.mxu0 %vm11671_vm0, %v11672_v8  ;;  %v3908_v20 = vld [vmem:[%s13411_s2 + $0x28] sm:$0xff] }
0x14e0   : > { %v10265_v17 = vpop.f32.mrb[31].mxu1  ;;  %v3510_v24 = vsel %vm1314_vm4, %v3506_v21, -inf  ;;  %10834 = vmatprep.subr.bf16.mxu0 %v11670_v1 }
0x14e1   : > { %3511 = vmax.xlane.f32.xlu1 %v3510_v24  ;;  %v3909_v17 = vld [vmem:[%s13411_s2 + $0x30] sm:$0xff]  ;;  %v3910_v24 = vld [vmem:[%s13411_s2 + $0x38] sm:$0xff]  ;;  %s9725_s2 = sshll.u32 %s11839_s9, 7  ;;  %s11677_s9 = smov [#allocation20]  }
0x156e   : > { %v3512_v25 = vpop.xlane.xlu1 %3511 }
0x156f   : > { %v3513_v26 = vsub.f32 %v3506_v21, %v3512_v25  ;;  %v10859_v21 = vpack.c.bf16 %v3908_v20, %v3907_v19 }
0x1571   : > { %v3514_v27 = vmul.f32 1.442695, %v3513_v26  ;;  %v10862_v26 = vpack.c.bf16 %v3910_v24, %v3909_v17 }
0x1573   : > { %11174 = vpow2.f32 %v3514_v27 }
0x157d   : > { %v11175_v28 = vpop.eup %11174 }
0x157e   : > { %10269 = vmatmul.mubr.msk.f32.vlgmr.msra.gmra.mrb[30].mxu0 %vm1314_vm4, %v11175_v28  ;;  %v3516_v29 = vsel %vm1314_vm4, %v11175_v28, 0.0  ;;  %v9603_v28 = vld [vmem:[%s13407_s5 + $0x70] sm:$0xff] }
0x157f   : > { %3517 = vadd.xlane.f32.xlu1 %v3516_v29  ;;  %10284 = vmatprep.mubr.msk.f32.mxu0 %vm11671_vm0, %v11672_v8  ;;  %v9604_v29 = vld [vmem:[%s13407_s5 + $0x78] sm:$0xff] }
0x15b1   : > { %v3427_v30 = vpop.f32.mrb[28].mxu0 }
0x15b2   : > { %v3431_v31 = vadd.f32 %v3427_v30, %v3190_v63  ;;  %v10260_v32 = vpop.f32.mrb[29].mxu0  ;;  %v9602_v63 = vld [vmem:[%s13407_s5 + $0x68] sm:$0xff]  ;;  %v10850_v30 = vpack.c.bf16 %v9604_v29, %v9603_v28  ;;  %v3998_v29 = vld [vmem:[#allocation7 + $0x8] sm:$0xff]  ;;  %s980_s5 = sand.u32 1, %s13419_s1   ;;  %s11570_s1 = sshll.u32 %s11677_s9, 4  ;;  %s11571_s1 = int_to_ptr.vmem [resolvable:$false] %s11570_s1 }
0x15b3   : > { %v10847_v0 = vpack.c.bf16 %v9602_v63, %v9601_v62  ;;  %v3990_v32 = vld [vmem:[%s13289_s15 + $0x8] sm:$0xff]  ;;  %s9526_s3 = sshll.u32 %s980_s5, 3 }
0x15b4   : > { %s982_s8 = scalar_lea.vmem [#allocation20], %s9526_s3  ;;  %s11572_s3 = scalar_lea.vmem %s11571_s1, 256 }
0x15b5   : > { %s9322_s30 = sshll.u32 %s982_s8, 4  ;;  %s13233_s30 = int_to_ptr.vmem [resolvable:$true] %s9322_s30 }
0x15b6   : > { %p11573_p10 = scmp.lt.s32.totalorder %s13233_s30, %s11571_s1 }
0x160c   : > { %v3518_v34 = vpop.xlane.xlu1 %3517 }
0x160d   : > { %11176 = vrcp.f32 %v3518_v34  ;;  %v3991_v34 = vld [vmem:[%s13289_s15 + $0x10] sm:$0xff] }
0x1617   : > { %v11177_v35 = vpop.eup %11176 }
0x1651   : > { %v3591_v36 = vpop.f32.mrb[30].mxu0 }
0x1652   : > { %v3596_v38 = vmul.f32 %v11177_v35, %v3591_v36  ;;  %v10270_v39 = vpop.f32.mrb[31].mxu0  ;;  %v3992_v35 = vld [vmem:[%s13289_s15 + $0x18] sm:$0xff] }
0x1653   : > { %v10874_v36 = vpack.c.bf16 %v3992_v35, %v3991_v34  ;;  %v3986_v39 = vld [vmem:[%s13412_s11 + $0x8] sm:$0xff] }
0x1654   : > { %10274 = vmatmul.mubr.msk.f32.vlgmr.msra.gmra.mrb[32].mxu1 %vm1314_vm4, %v3596_v38  ;;  %v3985_v38 = vld [vmem:[%s13412_s11] sm:$0xff] }
0x1655   : > { %10303 = vmatprep.mubr.msk.f32.mxu1 %vm11671_vm0, %v11672_v8  ;;  %10842 = vmatpush3.bf16.msra.mxu1 %v10841_v59 }
0x1656   : > { %10843 = vmatprep.subr.bf16.mxu1 %v11670_v1 }
0x1659   : > { %10845 = vmatpush3.bf16.msra.mxu1 %v10844_v61 }
0x165a   : > { %10846 = vmatprep.subr.bf16.mxu1 %v11670_v1 }
0x165d   : > { %10848 = vmatpush3.bf16.msra.mxu1 %v10847_v0 }
0x165e   : > { %10849 = vmatprep.subr.bf16.mxu1 %v11670_v1 }
0x1661   : > { %10851 = vmatpush3.bf16.msra.mxu1 %v10850_v30 }
0x1662   : > { %10864 = vmatprep.subr.bf16.mxu1 %v11670_v1 }
0x1727   : > { %v3666_v40 = vpop.f32.mrb[32].mxu1 }
0x1728   : > { %v3670_v41 = vadd.f32 %v3666_v40, %v3431_v31  ;;  %v10275_v42 = vpop.f32.mrb[33].mxu1  ;;  %v3989_v31 = vld [vmem:[%s13289_s15] sm:$0xff] }
0x1729   : > { %v10871_v33 = vpack.c.bf16 %v3990_v32, %v3989_v31 }
0x172a   : > { %v3671_v44 = vadd.f32 %v3670_v41, %v12427_v13  ;;  %v9593_v13 = vld [vmem:[%s13405_s10 + $0x20] sm:$0xff]  ;;  %v10865_v41 = vpack.c.bf16 %v3986_v39, %v3985_v38 }
0x172b   : > { %v10835_v52 = vpack.c.bf16 %v9594_v51, %v9593_v13 }
0x172c   : > { %v3676_v45 = vsel %vm1099_vm3, %v3671_v44, 0.0 }
0x172d   : > { %3677 = vadd.xlane.f32.xlu1 %v3676_v45  ;;  %10836 = vmatpush3.bf16.msra.mxu0 %v10835_v52  ;;  %v3987_v45 = vld [vmem:[%s13412_s11 + $0x10] sm:$0xff] }
0x172e   : > { %10837 = vmatprep.subr.bf16.mxu0 %v11670_v1 }
0x1731   : > { %10839 = vmatpush3.bf16.msra.mxu0 %v10838_v55  ;;  %v10880_v55 = vpack.c.bf16 %v3996_v54, %v3995_v53 }
0x1732   : > { %10852 = vmatprep.subr.bf16.mxu0 %v11670_v1 }
0x173e   : > { %3898 = vperm.xlu1 %11141, %v3896_v46   ;;  %v3988_v46 = vld [vmem:[%s13412_s11 + $0x18] sm:$0xff] }
0x17ba   : > { %v3678_v47 = vpop.xlane.xlu1 %3677 }
0x17bb   : > { %v3679_v43 = vmul.f32 0.03125, %v3678_v47  ;;  %v10868_v47 = vpack.c.bf16 %v3988_v46, %v3987_v45 }
0x17bd   : > { %v3680_v48 = vsub.f32 %v3671_v44, %v3679_v43  ;;  %v3993_v43 = vld [vmem:[%s13413_s28] sm:$0xff] }
0x17be   : > { %v3899_v25 = vpop.permute.xlu1 %3898 }
0x17bf   : > { %v3681_v49 = vmul.f32 %v3680_v48, %v3680_v48  ;;  %vm3900_vm5 = vcmp.eq.s32.totalorder %v12201_v23, %v3899_v25 }
0x17c0   : > { %v9609_v27 = vsel %vm3900_vm5, 1.0, %v11672_v8 }
0x17c1   : > { %v3682_v50 = vsel %vm1099_vm3, %v3681_v49, 0.0  ;;  %v3911_v49 = vld [vmem:[%s13414_s23] sm:$0xff]  ;;  %s13418_s23 = smov %s13417_s4 }
0x17c2   : > { %3683 = vadd.xlane.f32.xlu0 %v3682_v50 }
0x184f   : > { %v3684_v2 = vpop.xlane.xlu0 %3683 }
0x1850   : > { %v3685_v3 = vmul.f32 0.03125, %v3684_v2 }
0x1852   : > { %v3686_v4 = vadd.f32 1e-05, %v3685_v3 }
0x1854   : > { %11178 = vrsqrt.f32 %v3686_v4  ;;  %v4216_v4 = vshrl.u32 %v992_v22, 7 }
0x1856   : > { %vm4217_vm6 = vcmp.ge.s32.totalorder %v4216_v4, %v12201_v23 }
0x185e   : > { %v11179_v5 = vpop.eup %11178 }
0x185f   : > { %v3688_v7 = vmul.f32 %v11179_v5, %v3680_v48  ;;  %v3994_v48 = vld [vmem:[%s13413_s28 + $0x8] sm:$0xff]  ;;  %v11676_v5 = vmov -1e+30  }
0x1860   : > { %v10877_v13 = vpack.c.bf16 %v3994_v48, %v3993_v43 }
0x1861   : > { %v3695_v12 = vmul.f32 %v9591_v6, %v3688_v7  ;;  %v12721_v6 = vsel %vm4217_vm6, 0.0, %v11676_v5 }
0x1863   : > { %v12591_v14 = vadd.f32 %v9592_v11, %v3695_v12 }
0x1865   : > { %10285 = vmatmul.mubr.msk.f32.vlgmr.msra.gmra.mrb[32].mxu0 %vm1099_vm3, %v12591_v14 }
0x1866   : > { %10854 = vmatpush3.bf16.msra.mxu0 %v10853_v37  ;;  %10322 = vmatprep.mubr.msk.f32.mxu0 %vm11671_vm0, %v11672_v8 }
0x1867   : > { %10855 = vmatprep.subr.bf16.mxu0 %v11670_v1 }
0x186a   : > { %10857 = vmatpush3.bf16.msra.mxu0 %v10856_v18 }
0x186b   : > { %10858 = vmatprep.subr.bf16.mxu0 %v11670_v1 }
0x186e   : > { %10860 = vmatpush3.bf16.msra.mxu0 %v10859_v21 }
0x186f   : > { %10861 = vmatprep.subr.bf16.mxu0 %v11670_v1 }
0x1872   : > { %10863 = vmatpush3.bf16.msra.mxu0 %v10862_v26  ;;  %v3997_v26 = vld [vmem:[#allocation7] sm:$0xff] }
0x1873   : > { %10870 = vmatprep.subr.bf16.mxu0 %v11670_v1 }
0x1875   : > { %10323 = vmatmul.mubr.msk.f32.vlgmr.msra.gmra.mrb[34].mxu0 %vm1009_vm1, %v9609_v27 }
0x1876   : > { %10344 = vmatprep.mubr.msk.f32.mxu0 %vm11671_vm0, %v11672_v8  ;;  %10872 = vmatpush3.bf16.msra.mxu0 %v10871_v33 }
0x1877   : > { %10873 = vmatprep.subr.bf16.mxu0 %v11670_v1 }
0x187a   : > { %10875 = vmatpush3.bf16.msra.mxu0 %v10874_v36 }
0x187b   : > { %10358 = vmatprep.subr.mxu0 %v11672_v8 }
0x1938   : > { %v3786_v40 = vpop.f32.mrb[32].mxu0 }
0x1939   : > { %v3790_v42 = vmax.f32 %v3786_v40, 0.0  ;;  %v10286_v44 = vpop.f32.mrb[33].mxu0 }
0x193b   : > { %10304 = vmatmul.mubr.msk.f32.vlgmr.msra.gmra.mrb[34].mxu1 %vm1009_vm1, %v3790_v42 }
0x193c   : > { %10866 = vmatpush3.bf16.msra.mxu1 %v10865_v41  ;;  %10333 = vmatprep.mubr.msk.f32.mxu1 %vm11671_vm0, %v11672_v8 }
0x193d   : > { %10867 = vmatprep.subr.bf16.mxu1 %v11670_v1 }
0x1940   : > { %10869 = vmatpush3.bf16.msra.mxu1 %v10868_v47 }
0x1941   : > { %10876 = vmatprep.subr.bf16.mxu1 %v11670_v1 }
0x1948   : > { %v3981_v50 = vpop.f32.mrb[34].mxu0 }
0x1949   : > { %v12671_v51 = vadd.f32 %v3981_v50, %v3911_v49  ;;  %v10324_v52 = vpop.f32.mrb[35].mxu0 }
0x194b   : > { %10334 = vmatmul.mubr.msk.f32.vlgmr.msra.gmra.mrb[36].mxu1 %vm1099_vm3, %v12671_v51  ;;  %10345 = vmatmul.mubr.msk.f32.vlgmr.msra.gmra.mrb[36].mxu0 %vm1099_vm3, %v12671_v51 }
0x194c   : > { %10878 = vmatpush3.bf16.msra.mxu1 %v10877_v13  ;;  %10355 = vmatprep.mubr.msk.f32.mxu1 %vm11671_vm0, %v11672_v8 }
0x194d   : > { %10879 = vmatprep.subr.bf16.mxu1 %v11670_v1  ;;  %10360 = vmatprep.mubr.msk.f32.mxu0 %vm11671_vm0, %v11672_v8 }
0x1950   : > { %10881 = vmatpush3.bf16.msra.mxu1 %v10880_v55 }
0x1951   : > { %10363 = vmatprep.subr.mxu1 %v11672_v8 }
0x1953   : > { %10356 = vmatmul.mubr.msk.f32.vlgmr.msra.gmra.mrb[38].mxu1 %vm1099_vm3, %v12671_v51 }
0x1954   : > { %10365 = vmatprep.mubr.msk.f32.mxu1 %vm11671_vm0, %v11672_v8 }
0x1a0e   : > { %v12693_v56 = vpop.f32.mrb[34].mxu1 }
0x1a0f   : > { %v10305_v57 = vpop.f32.mrb[35].mxu1 }
0x1a1e   : > { %v4070_v58 = vpop.f32.mrb[36].mxu1  ;;  %v12695_v59 = vpop.f32.mrb[36].mxu0 }
0x1a1f   : > { %v12697_v60 = vmul.f32 0.35355338, %v4070_v58  ;;  %v10335_v61 = vpop.f32.mrb[37].mxu1  ;;  %4381 = vrot.lane.b32.xlu1 %v12695_v59, %s13415_s0  ;;  %v10346_v62 = vpop.f32.mrb[37].mxu0  ;;  %10359 = vmatpush3.xpose.msk.msra.mxu0 %vm1314_vm4, %v12695_v59 }
0x1a20   : > { %10368 = vmatprep.subr.mxu0 %v11672_v8 }
0x1a22   : > { %10361 = vmatmul.mubr.msk.f32.vlgmr.msra.gmra.mrb[38].mxu0 %vm1314_vm4, %v12697_v60 }
0x1a23   : > { %4379 = vrot.lane.b32.xlu1 %v12697_v60, %s13415_s0  ;;  %10370 = vmatprep.mubr.msk.f32.mxu0 %vm11671_vm0, %v11672_v8 }
0x1a26   : > { %v12710_v63 = vpop.f32.mrb[38].mxu1 }
0x1a27   : > { %v10357_v0 = vpop.f32.mrb[39].mxu1  ;;  %10364 = vmatpush3.msra.mxu1 %v12710_v63 }
0x1a28   : > { %10373 = vmatprep.subr.mxu1 %v11672_v8 }
0x1a91   : > { %v4382_v2 = vpop.permute.xlu1 %4381 }
0x1a92   : > { %10369 = vmatpush3.xpose.msk.msra.mxu0 %vm1314_vm4, %v4382_v2 }
0x1a93   : > { %10378 = vmatprep.subr.mxu0 %v11672_v8 }
0x1a95   : > { %v4380_v3 = vpop.permute.xlu1 %4379 }
0x1a96   : > { %10371 = vmatmul.mubr.msk.f32.vlgmr.msra.gmra.mrb[40].mxu0 %vm1314_vm4, %v4380_v3 }
0x1a97   : > { %10380 = vmatprep.mubr.msk.f32.mxu0 %vm11671_vm0, %v11672_v8  ;;  %10379 = vmatpush3.msra.mxu0 %v3998_v29 }
0x1a98   : > { %10388 = vmatprep.subr.mxu0 %v11672_v8 }
0x1af5   : > { %v4291_v7 = vpop.f32.mrb[38].mxu0 }
0x1af6   : > { %v4292_v9 = vadd.f32 %v4291_v7, %v12721_v6  ;;  %v10362_v10 = vpop.f32.mrb[39].mxu0 }
0x1af7   : > { %v3864_v10 = vadd.f32 %v12693_v56, %v12591_v14 }
0x1af8   : > { %v4295_v11 = vsel %vm1314_vm4, %v4292_v9, -inf }
0x1af9   : > { %4296 = vmax.xlane.f32.xlu1 %v4295_v11 }
0x1b0a   : > { %4693 = vrot.lane.b32.xlu1 %v12695_v59, %s13416_s13 }
0x1b0e   : > { %4691 = vrot.lane.b32.xlu1 %v12697_v60, %s13416_s13 }
0x1b69   : > { %v4453_v12 = vpop.f32.mrb[40].mxu0 }
0x1b6a   : > { %v4454_v22 = vadd.f32 %v4453_v12, %v12721_v6  ;;  %v10372_v23 = vpop.f32.mrb[41].mxu0  ;;  %v3869_v12 = vsel %vm1099_vm3, %v3864_v10, 0.0 }
0x1b6c   : > { %v4457_v37 = vsel %vm1314_vm4, %v4454_v22, -inf }
0x1b6d   : > { %4458 = vmax.xlane.f32.xlu0 %v4457_v37 }
0x1b83   : > { %4467 = vrot.lane.b32.xlu0 %v12710_v63, %s13415_s0 }
0x1b86   : > { %v4297_v15 = vpop.xlane.xlu1 %4296 }
0x1b87   : > { %v4298_v16 = vsub.f32 %v4292_v9, %v4297_v15 }
0x1b89   : > { %v4299_v18 = vmul.f32 1.442695, %v4298_v16 }
0x1b8a   : > { %v4694_v30 = vpop.permute.xlu1 %4693 }
0x1b8b   : > { %11180 = vpow2.f32 %v4299_v18 }
0x1b8e   : > { %v4692_v31 = vpop.permute.xlu1 %4691 }
0x1b95   : > { %v11181_v19 = vpop.eup %11180 }
0x1b96   : > { %10366 = vmatmul.mubr.msk.f32.vlgmr.msra.gmra.mrb[40].mxu1 %vm1314_vm4, %v11181_v19  ;;  %v4301_v20 = vsel %vm1314_vm4, %v11181_v19, 0.0  ;;  %v4000_v19 = vld [vmem:[#allocation7 + $0x18] sm:$0xff] }
0x1b97   : > { %4302 = vadd.xlane.f32.xlu1 %v4301_v20  ;;  %10375 = vmatprep.mubr.msk.f32.mxu1 %vm11671_vm0, %v11672_v8 }
0x1bfa   : > { %v4459_v21 = vpop.xlane.xlu0 %4458 }
0x1bfb   : > { %v4460_v17 = vsub.f32 %v4454_v22, %v4459_v21 }
0x1bfd   : > { %v4461_v24 = vmul.f32 1.442695, %v4460_v17 }
0x1bfe   : > { %v4468_v25 = vpop.permute.xlu0 %4467 }
0x1bff   : > { %11182 = vpow2.f32 %v4461_v24  ;;  %10374 = vmatpush3.msra.mxu1 %v4468_v25 }
0x1c00   : > { %10383 = vmatprep.subr.mxu1 %v11672_v8 }
0x1c09   : > { %v11183_v27 = vpop.eup %11182 }
0x1c0a   : > { %10376 = vmatmul.mubr.msk.f32.vlgmr.msra.gmra.mrb[42].mxu1 %vm1314_vm4, %v11183_v27  ;;  %v4463_v28 = vsel %vm1314_vm4, %v11183_v27, 0.0 }
0x1c0b   : > { %4464 = vadd.xlane.f32.xlu0 %v4463_v28  ;;  %10384 = vmatpush3.msra.mxu1 %v3997_v26 }
0x1c0c   : > { %10385 = vmatprep.mubr.msk.f32.mxu1 %vm11671_vm0, %v11672_v8  ;;  %10393 = vmatprep.subr.mxu1 %v11672_v8 }
0x1c21   : > { %4778 = vrot.lane.b32.xlu0 %v12710_v63, %s13416_s13 }
0x1c24   : > { %v4303_v32 = vpop.xlane.xlu1 %4302 }
0x1c25   : > { %11184 = vrcp.f32 %v4303_v32 }
0x1c2f   : > { %v11185_v33 = vpop.eup %11184 }
0x1c69   : > { %v4373_v34 = vpop.f32.mrb[40].mxu1 }
0x1c6a   : > { %v4378_v35 = vmul.f32 %v11185_v33, %v4373_v34  ;;  %v10367_v36 = vpop.f32.mrb[41].mxu1 }
0x1c6b   : > { %v5203_v36 = vld [vmem:[#allocation10] sm:$0xff] }
0x1c6c   : > { %10386 = vmatmul.mubr.msk.f32.vlgmr.msra.gmra.mrb[44].mxu1 %vm1314_vm4, %v4378_v35 }
0x1c6d   : > { %10395 = vmatprep.mubr.msk.f32.mxu1 %vm11671_vm0, %v11672_v8 }
0x1c98   : > { %v4465_v38 = vpop.xlane.xlu0 %4464 }
0x1c99   : > { %11186 = vrcp.f32 %v4465_v38  ;;  %v5204_v38 = vld [vmem:[#allocation10 + $0x8] sm:$0xff] }
0x1c9c   : > { %v4779_v39 = vpop.permute.xlu0 %4778 }
0x1c9d   : > { %10394 = vmatpush3.msra.mxu1 %v4779_v39  ;;  %v10889_v39 = vpack.c.bf16 %v5204_v38, %v5203_v36 }
0x1c9e   : > { %10403 = vmatprep.subr.mxu1 %v11672_v8 }
0x1ca3   : > { %v11187_v40 = vpop.eup %11186 }
0x1cdd   : > { %v4539_v41 = vpop.f32.mrb[42].mxu1 }
0x1cde   : > { %v4544_v42 = vmul.f32 %v11187_v40, %v4539_v41  ;;  %v10377_v44 = vpop.f32.mrb[43].mxu1  ;;  %v5205_v40 = vld [vmem:[#allocation10 + $0x10] sm:$0xff]  ;;  %v5206_v41 = vld [vmem:[#allocation10 + $0x18] sm:$0xff] }
0x1ce0   : > { %10381 = vmatmul.mubr.msk.f32.vlgmr.msra.gmra.mrb[42].mxu0 %vm1314_vm4, %v4544_v42  ;;  %v10892_v42 = vpack.c.bf16 %v5206_v41, %v5205_v40  ;;  %v5211_v41 = vld [vmem:[#allocation13] sm:$0xff] }
0x1ce1   : > { %10389 = vmatpush3.xpose.msk.msra.mxu0 %vm1314_vm4, %v4694_v30  ;;  %10390 = vmatprep.mubr.msk.f32.mxu0 %vm11671_vm0, %v11672_v8 }
0x1ce2   : > { %10398 = vmatprep.subr.mxu0 %v11672_v8 }
0x1ce4   : > { %10391 = vmatmul.mubr.msk.f32.vlgmr.msra.gmra.mrb[44].mxu0 %vm1314_vm4, %v4692_v31 }
0x1ce5   : > { %10400 = vmatprep.mubr.msk.f32.mxu0 %vm11671_vm0, %v11672_v8 }
0x1d3f   : > { %v4687_v45 = vpop.f32.mrb[44].mxu1 }
0x1d40   : > { %v10387_v46 = vpop.f32.mrb[45].mxu1 }
0x1db3   : > { %v4614_v47 = vpop.f32.mrb[42].mxu0 }
0x1db4   : > { %v4688_v43 = vadd.f32 %v4687_v45, %v4614_v47  ;;  %v10382_v48 = vpop.f32.mrb[43].mxu0 }
0x1db7   : > { %v4765_v49 = vpop.f32.mrb[44].mxu0 }
0x1db8   : > { %v4766_v50 = vadd.f32 %v4765_v49, %v12721_v6  ;;  %v10392_v13 = vpop.f32.mrb[45].mxu0 }
0x1db9   : > { %v9607_v13 = vld [vmem:[#allocation2 + $0x3] ss:$0 sm:$0xff] }
0x1dba   : > { %v4769_v52 = vsel %vm1314_vm4, %v4766_v50, -inf }
0x1dbb   : > { %4770 = vmax.xlane.f32.xlu0 %v4769_v52 }
0x1dd1   : > { %4932 = vrot.lane.b32.xlu0 %v12695_v59, %s13408_s12 }
0x1dd5   : > { %4930 = vrot.lane.b32.xlu0 %v12697_v60, %s13408_s12  ;;  %v3999_v60 = vld [vmem:[#allocation7 + $0x10] sm:$0xff] }
0x1dd6   : > { %10399 = vmatpush3.msra.mxu0 %v3999_v60  ;;  %v5202_v60 = vld [vmem:[#allocation8 + $0x18] sm:$0xff] }
0x1dd7   : > { %10408 = vmatprep.subr.mxu0 %v11672_v8 }
0x1e48   : > { %v4771_v53 = vpop.xlane.xlu0 %4770 }
0x1e49   : > { %v4772_v54 = vsub.f32 %v4766_v50, %v4771_v53  ;;  %v9608_v53 = vld [vmem:[#allocation5 + $0x3] ss:$0 sm:$0xff] }
0x1e4b   : > { %v4773_v55 = vmul.f32 1.442695, %v4772_v54 }
0x1e4c   : > { %v4933_v57 = vpop.permute.xlu0 %4932 }
0x1e4d   : > { %11188 = vpow2.f32 %v4773_v55 }
0x1e50   : > { %v4931_v59 = vpop.permute.xlu0 %4930 }
0x1e57   : > { %v11189_v58 = vpop.eup %11188 }
0x1e58   : > { %10396 = vmatmul.mubr.msk.f32.vlgmr.msra.gmra.mrb[46].mxu1 %vm1314_vm4, %v11189_v58  ;;  %v4775_v61 = vsel %vm1314_vm4, %v11189_v58, 0.0  ;;  %v5200_v58 = vld [vmem:[#allocation8 + $0x8] sm:$0xff] }
0x1e59   : > { %10404 = vmatpush3.xpose.msk.msra.mxu1 %vm1314_vm4, %v4933_v57  ;;  %4776 = vadd.xlane.f32.xlu1 %v4775_v61  ;;  %v5199_v57 = vld [vmem:[#allocation8] sm:$0xff] }
0x1e5a   : > { %10405 = vmatprep.mubr.msk.f32.mxu1 %vm11671_vm0, %v11672_v8  ;;  %10413 = vmatprep.subr.mxu1 %v11672_v8  ;;  %v10883_v61 = vpack.c.bf16 %v5200_v58, %v5199_v57 }
0x1e5c   : > { %10406 = vmatmul.mubr.msk.f32.vlgmr.msra.gmra.mrb[48].mxu1 %vm1314_vm4, %v4931_v59  ;;  %v5201_v59 = vld [vmem:[#allocation8 + $0x10] sm:$0xff] }
0x1e5d   : > { %10415 = vmatprep.mubr.msk.f32.mxu1 %vm11671_vm0, %v11672_v8  ;;  %10414 = vmatpush3.msra.mxu1 %v4000_v19 }
0x1e5e   : > { %10888 = vmatprep.subr.bf16.mxu1 %v11670_v1 }
0x1e6a   : > { %5017 = vrot.lane.b32.xlu1 %v12710_v63, %s13408_s12 }
0x1ee6   : > { %v4777_v62 = vpop.xlane.xlu1 %4776 }
0x1ee7   : > { %11190 = vrcp.f32 %v4777_v62  ;;  %v10886_v62 = vpack.c.bf16 %v5202_v60, %v5201_v59 }
0x1eea   : > { %v5018_v5 = vpop.permute.xlu1 %5017 }
0x1ef1   : > { %v11191_v0 = vpop.eup %11190 }
0x1f2b   : > { %v4850_v2 = vpop.f32.mrb[46].mxu1 }
0x1f2c   : > { %v4855_v3 = vmul.f32 %v11191_v0, %v4850_v2  ;;  %v10397_v4 = vpop.f32.mrb[47].mxu1 }
0x1f2e   : > { %10401 = vmatmul.mubr.msk.f32.vlgmr.msra.gmra.mrb[46].mxu0 %vm1314_vm4, %v4855_v3 }
0x1f2f   : > { %10409 = vmatpush3.msra.mxu0 %v5018_v5  ;;  %v5004_v7 = vpop.f32.mrb[48].mxu1  ;;  %10410 = vmatprep.mubr.msk.f32.mxu0 %vm11671_vm0, %v11672_v8  ;;  %v9630_v5 = vld [vmem:[#allocation16] ss:$0 sm:$0xff] }
0x1f30   : > { %v5005_v63 = vadd.f32 %v5004_v7, %v12721_v6  ;;  %v10407_v9 = vpop.f32.mrb[49].mxu1  ;;  %10882 = vmatprep.subr.bf16.mxu0 %v11670_v1 }
0x1f31   : > { %v5208_v9 = vld [vmem:[#allocation11 + $0x8] sm:$0xff] }
0x1f32   : > { %v5008_v11 = vsel %vm1314_vm4, %v5005_v63, -inf }
0x1f33   : > { %5009 = vmax.xlane.f32.xlu0 %v5008_v11 }
0x1f37   : > { %3870 = vadd.xlane.f32.xlu0 %v3869_v12 }
0x1fc0   : > { %v5010_v22 = vpop.xlane.xlu0 %5009 }
0x1fc1   : > { %v5011_v23 = vsub.f32 %v5005_v63, %v5010_v22  ;;  %v5207_v63 = vld [vmem:[#allocation11] sm:$0xff] }
0x1fc2   : > { %v10895_v12 = vpack.c.bf16 %v5208_v9, %v5207_v63 }
0x1fc3   : > { %v5012_v37 = vmul.f32 1.442695, %v5011_v23  ;;  %v5209_v23 = vld [vmem:[#allocation11 + $0x10] sm:$0xff] }
0x1fc4   : > { %v3871_v26 = vpop.xlane.xlu0 %3870 }
0x1fc5   : > { %11192 = vpow2.f32 %v5012_v37  ;;  %v3872_v27 = vmul.f32 0.03125, %v3871_v26  ;;  %v5210_v37 = vld [vmem:[#allocation11 + $0x18] sm:$0xff] }
0x1fc7   : > { %v3873_v29 = vsub.f32 %v3864_v10, %v3872_v27  ;;  %v9631_v10 = vld [vmem:[#allocation17] ss:$0 sm:$0xff] }
0x1fc9   : > { %v3874_v34 = vmul.f32 %v3873_v29, %v3873_v29 }
0x1fcb   : > { %v3875_v35 = vsel %vm1099_vm3, %v3874_v34, 0.0 }
0x1fcf   : > { %v11193_v15 = vpop.eup %11192 }
0x1fd0   : > { %10411 = vmatmul.mubr.msk.f32.vlgmr.msra.gmra.mrb[48].mxu0 %vm1314_vm4, %v11193_v15  ;;  %v5014_v16 = vsel %vm1314_vm4, %v11193_v15, 0.0  ;;  %v10898_v15 = vpack.c.bf16 %v5210_v37, %v5209_v23  ;;  %v5213_v23 = vld [vmem:[#allocation13 + $0x10] sm:$0xff] }
0x1fd1   : > { %5015 = vadd.xlane.f32.xlu1 %v5014_v16  ;;  %10426 = vmatprep.mubr.msk.f32.mxu0 %vm11671_vm0, %v11672_v8 }
0x1fd2   : > { %10884 = vmatpush3.bf16.msra.mxu0 %v10883_v61 }
0x1fd3   : > { %10885 = vmatprep.subr.bf16.mxu0 %v11670_v1 }
0x1fd6   : > { %10887 = vmatpush3.bf16.msra.mxu0 %v10886_v62 }
0x1fd7   : > { %10894 = vmatprep.subr.bf16.mxu0 %v11670_v1 }
0x2001   : > { %v4925_v14 = vpop.f32.mrb[46].mxu0 }
0x2002   : > { %v4929_v56 = vadd.f32 %v4925_v14, %v4688_v43  ;;  %v10402_v18 = vpop.f32.mrb[47].mxu0 }
0x205e   : > { %v5016_v20 = vpop.xlane.xlu1 %5015 }
0x205f   : > { %11194 = vrcp.f32 %v5016_v20 }
0x2069   : > { %v11195_v21 = vpop.eup %11194 }
0x20a3   : > { %v5089_v17 = vpop.f32.mrb[48].mxu0 }
0x20a4   : > { %v5094_v24 = vmul.f32 %v11195_v21, %v5089_v17  ;;  %v10412_v25 = vpop.f32.mrb[49].mxu0 }
0x20a6   : > { %10416 = vmatmul.mubr.msk.f32.vlgmr.msra.gmra.mrb[50].mxu1 %vm1314_vm4, %v5094_v24 }
0x20a7   : > { %10437 = vmatprep.mubr.msk.f32.mxu1 %vm11671_vm0, %v11672_v8  ;;  %10890 = vmatpush3.bf16.msra.mxu1 %v10889_v39 }
0x20a8   : > { %10891 = vmatprep.subr.bf16.mxu1 %v11670_v1 }
0x20ab   : > { %10893 = vmatpush3.bf16.msra.mxu1 %v10892_v42 }
0x20ac   : > { %10451 = vmatprep.subr.mxu1 %v11672_v8 }
0x2179   : > { %v5164_v28 = vpop.f32.mrb[50].mxu1 }
0x217a   : > { %v5168_v30 = vadd.f32 %v5164_v28, %v4929_v56  ;;  %v10417_v31 = vpop.f32.mrb[51].mxu1 }
0x217c   : > { %v5169_v32 = vadd.f32 %v5168_v30, %v12671_v51 }
0x217e   : > { %v5172_v33 = vsel %vm1099_vm3, %v5169_v32, 0.0 }
0x217f   : > { %5173 = vadd.xlane.f32.xlu0 %v5172_v33 }
0x2183   : > { %3876 = vadd.xlane.f32.xlu0 %v3875_v35 }
0x220c   : > { %v5174_v51 = vpop.xlane.xlu0 %5173 }
0x220d   : > { %v5175_v44 = vmul.f32 0.03125, %v5174_v51 }
0x220f   : > { %v5176_v45 = vsub.f32 %v5169_v32, %v5175_v44  ;;  %v5212_v44 = vld [vmem:[#allocation13 + $0x8] sm:$0xff] }
0x2210   : > { %v3877_v46 = vpop.xlane.xlu0 %3876 }
0x2211   : > { %v3878_v47 = vmul.f32 0.03125, %v3877_v46  ;;  %v5177_v43 = vmul.f32 %v5176_v45, %v5176_v45 }
0x2213   : > { %v3879_v48 = vadd.f32 1e-05, %v3878_v47  ;;  %v5178_v49 = vsel %vm1099_vm3, %v5177_v43, 0.0 }
0x2214   : > { %5179 = vadd.xlane.f32.xlu0 %v5178_v49 }
0x2215   : > { %11196 = vrsqrt.f32 %v3879_v48 }
0x221f   : > { %v11197_v50 = vpop.eup %11196 }
0x2220   : > { %v3881_v52 = vmul.f32 %v11197_v50, %v3873_v29 }
0x2222   : > { %v3888_v54 = vmul.f32 %v9607_v13, %v3881_v52 }
0x2224   : > { %v12799_v55 = vadd.f32 %v9608_v53, %v3888_v54 }
0x2226   : > { %10438 = vmatmul.mubr.msk.f32.vlgmr.msra.gmra.mrb[52].mxu1 %vm1099_vm3, %v12799_v55 }
0x2227   : > { %10453 = vmatprep.mubr.msk.f32.mxu1 %vm11671_vm0, %v11672_v8 }
0x22a1   : > { %v5180_v0 = vpop.xlane.xlu0 %5179 }
0x22a2   : > { %v5181_v2 = vmul.f32 0.03125, %v5180_v0 }
0x22a4   : > { %v5182_v3 = vadd.f32 1e-05, %v5181_v2 }
0x22a6   : > { %11198 = vrsqrt.f32 %v5182_v3 }
0x22b0   : > { %v11199_v4 = vpop.eup %11198 }
0x22b1   : > { %v5184_v7 = vmul.f32 %v11199_v4, %v5176_v45 }
0x22b3   : > { %v5191_v11 = vmul.f32 %v9630_v5, %v5184_v7 }
0x22b5   : > { %v12807_v22 = vadd.f32 %v9631_v10, %v5191_v11 }
0x22b7   : > { %10427 = vmatmul.mubr.msk.f32.vlgmr.msra.gmra.mrb[50].mxu0 %vm1099_vm3, %v12807_v22 }
0x22b8   : > { %10896 = vmatpush3.bf16.msra.mxu0 %v10895_v12  ;;  %10448 = vmatprep.mubr.msk.f32.mxu0 %vm11671_vm0, %v11672_v8 }
0x22b9   : > { %10897 = vmatprep.subr.bf16.mxu0 %v11670_v1 }
0x22bc   : > { %10899 = vmatpush3.bf16.msra.mxu0 %v10898_v15 }
0x22bd   : > { %10461 = vmatprep.subr.mxu0 %v11672_v8 }
0x22bf   : > { %10449 = vmatmul.mubr.msk.f32.vlgmr.msra.gmra.mrb[52].mxu0 %vm1099_vm3, %v12799_v55 }
0x22c0   : > { %10463 = vmatprep.mubr.msk.f32.mxu0 %vm11671_vm0, %v11672_v8 }
0x22f9   : > { %v12819_v16 = vpop.f32.mrb[52].mxu1 }
0x22fa   : > { %5594 = vrot.lane.b32.xlu0 %v12819_v16, %s13415_s0  ;;  %v10439_v14 = vpop.f32.mrb[53].mxu1  ;;  %10452 = vmatpush3.xpose.msk.msra.mxu1 %vm1314_vm4, %v12819_v16 }
0x22fb   : > { %10456 = vmatprep.subr.mxu1 %v11672_v8 }
0x236c   : > { %v5595_v56 = vpop.permute.xlu0 %5594 }
0x236d   : > { %10462 = vmatpush3.xpose.msk.msra.mxu0 %vm1314_vm4, %v5595_v56 }
0x236e   : > { %10471 = vmatprep.subr.mxu0 %v11672_v8 }
0x238a   : > { %v5284_v18 = vpop.f32.mrb[50].mxu0 }
0x238b   : > { %v5288_v19 = vmul.f32 0.35355338, %v5284_v18  ;;  %v10428_v20 = vpop.f32.mrb[51].mxu0 }
0x238d   : > { %5592 = vrot.lane.b32.xlu1 %v5288_v19, %s13415_s0  ;;  %10454 = vmatmul.mubr.msk.f32.vlgmr.msra.gmra.mrb[54].mxu1 %vm1314_vm4, %v5288_v19 }
0x238e   : > { %10458 = vmatprep.mubr.msk.f32.mxu1 %vm11671_vm0, %v11672_v8 }
0x2392   : > { %v12832_v21 = vpop.f32.mrb[52].mxu0 }
0x2393   : > { %v10450_v17 = vpop.f32.mrb[53].mxu0  ;;  %10457 = vmatpush3.msra.mxu1 %v12832_v21 }
0x2394   : > { %10466 = vmatprep.subr.mxu1 %v11672_v8 }
0x23ff   : > { %v5593_v24 = vpop.permute.xlu1 %5592 }
0x2400   : > { %10464 = vmatmul.mubr.msk.f32.vlgmr.msra.gmra.mrb[54].mxu0 %vm1314_vm4, %v5593_v24 }
0x2401   : > { %10473 = vmatprep.mubr.msk.f32.mxu0 %vm11671_vm0, %v11672_v8  ;;  %10472 = vmatpush3.msra.mxu0 %v5212_v44 }
0x2402   : > { %10481 = vmatprep.subr.mxu0 %v11672_v8 }
0x2460   : > { %v5504_v25 = vpop.f32.mrb[54].mxu1 }
0x2461   : > { %v10455_v26 = vpop.f32.mrb[55].mxu1  ;;  %v5508_v27 = vsel %vm1314_vm4, %v5504_v25, -inf }
0x2462   : > { %5509 = vmax.xlane.f32.xlu0 %v5508_v27 }
0x2478   : > { %5680 = vrot.lane.b32.xlu0 %v12832_v21, %s13415_s0 }
0x247c   : > { %5904 = vrot.lane.b32.xlu0 %v5288_v19, %s13416_s13 }
0x24d3   : > { %v5666_v28 = vpop.f32.mrb[54].mxu0 }
0x24d4   : > { %v10465_v29 = vpop.f32.mrb[55].mxu0  ;;  %v5670_v30 = vsel %vm1314_vm4, %v5666_v28, -inf }
0x24d5   : > { %5671 = vmax.xlane.f32.xlu1 %v5670_v30 }
0x24ef   : > { %v5510_v31 = vpop.xlane.xlu0 %5509 }
0x24f0   : > { %v5511_v32 = vsub.f32 %v5504_v25, %v5510_v31  ;;  %v5214_v31 = vld [vmem:[#allocation13 + $0x18] sm:$0xff] }
0x24f2   : > { %v5512_v33 = vmul.f32 1.442695, %v5511_v32 }
0x24f3   : > { %v5681_v35 = vpop.permute.xlu0 %5680 }
0x24f4   : > { %11200 = vpow2.f32 %v5512_v33 }
0x24f7   : > { %v5905_v45 = vpop.permute.xlu0 %5904 }
0x24fe   : > { %v11201_v34 = vpop.eup %11200 }
0x24ff   : > { %10459 = vmatmul.mubr.msk.f32.vlgmr.msra.gmra.mrb[56].mxu1 %vm1314_vm4, %v11201_v34  ;;  %v5514_v36 = vsel %vm1314_vm4, %v11201_v34, 0.0 }
0x2500   : > { %10467 = vmatpush3.msra.mxu1 %v5681_v35  ;;  %5515 = vadd.xlane.f32.xlu0 %v5514_v36 }
0x2501   : > { %10468 = vmatprep.mubr.msk.f32.mxu1 %vm11671_vm0, %v11672_v8  ;;  %10476 = vmatprep.subr.mxu1 %v11672_v8 }
0x2516   : > { %5991 = vrot.lane.b32.xlu0 %v12832_v21, %s13416_s13 }
0x251a   : > { %6143 = vrot.lane.b32.xlu0 %v5288_v19, %s13408_s12 }
0x2562   : > { %v5672_v38 = vpop.xlane.xlu1 %5671 }
0x2563   : > { %v5673_v39 = vsub.f32 %v5666_v28, %v5672_v38 }
0x2565   : > { %v5674_v40 = vmul.f32 1.442695, %v5673_v39 }
0x2567   : > { %11202 = vpow2.f32 %v5674_v40 }
0x2571   : > { %v11203_v42 = vpop.eup %11202 }
0x2572   : > { %10469 = vmatmul.mubr.msk.f32.vlgmr.msra.gmra.mrb[58].mxu1 %vm1314_vm4, %v11203_v42  ;;  %v5676_v51 = vsel %vm1314_vm4, %v11203_v42, 0.0 }
0x2573   : > { %5677 = vadd.xlane.f32.xlu1 %v5676_v51  ;;  %10477 = vmatpush3.msra.mxu1 %v5211_v41 }
0x2574   : > { %10478 = vmatprep.mubr.msk.f32.mxu1 %vm11671_vm0, %v11672_v8  ;;  %10486 = vmatprep.subr.mxu1 %v11672_v8 }
0x2584   : > { %5906 = vrot.lane.b32.xlu1 %v12819_v16, %s13416_s13 }
0x258d   : > { %v5516_v46 = vpop.xlane.xlu0 %5515 }
0x258e   : > { %11204 = vrcp.f32 %v5516_v46 }
0x2591   : > { %v5992_v50 = vpop.permute.xlu0 %5991 }
0x2595   : > { %v6144_v12 = vpop.permute.xlu0 %6143 }
0x2598   : > { %v11205_v47 = vpop.eup %11204 }
0x25d2   : > { %v5586_v43 = vpop.f32.mrb[56].mxu1 }
0x25d3   : > { %v5591_v48 = vmul.f32 %v11205_v47, %v5586_v43  ;;  %v10460_v49 = vpop.f32.mrb[57].mxu1  ;;  %v6414_v43 = vld [vmem:[#allocation14] sm:$0xff] }
0x25d5   : > { %10479 = vmatmul.mubr.msk.f32.vlgmr.msra.gmra.mrb[60].mxu1 %vm1314_vm4, %v5591_v48  ;;  %v6415_v48 = vld [vmem:[#allocation14 + $0x8] sm:$0xff] }
0x25d6   : > { %10487 = vmatpush3.msra.mxu1 %v5992_v50  ;;  %10488 = vmatprep.mubr.msk.f32.mxu1 %vm11671_vm0, %v11672_v8  ;;  %v10901_v49 = vpack.c.bf16 %v6415_v48, %v6414_v43  ;;  %v6416_v50 = vld [vmem:[#allocation14 + $0x10] sm:$0xff] }
0x25d7   : > { %10496 = vmatprep.subr.mxu1 %v11672_v8 }
0x2600   : > { %v5678_v13 = vpop.xlane.xlu1 %5677 }
0x2601   : > { %11206 = vrcp.f32 %v5678_v13  ;;  %v6417_v13 = vld [vmem:[#allocation14 + $0x18] sm:$0xff] }
0x2604   : > { %v5907_v58 = vpop.permute.xlu1 %5906 }
0x260b   : > { %v11207_v52 = vpop.eup %11206 }
0x2645   : > { %v5752_v53 = vpop.f32.mrb[58].mxu1 }
0x2646   : > { %v5757_v54 = vmul.f32 %v11207_v52, %v5752_v53  ;;  %v10470_v57 = vpop.f32.mrb[59].mxu1  ;;  %v10904_v52 = vpack.c.bf16 %v6417_v13, %v6416_v50  ;;  %v6419_v53 = vld [vmem:[%s13418_s23 + $0x8] sm:$0xff]  ;;  %v9663_v50 = vld [vmem:[%s13289_s15 + $0x30] sm:$0xff]  ;;  %v9664_v13 = vld [vmem:[%s13289_s15 + $0x38] sm:$0xff] }
0x2648   : > { %10474 = vmatmul.mubr.msk.f32.vlgmr.msra.gmra.mrb[56].mxu0 %vm1314_vm4, %v5757_v54  ;;  %v6420_v54 = vld [vmem:[%s13418_s23 + $0x10] sm:$0xff] }
0x2649   : > { %10482 = vmatpush3.xpose.msk.msra.mxu0 %vm1314_vm4, %v5907_v58  ;;  %10483 = vmatprep.mubr.msk.f32.mxu0 %vm11671_vm0, %v11672_v8  ;;  %v6421_v58 = vld [vmem:[%s13418_s23 + $0x18] sm:$0xff] }
0x264a   : > { %10491 = vmatprep.subr.mxu0 %v11672_v8 }
0x264c   : > { %10484 = vmatmul.mubr.msk.f32.vlgmr.msra.gmra.mrb[58].mxu0 %vm1314_vm4, %v5905_v45 }
0x264d   : > { %10493 = vmatprep.mubr.msk.f32.mxu0 %vm11671_vm0, %v11672_v8  ;;  %10492 = vmatpush3.msra.mxu0 %v5213_v23 }
0x264e   : > { %10501 = vmatprep.subr.mxu0 %v11672_v8 }
0x26a8   : > { %v5900_v61 = vpop.f32.mrb[60].mxu1 }
0x26a9   : > { %v10480_v59 = vpop.f32.mrb[61].mxu1 }
0x26aa   : > { %v6422_v59 = vld [vmem:[%s13418_s23 + $0x20] sm:$0xff] }
0x271b   : > { %v5827_v60 = vpop.f32.mrb[56].mxu0 }
0x271c   : > { %v5901_v62 = vadd.f32 %v5900_v61, %v5827_v60  ;;  %v10475_v0 = vpop.f32.mrb[57].mxu0  ;;  %v10910_v61 = vpack.c.bf16 %v6421_v58, %v6420_v54  ;;  %v6423_v60 = vld [vmem:[%s13418_s23 + $0x28] sm:$0xff] }
0x271f   : > { %v5978_v2 = vpop.f32.mrb[58].mxu0 }
0x2720   : > { %v10485_v3 = vpop.f32.mrb[59].mxu0  ;;  %v5982_v4 = vsel %vm1314_vm4, %v5978_v2, -inf }
0x2721   : > { %5983 = vmax.xlane.f32.xlu1 %v5982_v4 }
0x2732   : > { %6145 = vrot.lane.b32.xlu1 %v12819_v16, %s13408_s12 }
0x27ae   : > { %v5984_v5 = vpop.xlane.xlu1 %5983 }
0x27af   : > { %v5985_v7 = vsub.f32 %v5978_v2, %v5984_v5  ;;  %v9651_v5 = vld [vmem:[#allocation16 + $0x1] ss:$0 sm:$0xff] }
0x27b1   : > { %v5986_v63 = vmul.f32 1.442695, %v5985_v7 }
0x27b2   : > { %v6146_v10 = vpop.permute.xlu1 %6145 }
0x27b3   : > { %11208 = vpow2.f32 %v5986_v63  ;;  %v9652_v63 = vld [vmem:[#allocation17 + $0x1] ss:$0 sm:$0xff] }
0x27bd   : > { %v11209_v9 = vpop.eup %11208 }
0x27be   : > { %10489 = vmatmul.mubr.msk.f32.vlgmr.msra.gmra.mrb[62].mxu1 %vm1314_vm4, %v11209_v9  ;;  %v5988_v11 = vsel %vm1314_vm4, %v11209_v9, 0.0 }
0x27bf   : > { %10497 = vmatpush3.xpose.msk.msra.mxu1 %vm1314_vm4, %v6146_v10  ;;  %5989 = vadd.xlane.f32.xlu0 %v5988_v11  ;;  %v6424_v11 = vld [vmem:[%s13418_s23 + $0x30] sm:$0xff] }
0x27c0   : > { %10498 = vmatprep.mubr.msk.f32.mxu1 %vm11671_vm0, %v11672_v8  ;;  %10506 = vmatprep.subr.mxu1 %v11672_v8 }
0x27c2   : > { %10499 = vmatmul.mubr.msk.f32.vlgmr.msra.gmra.mrb[64].mxu1 %vm1314_vm4, %v6144_v12  ;;  %v6425_v12 = vld [vmem:[%s13418_s23 + $0x38] sm:$0xff] }
0x27c3   : > { %10508 = vmatprep.mubr.msk.f32.mxu1 %vm11671_vm0, %v11672_v8  ;;  %10507 = vmatpush3.msra.mxu1 %v5214_v31  ;;  %v10916_v23 = vpack.c.bf16 %v6425_v12, %v6424_v11 }
0x27c4   : > { %10906 = vmatprep.subr.bf16.mxu1 %v11670_v1 }
0x27d5   : > { %6230 = vrot.lane.b32.xlu0 %v12832_v21, %s13408_s12 }
0x284c   : > { %v5990_v37 = vpop.xlane.xlu0 %5989 }
0x284d   : > { %11210 = vrcp.f32 %v5990_v37 }
0x2850   : > { %v6231_v18 = vpop.permute.xlu0 %6230 }
0x2857   : > { %v11211_v15 = vpop.eup %11210 }
0x2891   : > { %v6063_v16 = vpop.f32.mrb[62].mxu1 }
0x2892   : > { %v6068_v14 = vmul.f32 %v11211_v15, %v6063_v16  ;;  %v10490_v56 = vpop.f32.mrb[63].mxu1 }
0x2894   : > { %10494 = vmatmul.mubr.msk.f32.vlgmr.msra.gmra.mrb[60].mxu0 %vm1314_vm4, %v6068_v14 }
0x2895   : > { %10502 = vmatpush3.msra.mxu0 %v6231_v18  ;;  %v6217_v19 = vpop.f32.mrb[64].mxu1  ;;  %10503 = vmatprep.mubr.msk.f32.mxu0 %vm11671_vm0, %v11672_v8 }
0x2896   : > { %v10500_v20 = vpop.f32.mrb[65].mxu1  ;;  %v6221_v21 = vsel %vm1314_vm4, %v6217_v19, -inf  ;;  %10900 = vmatprep.subr.bf16.mxu0 %v11670_v1 }
0x2897   : > { %6222 = vmax.xlane.f32.xlu1 %v6221_v21 }
0x2924   : > { %v6223_v17 = vpop.xlane.xlu1 %6222 }
0x2925   : > { %v6224_v24 = vsub.f32 %v6217_v19, %v6223_v17 }
0x2927   : > { %v6225_v25 = vmul.f32 1.442695, %v6224_v24 }
0x2929   : > { %11212 = vpow2.f32 %v6225_v25 }
0x2933   : > { %v11213_v26 = vpop.eup %11212 }
0x2934   : > { %10504 = vmatmul.mubr.msk.f32.vlgmr.msra.gmra.mrb[62].mxu0 %vm1314_vm4, %v11213_v26  ;;  %v6227_v27 = vsel %vm1314_vm4, %v11213_v26, 0.0  ;;  %v9657_v26 = vld [vmem:[%s13412_s11 + $0x20] sm:$0xff] }
0x2935   : > { %6228 = vadd.xlane.f32.xlu1 %v6227_v27  ;;  %10519 = vmatprep.mubr.msk.f32.mxu0 %vm11671_vm0, %v11672_v8  ;;  %v9658_v27 = vld [vmem:[%s13412_s11 + $0x28] sm:$0xff] }
0x2936   : > { %10902 = vmatpush3.bf16.msra.mxu0 %v10901_v49 }
0x2937   : > { %10903 = vmatprep.subr.bf16.mxu0 %v11670_v1 }
0x293a   : > { %10905 = vmatpush3.bf16.msra.mxu0 %v10904_v52  ;;  %v10928_v52 = vpack.c.bf16 %v9664_v13, %v9663_v50 }
0x293b   : > { %10918 = vmatprep.subr.bf16.mxu0 %v11670_v1 }
0x2967   : > { %v6138_v28 = vpop.f32.mrb[60].mxu0 }
0x2968   : > { %v6142_v29 = vadd.f32 %v6138_v28, %v5901_v62  ;;  %v10495_v30 = vpop.f32.mrb[61].mxu0  ;;  %v10913_v62 = vpack.c.bf16 %v6423_v60, %v6422_v59  ;;  %v10919_v28 = vpack.c.bf16 %v9658_v27, %v9657_v26 }
0x2969   : > { %v9666_v30 = vld [vmem:[%s13413_s28 + $0x28] sm:$0xff] }
0x29c2   : > { %v6229_v32 = vpop.xlane.xlu1 %6228 }
0x29c3   : > { %11214 = vrcp.f32 %v6229_v32  ;;  %v9659_v32 = vld [vmem:[%s13412_s11 + $0x30] sm:$0xff] }
0x29cd   : > { %v11215_v33 = vpop.eup %11214 }
0x2a07   : > { %v6302_v34 = vpop.f32.mrb[62].mxu0 }
0x2a08   : > { %v6307_v35 = vmul.f32 %v11215_v33, %v6302_v34  ;;  %v10505_v36 = vpop.f32.mrb[63].mxu0  ;;  %v9660_v33 = vld [vmem:[%s13412_s11 + $0x38] sm:$0xff]  ;;  %v9667_v34 = vld [vmem:[%s13413_s28 + $0x30] sm:$0xff] }
0x2a09   : > { %v9668_v36 = vld [vmem:[%s13413_s28 + $0x38] sm:$0xff] }
0x2a0a   : > { %10509 = vmatmul.mubr.msk.f32.vlgmr.msra.gmra.mrb[66].mxu1 %vm1314_vm4, %v6307_v35  ;;  %v10922_v35 = vpack.c.bf16 %v9660_v33, %v9659_v32 }
0x2a0b   : > { %10538 = vmatprep.mubr.msk.f32.mxu1 %vm11671_vm0, %v11672_v8 }
0x2add   : > { %v6377_v38 = vpop.f32.mrb[66].mxu1 }
0x2ade   : > { %v6381_v39 = vadd.f32 %v6377_v38, %v6142_v29  ;;  %v10510_v40 = vpop.f32.mrb[67].mxu1  ;;  %v9665_v29 = vld [vmem:[%s13413_s28 + $0x20] sm:$0xff]  ;;  %v10934_v38 = vpack.c.bf16 %v9668_v36, %v9667_v34 }
0x2adf   : > { %v10931_v31 = vpack.c.bf16 %v9666_v30, %v9665_v29 }
0x2ae0   : > { %v6382_v41 = vadd.f32 %v6381_v39, %v12807_v22  ;;  %v6418_v22 = vld [vmem:[%s13417_s4] sm:$0xff]  ;;  %s13420_s4 = sld [smem:[#allocation34_spill]] }
0x2ae1   : > { %v10907_v57 = vpack.c.bf16 %v6419_v53, %v6418_v22 }
0x2ae2   : > { %v6387_v42 = vsel %vm1099_vm3, %v6382_v41, 0.0 }
0x2ae3   : > { %6388 = vadd.xlane.f32.xlu1 %v6387_v42  ;;  %10908 = vmatpush3.bf16.msra.mxu1 %v10907_v57 }
0x2ae4   : > { %10909 = vmatprep.subr.bf16.mxu1 %v11670_v1 }
0x2ae6   : > { %p13422_p0 = scmp.ne.s32.totalorder %s13420_s4, 0 }
0x2ae7   : > { %10911 = vmatpush3.bf16.msra.mxu1 %v10910_v61 }
0x2ae8   : > { %10912 = vmatprep.subr.bf16.mxu1 %v11670_v1 }
0x2aeb   : > { %10914 = vmatpush3.bf16.msra.mxu1 %v10913_v62 }
0x2aec   : > { %10915 = vmatprep.subr.bf16.mxu1 %v11670_v1 }
0x2aef   : > { %10917 = vmatpush3.bf16.msra.mxu1 %v10916_v23 }
0x2af0   : > { %10930 = vmatprep.subr.bf16.mxu1 %v11670_v1 }
0x2b70   : > { %v6389_v51 = vpop.xlane.xlu1 %6388 }
0x2b71   : > { %v6390_v44 = vmul.f32 0.03125, %v6389_v51  ;;  %v9655_v51 = vld [vmem:[#allocation16 + $0x2] ss:$0 sm:$0xff] }
0x2b73   : > { %v6391_v45 = vsub.f32 %v6382_v41, %v6390_v44 }
0x2b75   : > { %v6392_v46 = vmul.f32 %v6391_v45, %v6391_v45 }
0x2b77   : > { %v6393_v47 = vsel %vm1099_vm3, %v6392_v46, 0.0  ;;  %v9662_v46 = vld [vmem:[%s13289_s15 + $0x28] sm:$0xff] }
0x2b78   : > { %6394 = vadd.xlane.f32.xlu1 %v6393_v47  ;;  %v9656_v47 = vld [vmem:[#allocation17 + $0x2] ss:$0 sm:$0xff] }
0x2c05   : > { %v6395_v0 = vpop.xlane.xlu1 %6394 }
0x2c06   : > { %v6396_v2 = vmul.f32 0.03125, %v6395_v0 }
0x2c08   : > { %v6397_v3 = vadd.f32 1e-05, %v6396_v2 }
0x2c0a   : > { %11216 = vrsqrt.f32 %v6397_v3 }
0x2c14   : > { %v11217_v4 = vpop.eup %11216 }
0x2c15   : > { %v6399_v7 = vmul.f32 %v11217_v4, %v6391_v45  ;;  %v9661_v45 = vld [vmem:[%s13289_s15 + $0x20] sm:$0xff] }
0x2c16   : > { %v10925_v48 = vpack.c.bf16 %v9662_v46, %v9661_v45 }
0x2c17   : > { %v6406_v9 = vmul.f32 %v9651_v5, %v6399_v7 }
0x2c19   : > { %v6413_v10 = vadd.f32 %v9652_v63, %v6406_v9 }
0x2c1b   : > { %10520 = vmatmul.mubr.msk.f32.vlgmr.msra.gmra.mrb[64].mxu0 %vm1099_vm3, %v6413_v10 }
0x2c1c   : > { %10549 = vmatprep.mubr.msk.f32.mxu0 %vm11671_vm0, %v11672_v8  ;;  %10920 = vmatpush3.bf16.msra.mxu0 %v10919_v28 }
0x2c1d   : > { %10921 = vmatprep.subr.bf16.mxu0 %v11670_v1 }
0x2c20   : > { %10923 = vmatpush3.bf16.msra.mxu0 %v10922_v35 }
0x2c21   : > { %10924 = vmatprep.subr.bf16.mxu0 %v11670_v1 }
0x2cee   : > { %v6495_v37 = vpop.f32.mrb[64].mxu0 }
0x2cef   : > { %v6499_v15 = vmax.f32 %v6495_v37, 0.0  ;;  %v10521_v16 = vpop.f32.mrb[65].mxu0 }
0x2cf1   : > { %10539 = vmatmul.mubr.msk.f32.vlgmr.msra.gmra.mrb[68].mxu1 %vm1009_vm1, %v6499_v15 }
0x2cf2   : > { %10571 = vmatprep.mubr.msk.f32.mxu1 %vm11671_vm0, %v11672_v8  ;;  %10932 = vmatpush3.bf16.msra.mxu1 %v10931_v31 }
0x2cf3   : > { %10933 = vmatprep.subr.bf16.mxu1 %v11670_v1 }
0x2cf6   : > { %10935 = vmatpush3.bf16.msra.mxu1 %v10934_v38 }
0x2cf7   : > { %10579 = vmatprep.subr.mxu1 %v11672_v8 }
0x2dc4   : > { %v6569_v14 = vpop.f32.mrb[68].mxu1 }
0x2dc5   : > { %v6573_v56 = vadd.f32 %v6569_v14, %v6413_v10  ;;  %v10540_v18 = vpop.f32.mrb[69].mxu1 }
0x2dc6   : > { %v6621_v18 = vld [vmem:[#allocation7 + $0x20] sm:$0xff] }
0x2dc7   : > { %v6578_v19 = vsel %vm1099_vm3, %v6573_v56, 0.0 }
0x2dc8   : > { %6579 = vadd.xlane.f32.xlu1 %v6578_v19 }
0x2e55   : > { %v6580_v20 = vpop.xlane.xlu1 %6579 }
0x2e56   : > { %v6581_v21 = vmul.f32 0.03125, %v6580_v20 }
0x2e58   : > { %v6582_v17 = vsub.f32 %v6573_v56, %v6581_v21  ;;  %v6622_v21 = vld [vmem:[#allocation7 + $0x28] sm:$0xff] }
0x2e5a   : > { %v6583_v24 = vmul.f32 %v6582_v17, %v6582_v17 }
0x2e5c   : > { %v6584_v25 = vsel %vm1099_vm3, %v6583_v24, 0.0 }
0x2e5d   : > { %6585 = vadd.xlane.f32.xlu1 %v6584_v25 }
0x2eea   : > { %v6586_v39 = vpop.xlane.xlu1 %6585 }
0x2eeb   : > { %v6587_v40 = vmul.f32 0.03125, %v6586_v39 }
0x2eed   : > { %v6588_v41 = vadd.f32 1e-05, %v6587_v40 }
0x2eef   : > { %11218 = vrsqrt.f32 %v6588_v41 }
0x2ef9   : > { %v11219_v42 = vpop.eup %11218 }
0x2efa   : > { %v6590_v44 = vmul.f32 %v11219_v42, %v6582_v17 }
0x2efc   : > { %v6597_v43 = vmul.f32 %v9655_v51, %v6590_v44 }
0x2efe   : > { %v12975_v49 = vadd.f32 %v9656_v47, %v6597_v43 }
0x2f00   : > { %10550 = vmatmul.mubr.msk.f32.vlgmr.msra.gmra.mrb[66].mxu0 %vm1099_vm3, %v12975_v49  ;;  %10572 = vmatmul.mubr.msk.f32.vlgmr.msra.gmra.mrb[70].mxu1 %vm1099_vm3, %v12975_v49 }
0x2f01   : > { %10926 = vmatpush3.bf16.msra.mxu0 %v10925_v48  ;;  %10560 = vmatprep.mubr.msk.f32.mxu0 %vm11671_vm0, %v11672_v8 }
0x2f02   : > { %10927 = vmatprep.subr.bf16.mxu0 %v11670_v1  ;;  %10581 = vmatprep.mubr.msk.f32.mxu1 %vm11671_vm0, %v11672_v8 }
0x2f05   : > { %10929 = vmatpush3.bf16.msra.mxu0 %v10928_v52 }
0x2f06   : > { %10574 = vmatprep.subr.mxu0 %v11672_v8 }
0x2f08   : > { %10561 = vmatmul.mubr.msk.f32.vlgmr.msra.gmra.mrb[68].mxu0 %vm1099_vm3, %v12975_v49 }
0x2f09   : > { %10576 = vmatprep.mubr.msk.f32.mxu0 %vm11671_vm0, %v11672_v8 }
0x2fd3   : > { %v6694_v22 = vpop.f32.mrb[66].mxu0  ;;  %v12997_v53 = vpop.f32.mrb[70].mxu1 }
0x2fd4   : > { %v6698_v54 = vmul.f32 0.35355338, %v6694_v22  ;;  %v10551_v57 = vpop.f32.mrb[67].mxu0  ;;  %v10573_v58 = vpop.f32.mrb[71].mxu1  ;;  %10580 = vmatpush3.msra.mxu1 %v12997_v53  ;;  %v6623_v22 = vld [vmem:[#allocation7 + $0x30] sm:$0xff] }
0x2fd5   : > { %10589 = vmatprep.subr.mxu1 %v11672_v8 }
0x2fd6   : > { %6999 = vrot.lane.b32.xlu1 %v6698_v54, %s13415_s0 }
0x2fdb   : > { %v13002_v61 = vpop.f32.mrb[68].mxu0 }
0x2fdc   : > { %7001 = vrot.lane.b32.xlu0 %v13002_v61, %s13415_s0  ;;  %v10562_v59 = vpop.f32.mrb[69].mxu0  ;;  %10575 = vmatpush3.xpose.msk.msra.mxu0 %vm1314_vm4, %v13002_v61 }
0x2fdd   : > { %10584 = vmatprep.subr.mxu0 %v11672_v8 }
0x2fdf   : > { %10577 = vmatmul.mubr.msk.f32.vlgmr.msra.gmra.mrb[70].mxu0 %vm1314_vm4, %v6698_v54 }
0x2fe0   : > { %10586 = vmatprep.mubr.msk.f32.mxu0 %vm11671_vm0, %v11672_v8 }
0x3048   : > { %v7000_v62 = vpop.permute.xlu1 %6999 }
0x304e   : > { %v7002_v60 = vpop.permute.xlu0 %7001 }
0x304f   : > { %10585 = vmatpush3.xpose.msk.msra.mxu0 %vm1314_vm4, %v7002_v60 }
0x3050   : > { %10594 = vmatprep.subr.mxu0 %v11672_v8 }
0x3052   : > { %10587 = vmatmul.mubr.msk.f32.vlgmr.msra.gmra.mrb[72].mxu0 %vm1314_vm4, %v7000_v62 }
0x3053   : > { %10596 = vmatprep.mubr.msk.f32.mxu0 %vm11671_vm0, %v11672_v8  ;;  %10595 = vmatpush3.msra.mxu0 %v6622_v21 }
0x3054   : > { %10604 = vmatprep.subr.mxu0 %v11672_v8 }
0x30b2   : > { %v6911_v0 = vpop.f32.mrb[70].mxu0 }
0x30b3   : > { %v6912_v2 = vadd.f32 %v6911_v0, %v12721_v6  ;;  %v10578_v3 = vpop.f32.mrb[71].mxu0 }
0x30b5   : > { %v6915_v4 = vsel %vm1314_vm4, %v6912_v2, -inf }
0x30b6   : > { %6916 = vmax.xlane.f32.xlu0 %v6915_v4 }
0x30cc   : > { %7087 = vrot.lane.b32.xlu0 %v12997_v53, %s13415_s0 }
0x30d0   : > { %7313 = vrot.lane.b32.xlu0 %v13002_v61, %s13416_s13 }
0x3125   : > { %v7073_v5 = vpop.f32.mrb[72].mxu0 }
0x3126   : > { %v7074_v7 = vadd.f32 %v7073_v5, %v12721_v6  ;;  %v10588_v63 = vpop.f32.mrb[73].mxu0 }
0x3128   : > { %v7077_v9 = vsel %vm1314_vm4, %v7074_v7, -inf }
0x3129   : > { %7078 = vmax.xlane.f32.xlu1 %v7077_v9 }
0x3143   : > { %v6917_v10 = vpop.xlane.xlu0 %6916 }
0x3144   : > { %v6918_v11 = vsub.f32 %v6912_v2, %v6917_v10 }
0x3146   : > { %v6919_v12 = vmul.f32 1.442695, %v6918_v11  ;;  %v6624_v11 = vld [vmem:[#allocation7 + $0x38] sm:$0xff] }
0x3147   : > { %v7088_v37 = vpop.permute.xlu0 %7087 }
0x3148   : > { %11220 = vpow2.f32 %v6919_v12 }
0x314b   : > { %v7314_v17 = vpop.permute.xlu0 %7313 }
0x3152   : > { %v11221_v23 = vpop.eup %11220 }
0x3153   : > { %10582 = vmatmul.mubr.msk.f32.vlgmr.msra.gmra.mrb[72].mxu1 %vm1314_vm4, %v11221_v23  ;;  %v6921_v15 = vsel %vm1314_vm4, %v11221_v23, 0.0  ;;  %v7827_v23 = vld [vmem:[#allocation10 + $0x20] sm:$0xff] }
0x3154   : > { %10590 = vmatpush3.msra.mxu1 %v7088_v37  ;;  %6922 = vadd.xlane.f32.xlu0 %v6921_v15  ;;  %v7828_v37 = vld [vmem:[#allocation10 + $0x28] sm:$0xff] }
0x3155   : > { %10591 = vmatprep.mubr.msk.f32.mxu1 %vm11671_vm0, %v11672_v8  ;;  %10599 = vmatprep.subr.mxu1 %v11672_v8 }
0x316a   : > { %7398 = vrot.lane.b32.xlu0 %v12997_v53, %s13416_s13 }
0x316e   : > { %7550 = vrot.lane.b32.xlu0 %v6698_v54, %s13408_s12 }
0x31b6   : > { %v7079_v16 = vpop.xlane.xlu1 %7078 }
0x31b7   : > { %v7080_v14 = vsub.f32 %v7074_v7, %v7079_v16 }
0x31b9   : > { %v7081_v56 = vmul.f32 1.442695, %v7080_v14  ;;  %v10943_v14 = vpack.c.bf16 %v7828_v37, %v7827_v23 }
0x31bb   : > { %11222 = vpow2.f32 %v7081_v56 }
0x31c5   : > { %v11223_v19 = vpop.eup %11222 }
0x31c6   : > { %10592 = vmatmul.mubr.msk.f32.vlgmr.msra.gmra.mrb[74].mxu1 %vm1314_vm4, %v11223_v19  ;;  %v7083_v20 = vsel %vm1314_vm4, %v11223_v19, 0.0  ;;  %v7829_v19 = vld [vmem:[#allocation10 + $0x30] sm:$0xff] }
0x31c7   : > { %7084 = vadd.xlane.f32.xlu1 %v7083_v20  ;;  %10600 = vmatpush3.msra.mxu1 %v6621_v18  ;;  %v7830_v20 = vld [vmem:[#allocation10 + $0x38] sm:$0xff] }
0x31c8   : > { %10601 = vmatprep.mubr.msk.f32.mxu1 %vm11671_vm0, %v11672_v8  ;;  %10609 = vmatprep.subr.mxu1 %v11672_v8  ;;  %v10946_v21 = vpack.c.bf16 %v7830_v20, %v7829_v19 }
0x31d8   : > { %7311 = vrot.lane.b32.xlu1 %v6698_v54, %s13416_s13 }
0x31e1   : > { %v6923_v24 = vpop.xlane.xlu0 %6922 }
0x31e2   : > { %11224 = vrcp.f32 %v6923_v24 }
0x31e5   : > { %v7399_v29 = vpop.permute.xlu0 %7398 }
0x31e9   : > { %v7551_v52 = vpop.permute.xlu0 %7550 }
0x31ec   : > { %v11225_v25 = vpop.eup %11224 }
0x3226   : > { %v6993_v26 = vpop.f32.mrb[72].mxu1 }
0x3227   : > { %v6998_v27 = vmul.f32 %v11225_v25, %v6993_v26  ;;  %v10583_v28 = vpop.f32.mrb[73].mxu1 }
0x3229   : > { %10602 = vmatmul.mubr.msk.f32.vlgmr.msra.gmra.mrb[76].mxu1 %vm1314_vm4, %v6998_v27 }
0x322a   : > { %10610 = vmatpush3.msra.mxu1 %v7399_v29  ;;  %10611 = vmatprep.mubr.msk.f32.mxu1 %vm11671_vm0, %v11672_v8 }
0x322b   : > { %10619 = vmatprep.subr.mxu1 %v11672_v8 }
0x3254   : > { %v7085_v30 = vpop.xlane.xlu1 %7084 }
0x3255   : > { %11226 = vrcp.f32 %v7085_v30 }
0x3258   : > { %v7312_v35 = vpop.permute.xlu1 %7311 }
0x325f   : > { %v11227_v31 = vpop.eup %11226 }
0x3299   : > { %v7159_v32 = vpop.f32.mrb[74].mxu1 }
0x329a   : > { %v7164_v33 = vmul.f32 %v11227_v31, %v7159_v32  ;;  %v10593_v34 = vpop.f32.mrb[75].mxu1 }
0x329b   : > { %v7822_v34 = vld [vmem:[#allocation8 + $0x20] sm:$0xff] }
0x329c   : > { %10597 = vmatmul.mubr.msk.f32.vlgmr.msra.gmra.mrb[74].mxu0 %vm1314_vm4, %v7164_v33 }
0x329d   : > { %10605 = vmatpush3.xpose.msk.msra.mxu0 %vm1314_vm4, %v7314_v17  ;;  %10606 = vmatprep.mubr.msk.f32.mxu0 %vm11671_vm0, %v11672_v8 }
0x329e   : > { %10614 = vmatprep.subr.mxu0 %v11672_v8 }
0x32a0   : > { %10607 = vmatmul.mubr.msk.f32.vlgmr.msra.gmra.mrb[76].mxu0 %vm1314_vm4, %v7312_v35  ;;  %v7823_v35 = vld [vmem:[#allocation8 + $0x28] sm:$0xff] }
0x32a1   : > { %10616 = vmatprep.mubr.msk.f32.mxu0 %vm11671_vm0, %v11672_v8  ;;  %10615 = vmatpush3.msra.mxu0 %v6623_v22  ;;  %v7834_v22 = vld [vmem:[#allocation11 + $0x30] sm:$0xff] }
0x32a2   : > { %10624 = vmatprep.subr.mxu0 %v11672_v8 }
0x32fc   : > { %v7307_v36 = vpop.f32.mrb[76].mxu1 }
0x32fd   : > { %v10603_v38 = vpop.f32.mrb[77].mxu1 }
0x32fe   : > { %v7824_v38 = vld [vmem:[#allocation8 + $0x30] sm:$0xff] }
0x336f   : > { %v7234_v39 = vpop.f32.mrb[74].mxu0 }
0x3370   : > { %v7308_v40 = vadd.f32 %v7307_v36, %v7234_v39  ;;  %v10598_v41 = vpop.f32.mrb[75].mxu0  ;;  %v10937_v36 = vpack.c.bf16 %v7823_v35, %v7822_v34  ;;  %v7825_v39 = vld [vmem:[#allocation8 + $0x38] sm:$0xff] }
0x3373   : > { %v7385_v42 = vpop.f32.mrb[76].mxu0 }
0x3374   : > { %v7386_v51 = vadd.f32 %v7385_v42, %v12721_v6  ;;  %v10608_v44 = vpop.f32.mrb[77].mxu0 }
0x3376   : > { %v7389_v45 = vsel %vm1314_vm4, %v7386_v51, -inf }
0x3377   : > { %7390 = vmax.xlane.f32.xlu1 %v7389_v45  ;;  %v9688_v45 = vld [vmem:[#allocation16 + $0x3] ss:$0 sm:$0xff] }
0x3388   : > { %7552 = vrot.lane.b32.xlu1 %v13002_v61, %s13408_s12 }
0x3404   : > { %v7391_v46 = vpop.xlane.xlu1 %7390 }
0x3405   : > { %v7392_v47 = vsub.f32 %v7386_v51, %v7391_v46 }
0x3407   : > { %v7393_v43 = vmul.f32 1.442695, %v7392_v47  ;;  %v7832_v47 = vld [vmem:[#allocation11 + $0x20] sm:$0xff] }
0x3408   : > { %v7553_v50 = vpop.permute.xlu1 %7552 }
0x3409   : > { %11228 = vpow2.f32 %v7393_v43  ;;  %v7833_v43 = vld [vmem:[#allocation11 + $0x28] sm:$0xff] }
0x3413   : > { %v11229_v48 = vpop.eup %11228 }
0x3414   : > { %10612 = vmatmul.mubr.msk.f32.vlgmr.msra.gmra.mrb[78].mxu1 %vm1314_vm4, %v11229_v48  ;;  %v7395_v13 = vsel %vm1314_vm4, %v11229_v48, 0.0  ;;  %v9689_v48 = vld [vmem:[#allocation17 + $0x3] ss:$0 sm:$0xff] }
0x3415   : > { %10620 = vmatpush3.xpose.msk.msra.mxu1 %vm1314_vm4, %v7553_v50  ;;  %7396 = vadd.xlane.f32.xlu0 %v7395_v13  ;;  %v10949_v13 = vpack.c.bf16 %v7833_v43, %v7832_v47 }
0x3416   : > { %10621 = vmatprep.mubr.msk.f32.mxu1 %vm11671_vm0, %v11672_v8  ;;  %10629 = vmatprep.subr.mxu1 %v11672_v8 }
0x3418   : > { %10622 = vmatmul.mubr.msk.f32.vlgmr.msra.gmra.mrb[80].mxu1 %vm1314_vm4, %v7551_v52 }
0x3419   : > { %10631 = vmatprep.mubr.msk.f32.mxu1 %vm11671_vm0, %v11672_v8  ;;  %10630 = vmatpush3.msra.mxu1 %v6624_v11 }
0x341a   : > { %10942 = vmatprep.subr.bf16.mxu1 %v11670_v1 }
0x342b   : > { %7637 = vrot.lane.b32.xlu0 %v12997_v53, %s13408_s12 }
0x34a2   : > { %v7397_v54 = vpop.xlane.xlu0 %7396 }
0x34a3   : > { %11230 = vrcp.f32 %v7397_v54  ;;  %v7835_v54 = vld [vmem:[#allocation11 + $0x38] sm:$0xff] }
0x34a6   : > { %v7638_v60 = vpop.permute.xlu0 %7637 }
0x34ad   : > { %v11231_v57 = vpop.eup %11230 }
0x34e7   : > { %v7470_v58 = vpop.f32.mrb[78].mxu1 }
0x34e8   : > { %v7475_v61 = vmul.f32 %v11231_v57, %v7470_v58  ;;  %v10613_v59 = vpop.f32.mrb[79].mxu1  ;;  %v10952_v57 = vpack.c.bf16 %v7835_v54, %v7834_v22 }
0x34ea   : > { %10617 = vmatmul.mubr.msk.f32.vlgmr.msra.gmra.mrb[78].mxu0 %vm1314_vm4, %v7475_v61 }
0x34eb   : > { %10625 = vmatpush3.msra.mxu0 %v7638_v60  ;;  %v7624_v62 = vpop.f32.mrb[80].mxu1  ;;  %10626 = vmatprep.mubr.msk.f32.mxu0 %vm11671_vm0, %v11672_v8 }
0x34ec   : > { %v7625_v53 = vadd.f32 %v7624_v62, %v12721_v6  ;;  %v10623_v0 = vpop.f32.mrb[81].mxu1  ;;  %10936 = vmatprep.subr.bf16.mxu0 %v11670_v1 }
0x34ee   : > { %v7628_v2 = vsel %vm1314_vm4, %v7625_v53, -inf }
0x34ef   : > { %7629 = vmax.xlane.f32.xlu1 %v7628_v2 }
0x357c   : > { %v7630_v3 = vpop.xlane.xlu1 %7629 }
0x357d   : > { %v7631_v4 = vsub.f32 %v7625_v53, %v7630_v3 }
0x357f   : > { %v7632_v5 = vmul.f32 1.442695, %v7631_v4 }
0x3581   : > { %11232 = vpow2.f32 %v7632_v5 }
0x358b   : > { %v11233_v7 = vpop.eup %11232 }
0x358c   : > { %10627 = vmatmul.mubr.msk.f32.vlgmr.msra.gmra.mrb[80].mxu0 %vm1314_vm4, %v11233_v7  ;;  %v7634_v63 = vsel %vm1314_vm4, %v11233_v7, 0.0 }
0x358d   : > { %7635 = vadd.xlane.f32.xlu1 %v7634_v63  ;;  %10642 = vmatprep.mubr.msk.f32.mxu0 %vm11671_vm0, %v11672_v8 }
0x358e   : > { %10938 = vmatpush3.bf16.msra.mxu0 %v10937_v36 }
0x358f   : > { %10939 = vmatprep.subr.bf16.mxu0 %v11670_v1 }
0x35bd   : > { %v7545_v6 = vpop.f32.mrb[78].mxu0 }
0x35be   : > { %v7549_v9 = vadd.f32 %v7545_v6, %v7308_v40  ;;  %v10618_v10 = vpop.f32.mrb[79].mxu0  ;;  %v10940_v40 = vpack.c.bf16 %v7825_v39, %v7824_v38 }
0x35c0   : > { %10941 = vmatpush3.bf16.msra.mxu0 %v10940_v40 }
0x35c1   : > { %10948 = vmatprep.subr.bf16.mxu0 %v11670_v1 }
0x361a   : > { %v7636_v12 = vpop.xlane.xlu1 %7635 }
0x361b   : > { %11234 = vrcp.f32 %v7636_v12 }
0x3625   : > { %v11235_v15 = vpop.eup %11234 }
0x365f   : > { %v7709_v16 = vpop.f32.mrb[80].mxu0 }
0x3660   : > { %v7714_v56 = vmul.f32 %v11235_v15, %v7709_v16  ;;  %v10628_v18 = vpop.f32.mrb[81].mxu0  ;;  %v7837_v16 = vld [vmem:[#allocation13 + $0x20] sm:$0xff] }
0x3661   : > { %v7838_v18 = vld [vmem:[#allocation13 + $0x28] sm:$0xff] }
0x3662   : > { %10632 = vmatmul.mubr.msk.f32.vlgmr.msra.gmra.mrb[82].mxu1 %vm1314_vm4, %v7714_v56 }
0x3663   : > { %10944 = vmatpush3.bf16.msra.mxu1 %v10943_v14  ;;  %10653 = vmatprep.mubr.msk.f32.mxu1 %vm11671_vm0, %v11672_v8 }
0x3664   : > { %10945 = vmatprep.subr.bf16.mxu1 %v11670_v1 }
0x3667   : > { %10947 = vmatpush3.bf16.msra.mxu1 %v10946_v21 }
0x3668   : > { %10667 = vmatprep.subr.mxu1 %v11672_v8 }
0x366a   : > { %10654 = vmatmul.mubr.msk.f32.vlgmr.msra.gmra.mrb[84].mxu1 %vm1099_vm3, %v12799_v55 }
0x366b   : > { %10669 = vmatprep.mubr.msk.f32.mxu1 %vm11671_vm0, %v11672_v8 }
0x3735   : > { %v7784_v17 = vpop.f32.mrb[82].mxu1 }
0x3736   : > { %v7788_v24 = vadd.f32 %v7784_v17, %v7549_v9  ;;  %v10633_v25 = vpop.f32.mrb[83].mxu1 }
0x3738   : > { %v7789_v26 = vadd.f32 %v7788_v24, %v12975_v49 }
0x373a   : > { %v7794_v27 = vsel %vm1099_vm3, %v7789_v26, 0.0 }
0x373b   : > { %7795 = vadd.xlane.f32.xlu1 %v7794_v27 }
0x373d   : > { %v13090_v28 = vpop.f32.mrb[84].mxu1 }
0x373e   : > { %v10655_v29 = vpop.f32.mrb[85].mxu1  ;;  %10668 = vmatpush3.xpose.msk.msra.mxu1 %vm1314_vm4, %v13090_v28 }
0x373f   : > { %10672 = vmatprep.subr.mxu1 %v11672_v8 }
0x374c   : > { %8217 = vrot.lane.b32.xlu1 %v13090_v28, %s13415_s0 }
0x37c8   : > { %v7796_v30 = vpop.xlane.xlu1 %7795 }
0x37c9   : > { %v7797_v31 = vmul.f32 0.03125, %v7796_v30 }
0x37cb   : > { %v7798_v32 = vsub.f32 %v7789_v26, %v7797_v31 }
0x37cc   : > { %v8218_v58 = vpop.permute.xlu1 %8217 }
0x37cd   : > { %v7799_v33 = vmul.f32 %v7798_v32, %v7798_v32 }
0x37cf   : > { %v7800_v49 = vsel %vm1099_vm3, %v7799_v33, 0.0 }
0x37d0   : > { %7801 = vadd.xlane.f32.xlu0 %v7800_v49 }
0x385d   : > { %v7802_v41 = vpop.xlane.xlu0 %7801 }
0x385e   : > { %v7803_v42 = vmul.f32 0.03125, %v7802_v41 }
0x3860   : > { %v7804_v51 = vadd.f32 1e-05, %v7803_v42 }
0x3862   : > { %11236 = vrsqrt.f32 %v7804_v51 }
0x386c   : > { %v11237_v44 = vpop.eup %11236 }
0x386d   : > { %v7806_v46 = vmul.f32 %v11237_v44, %v7798_v32 }
0x386f   : > { %v7813_v50 = vmul.f32 %v9688_v45, %v7806_v46 }
0x3871   : > { %v13100_v52 = vadd.f32 %v9689_v48, %v7813_v50 }
0x3873   : > { %10643 = vmatmul.mubr.msk.f32.vlgmr.msra.gmra.mrb[82].mxu0 %vm1099_vm3, %v13100_v52 }
0x3874   : > { %10950 = vmatpush3.bf16.msra.mxu0 %v10949_v13  ;;  %10664 = vmatprep.mubr.msk.f32.mxu0 %vm11671_vm0, %v11672_v8 }
0x3875   : > { %10951 = vmatprep.subr.bf16.mxu0 %v11670_v1 }
0x3878   : > { %10953 = vmatpush3.bf16.msra.mxu0 %v10952_v57 }
0x3879   : > { %10677 = vmatprep.subr.mxu0 %v11672_v8 }
0x387b   : > { %10665 = vmatmul.mubr.msk.f32.vlgmr.msra.gmra.mrb[84].mxu0 %vm1099_vm3, %v12799_v55 }
0x387c   : > { %10679 = vmatprep.mubr.msk.f32.mxu0 %vm11671_vm0, %v11672_v8 }
0x3881   : > { %10678 = vmatpush3.xpose.msk.msra.mxu0 %vm1314_vm4, %v8218_v58 }
0x3882   : > { %10687 = vmatprep.subr.mxu0 %v11672_v8 }
0x3946   : > { %v7910_v61 = vpop.f32.mrb[82].mxu0 }
0x3947   : > { %v7914_v59 = vmul.f32 0.35355338, %v7910_v61  ;;  %v10644_v60 = vpop.f32.mrb[83].mxu0 }
0x3949   : > { %8215 = vrot.lane.b32.xlu1 %v7914_v59, %s13415_s0  ;;  %10670 = vmatmul.mubr.msk.f32.vlgmr.msra.gmra.mrb[86].mxu1 %vm1314_vm4, %v7914_v59 }
0x394a   : > { %10674 = vmatprep.mubr.msk.f32.mxu1 %vm11671_vm0, %v11672_v8 }
0x394e   : > { %v13118_v62 = vpop.f32.mrb[84].mxu0 }
0x394f   : > { %v10666_v55 = vpop.f32.mrb[85].mxu0  ;;  %10673 = vmatpush3.msra.mxu1 %v13118_v62 }
0x3950   : > { %10682 = vmatprep.subr.mxu1 %v11672_v8 }
0x39bb   : > { %v8216_v53 = vpop.permute.xlu1 %8215 }
0x39bc   : > { %10680 = vmatmul.mubr.msk.f32.vlgmr.msra.gmra.mrb[86].mxu0 %vm1314_vm4, %v8216_v53 }
0x39bd   : > { %10689 = vmatprep.mubr.msk.f32.mxu0 %vm11671_vm0, %v11672_v8  ;;  %10688 = vmatpush3.msra.mxu0 %v7838_v18 }
0x39be   : > { %10697 = vmatprep.subr.mxu0 %v11672_v8 }
0x3a1c   : > { %v8127_v0 = vpop.f32.mrb[86].mxu1 }
0x3a1d   : > { %v10671_v2 = vpop.f32.mrb[87].mxu1  ;;  %v8131_v3 = vsel %vm1314_vm4, %v8127_v0, -inf }
0x3a1e   : > { %8132 = vmax.xlane.f32.xlu1 %v8131_v3 }
0x3a2f   : > { %8529 = vrot.lane.b32.xlu1 %v13090_v28, %s13416_s13 }
0x3a33   : > { %8527 = vrot.lane.b32.xlu1 %v7914_v59, %s13416_s13 }
0x3a8f   : > { %v8289_v4 = vpop.f32.mrb[86].mxu0 }
0x3a90   : > { %v10681_v5 = vpop.f32.mrb[87].mxu0  ;;  %v8293_v7 = vsel %vm1314_vm4, %v8289_v4, -inf }
0x3a91   : > { %8294 = vmax.xlane.f32.xlu0 %v8293_v7  ;;  %v7840_v5 = vld [vmem:[#allocation13 + $0x38] sm:$0xff] }
0x3aa7   : > { %8303 = vrot.lane.b32.xlu0 %v13118_v62, %s13415_s0  ;;  %s9309_s0 = scalar_lea.sflag [#allocation4], %s980_s5 }
0x3aab   : > { %v8133_v63 = vpop.xlane.xlu1 %8132 }
0x3aac   : > { %v8134_v6 = vsub.f32 %v8127_v0, %v8133_v63 }
0x3aae   : > { %v8135_v9 = vmul.f32 1.442695, %v8134_v6 }
0x3aaf   : > { %v8530_v19 = vpop.permute.xlu1 %8529 }
0x3ab0   : > { %11238 = vpow2.f32 %v8135_v9 }
0x3ab3   : > { %v8528_v20 = vpop.permute.xlu1 %8527 }
0x3aba   : > { %v11239_v10 = vpop.eup %11238 }
0x3abb   : > { %10675 = vmatmul.mubr.msk.f32.vlgmr.msra.gmra.mrb[88].mxu1 %vm1314_vm4, %v11239_v10  ;;  %v8137_v11 = vsel %vm1314_vm4, %v11239_v10, 0.0 }
0x3abc   : > { %8138 = vadd.xlane.f32.xlu1 %v8137_v11  ;;  %10684 = vmatprep.mubr.msk.f32.mxu1 %vm11671_vm0, %v11672_v8 }
0x3acd   : > { %8766 = vrot.lane.b32.xlu1 %v7914_v59, %s13408_s12 }
0x3b1e   : > { %v8295_v12 = vpop.xlane.xlu0 %8294 }
0x3b1f   : > { %v8296_v23 = vsub.f32 %v8289_v4, %v8295_v12 }
0x3b21   : > { %v8297_v37 = vmul.f32 1.442695, %v8296_v23 }
0x3b22   : > { %v8304_v15 = vpop.permute.xlu0 %8303 }
0x3b23   : > { %11240 = vpow2.f32 %v8297_v37  ;;  %10683 = vmatpush3.msra.mxu1 %v8304_v15 }
0x3b24   : > { %10692 = vmatprep.subr.mxu1 %v11672_v8 }
0x3b2d   : > { %v11241_v14 = vpop.eup %11240 }
0x3b2e   : > { %10685 = vmatmul.mubr.msk.f32.vlgmr.msra.gmra.mrb[90].mxu1 %vm1314_vm4, %v11241_v14  ;;  %v8299_v56 = vsel %vm1314_vm4, %v11241_v14, 0.0 }
0x3b2f   : > { %8300 = vadd.xlane.f32.xlu0 %v8299_v56  ;;  %10693 = vmatpush3.msra.mxu1 %v7837_v16 }
0x3b30   : > { %10694 = vmatprep.mubr.msk.f32.mxu1 %vm11671_vm0, %v11672_v8  ;;  %10702 = vmatprep.subr.mxu1 %v11672_v8 }
0x3b45   : > { %8614 = vrot.lane.b32.xlu0 %v13118_v62, %s13416_s13  ;;  %s11566_s13 = scalar_lea.vmem %s13233_s30, 128 }
0x3b46   : > { %p11567_p5 = scmp.ne.s32.totalorder %s13233_s30, %s11566_s13  ;;  %p11574_p13 = scmp.lt.s32.totalorder %s11572_s3, %s11566_s13 }
0x3b48   : > { %p11568_p6 = pnand %p11567_p5, %p13422_p0  ;;  %p11575_p12 = por %p11574_p13, %p11573_p10 }
0x3b49   : > { %v8139_v21 = vpop.xlane.xlu1 %8138 }
0x3b4a   : > { %11242 = vrcp.f32 %v8139_v21  ;;  %v9039_v21 = vld [vmem:[#allocation14 + $0x28] sm:$0xff]  ;;  %p11569_p9 = pneg %p11568_p6 }
0x3b4c   : > { %p11576_p1 = pnand %p11575_p12, %p11569_p9 }
0x3b4d   : > { %v8767_v43 = vpop.permute.xlu1 %8766 }
0x3b54   : > { %v11243_v17 = vpop.eup %11242 }
0x3b8e   : > { %v8209_v24 = vpop.f32.mrb[88].mxu1 }
0x3b8f   : > { %v8214_v25 = vmul.f32 %v11243_v17, %v8209_v24  ;;  %v10676_v26 = vpop.f32.mrb[89].mxu1  ;;  %v9040_v24 = vld [vmem:[#allocation14 + $0x30] sm:$0xff] }
0x3b91   : > { %10695 = vmatmul.mubr.msk.f32.vlgmr.msra.gmra.mrb[92].mxu1 %vm1314_vm4, %v8214_v25  ;;  %v9041_v25 = vld [vmem:[#allocation14 + $0x38] sm:$0xff] }
0x3b92   : > { %10704 = vmatprep.mubr.msk.f32.mxu1 %vm11671_vm0, %v11672_v8  ;;  %v10958_v26 = vpack.c.bf16 %v9041_v25, %v9040_v24 }
0x3bbc   : > { %v8301_v27 = vpop.xlane.xlu0 %8300 }
0x3bbd   : > { %11244 = vrcp.f32 %v8301_v27  ;;  %v9712_v27 = vld [vmem:[%s13418_s23 + $0x48] sm:$0xff] }
0x3bc0   : > { %v8615_v29 = vpop.permute.xlu0 %8614 }
0x3bc1   : > { %10703 = vmatpush3.msra.mxu1 %v8615_v29  ;;  %v9713_v29 = vld [vmem:[%s13418_s23 + $0x50] sm:$0xff] }
0x3bc2   : > { %10712 = vmatprep.subr.mxu1 %v11672_v8 }
0x3bc7   : > { %v11245_v30 = vpop.eup %11244 }
0x3c01   : > { %v8375_v31 = vpop.f32.mrb[90].mxu1 }
0x3c02   : > { %v8380_v32 = vmul.f32 %v11245_v30, %v8375_v31  ;;  %v10686_v33 = vpop.f32.mrb[91].mxu1  ;;  %v9714_v31 = vld [vmem:[%s13418_s23 + $0x58] sm:$0xff] }
0x3c03   : > { %v9715_v33 = vld [vmem:[%s13418_s23 + $0x60] sm:$0xff] }
0x3c04   : > { %10690 = vmatmul.mubr.msk.f32.vlgmr.msra.gmra.mrb[88].mxu0 %vm1314_vm4, %v8380_v32  ;;  %v10964_v32 = vpack.c.bf16 %v9714_v31, %v9713_v29 }
0x3c05   : > { %10698 = vmatpush3.xpose.msk.msra.mxu0 %vm1314_vm4, %v8530_v19  ;;  %10699 = vmatprep.mubr.msk.f32.mxu0 %vm11671_vm0, %v11672_v8 }
0x3c06   : > { %10707 = vmatprep.subr.mxu0 %v11672_v8 }
0x3c08   : > { %10700 = vmatmul.mubr.msk.f32.vlgmr.msra.gmra.mrb[90].mxu0 %vm1314_vm4, %v8528_v20  ;;  %v9038_v20 = vld [vmem:[#allocation14 + $0x20] sm:$0xff] }
0x3c09   : > { %10709 = vmatprep.mubr.msk.f32.mxu0 %vm11671_vm0, %v11672_v8  ;;  %v10955_v17 = vpack.c.bf16 %v9039_v21, %v9038_v20 }
0x3c64   : > { %v8523_v49 = vpop.f32.mrb[92].mxu1 }
0x3c65   : > { %v10696_v34 = vpop.f32.mrb[93].mxu1 }
0x3cd7   : > { %v8450_v35 = vpop.f32.mrb[88].mxu0 }
0x3cd8   : > { %v8524_v36 = vadd.f32 %v8523_v49, %v8450_v35  ;;  %v10691_v38 = vpop.f32.mrb[89].mxu0  ;;  %v9716_v49 = vld [vmem:[%s13418_s23 + $0x68] sm:$0xff] }
0x3cd9   : > { %v10967_v34 = vpack.c.bf16 %v9716_v49, %v9715_v33 }
0x3cdb   : > { %v8601_v39 = vpop.f32.mrb[90].mxu0 }
0x3cdc   : > { %v10701_v40 = vpop.f32.mrb[91].mxu0  ;;  %v8605_v41 = vsel %vm1314_vm4, %v8601_v39, -inf }
0x3cdd   : > { %8606 = vmax.xlane.f32.xlu0 %v8605_v41  ;;  %v9709_v40 = vld [vmem:[#allocation16 + $0x4] ss:$0 sm:$0xff] }
0x3cf3   : > { %8768 = vrot.lane.b32.xlu0 %v13090_v28, %s13408_s12  ;;  %v7839_v28 = vld [vmem:[#allocation13 + $0x30] sm:$0xff] }
0x3cf4   : > { %10708 = vmatpush3.msra.mxu0 %v7839_v28 }
0x3cf5   : > { %10717 = vmatprep.subr.mxu0 %v11672_v8 }
0x3d6a   : > { %v8607_v42 = vpop.xlane.xlu0 %8606 }
0x3d6b   : > { %v8608_v51 = vsub.f32 %v8601_v39, %v8607_v42  ;;  %v9710_v42 = vld [vmem:[#allocation17 + $0x4] ss:$0 sm:$0xff] }
0x3d6d   : > { %v8609_v44 = vmul.f32 1.442695, %v8608_v51 }
0x3d6e   : > { %v8769_v46 = vpop.permute.xlu0 %8768 }
0x3d6f   : > { %11246 = vpow2.f32 %v8609_v44 }
0x3d79   : > { %v11247_v45 = vpop.eup %11246 }
0x3d7a   : > { %10705 = vmatmul.mubr.msk.f32.vlgmr.msra.gmra.mrb[94].mxu1 %vm1314_vm4, %v11247_v45  ;;  %v8611_v47 = vsel %vm1314_vm4, %v11247_v45, 0.0  ;;  %v9717_v45 = vld [vmem:[%s13418_s23 + $0x70] sm:$0xff] }
0x3d7b   : > { %10713 = vmatpush3.xpose.msk.msra.mxu1 %vm1314_vm4, %v8769_v46  ;;  %8612 = vadd.xlane.f32.xlu0 %v8611_v47  ;;  %v9718_v46 = vld [vmem:[%s13418_s23 + $0x78] sm:$0xff] }
0x3d7c   : > { %10714 = vmatprep.mubr.msk.f32.mxu1 %vm11671_vm0, %v11672_v8  ;;  %10722 = vmatprep.subr.mxu1 %v11672_v8  ;;  %v10970_v47 = vpack.c.bf16 %v9718_v46, %v9717_v45 }
0x3d7e   : > { %10715 = vmatmul.mubr.msk.f32.vlgmr.msra.gmra.mrb[96].mxu1 %vm1314_vm4, %v8767_v43 }
0x3d7f   : > { %10724 = vmatprep.mubr.msk.f32.mxu1 %vm11671_vm0, %v11672_v8  ;;  %10723 = vmatpush3.msra.mxu1 %v7840_v5 }
0x3d80   : > { %10960 = vmatprep.subr.bf16.mxu1 %v11670_v1 }
0x3d91   : > { %8853 = vrot.lane.b32.xlu0 %v13118_v62, %s13408_s12  ;;  %s13231_s12 = scalar_lea.hbm %s13421_s29, %s9725_s2 }
0x3e08   : > { %v8613_v48 = vpop.xlane.xlu0 %8612 }
0x3e09   : > { %11248 = vrcp.f32 %v8613_v48 }
0x3e0c   : > { %v8854_v57 = vpop.permute.xlu0 %8853 }
0x3e13   : > { %v11249_v50 = vpop.eup %11248 }
0x3e4d   : > { %v8686_v13 = vpop.f32.mrb[94].mxu1 }
0x3e4e   : > { %v8691_v22 = vmul.f32 %v11249_v50, %v8686_v13  ;;  %v10706_v54 = vpop.f32.mrb[95].mxu1 }
0x3e50   : > { %10710 = vmatmul.mubr.msk.f32.vlgmr.msra.gmra.mrb[92].mxu0 %vm1314_vm4, %v8691_v22 }
0x3e51   : > { %10718 = vmatpush3.msra.mxu0 %v8854_v57  ;;  %v8840_v58 = vpop.f32.mrb[96].mxu1  ;;  %10719 = vmatprep.mubr.msk.f32.mxu0 %vm11671_vm0, %v11672_v8 }
0x3e52   : > { %v10716_v61 = vpop.f32.mrb[97].mxu1  ;;  %v8844_v59 = vsel %vm1314_vm4, %v8840_v58, -inf  ;;  %10954 = vmatprep.subr.bf16.mxu0 %v11670_v1 }
0x3e53   : > { %8845 = vmax.xlane.f32.xlu1 %v8844_v59 }
0x3ee0   : > { %v8846_v60 = vpop.xlane.xlu1 %8845 }
0x3ee1   : > { %v8847_v62 = vsub.f32 %v8840_v58, %v8846_v60  ;;  %v9230_v60 = vld [vmem:[#allocation19] sm:$0xff] }
0x3ee3   : > { %v8848_v55 = vmul.f32 1.442695, %v8847_v62  ;;  %v9231_v62 = vld [vmem:[#allocation19 + $0x8] sm:$0xff] }
0x3ee5   : > { %11250 = vpow2.f32 %v8848_v55  ;;  %v10973_v55 = vpack.c.bf16 %v9231_v62, %v9230_v60 }
0x3eef   : > { %v11251_v53 = vpop.eup %11250 }
0x3ef0   : > { %10720 = vmatmul.mubr.msk.f32.vlgmr.msra.gmra.mrb[94].mxu0 %vm1314_vm4, %v11251_v53  ;;  %v8850_v0 = vsel %vm1314_vm4, %v11251_v53, 0.0  ;;  %v9232_v53 = vld [vmem:[#allocation19 + $0x10] sm:$0xff] }
0x3ef1   : > { %8851 = vadd.xlane.f32.xlu1 %v8850_v0  ;;  %10735 = vmatprep.mubr.msk.f32.mxu0 %vm11671_vm0, %v11672_v8  ;;  %v9233_v0 = vld [vmem:[#allocation19 + $0x18] sm:$0xff] }
0x3ef2   : > { %10956 = vmatpush3.bf16.msra.mxu0 %v10955_v17 }
0x3ef3   : > { %10957 = vmatprep.subr.bf16.mxu0 %v11670_v1 }
0x3ef6   : > { %10959 = vmatpush3.bf16.msra.mxu0 %v10958_v26 }
0x3ef7   : > { %10972 = vmatprep.subr.bf16.mxu0 %v11670_v1 }
0x3f23   : > { %v8761_v2 = vpop.f32.mrb[92].mxu0 }
0x3f24   : > { %v8765_v3 = vadd.f32 %v8761_v2, %v8524_v36  ;;  %v10711_v4 = vpop.f32.mrb[93].mxu0  ;;  %v10976_v2 = vpack.c.bf16 %v9233_v0, %v9232_v53 }
0x3f7e   : > { %v8852_v7 = vpop.xlane.xlu1 %8851 }
0x3f7f   : > { %11252 = vrcp.f32 %v8852_v7 }
0x3f89   : > { %v11253_v63 = vpop.eup %11252 }
0x3fc3   : > { %v8925_v6 = vpop.f32.mrb[94].mxu0 }
0x3fc4   : > { %v8930_v9 = vmul.f32 %v11253_v63, %v8925_v6  ;;  %v10721_v10 = vpop.f32.mrb[95].mxu0  ;;  %v9721_v63 = vld [vmem:[#allocation16 + $0x5] ss:$0 sm:$0xff] }
0x3fc6   : > { %10725 = vmatmul.mubr.msk.f32.vlgmr.msra.gmra.mrb[98].mxu1 %vm1314_vm4, %v8930_v9  ;;  %v9722_v9 = vld [vmem:[#allocation17 + $0x5] ss:$0 sm:$0xff] }
0x3fc7   : > { %10754 = vmatprep.mubr.msk.f32.mxu1 %vm11671_vm0, %v11672_v8 }
0x4099   : > { %v9000_v11 = vpop.f32.mrb[98].mxu1 }
0x409a   : > { %v9004_v12 = vadd.f32 %v9000_v11, %v8765_v3  ;;  %v10726_v23 = vpop.f32.mrb[99].mxu1 }
0x409c   : > { %v9005_v37 = vadd.f32 %v9004_v12, %v13100_v52  ;;  %v9711_v52 = vld [vmem:[%s13418_s23 + $0x40] sm:$0xff] }
0x409d   : > { %v10961_v30 = vpack.c.bf16 %v9712_v27, %v9711_v52 }
0x409e   : > { %v9010_v15 = vsel %vm1099_vm3, %v9005_v37, 0.0 }
0x409f   : > { %9011 = vadd.xlane.f32.xlu0 %v9010_v15  ;;  %10962 = vmatpush3.bf16.msra.mxu1 %v10961_v30 }
0x40a0   : > { %10963 = vmatprep.subr.bf16.mxu1 %v11670_v1 }
0x40a3   : > { %10965 = vmatpush3.bf16.msra.mxu1 %v10964_v32 }
0x40a4   : > { %10966 = vmatprep.subr.bf16.mxu1 %v11670_v1 }
0x40a7   : > { %10968 = vmatpush3.bf16.msra.mxu1 %v10967_v34 }
0x40a8   : > { %10969 = vmatprep.subr.bf16.mxu1 %v11670_v1 }
0x40ab   : > { %10971 = vmatpush3.bf16.msra.mxu1 %v10970_v47 }
0x412c   : > { %v9012_v16 = vpop.xlane.xlu0 %9011 }
0x412d   : > { %v9013_v14 = vmul.f32 0.03125, %v9012_v16 }
0x412f   : > { %v9014_v56 = vsub.f32 %v9005_v37, %v9013_v14 }
0x4131   : > { %v9015_v18 = vmul.f32 %v9014_v56, %v9014_v56 }
0x4133   : > { %v9016_v19 = vsel %vm1099_vm3, %v9015_v18, 0.0 }
0x4134   : > { %9017 = vadd.xlane.f32.xlu1 %v9016_v19 }
0x41c1   : > { %v9018_v35 = vpop.xlane.xlu1 %9017 }
0x41c2   : > { %v9019_v36 = vmul.f32 0.03125, %v9018_v35 }
0x41c4   : > { %v9020_v38 = vadd.f32 1e-05, %v9019_v36 }
0x41c6   : > { %11254 = vrsqrt.f32 %v9020_v38 }
0x41d0   : > { %v11255_v39 = vpop.eup %11254 }
0x41d1   : > { %v9022_v41 = vmul.f32 %v11255_v39, %v9014_v56 }
0x41d3   : > { %v9029_v51 = vmul.f32 %v9709_v40, %v9022_v41 }
0x41d5   : > { %v9036_v44 = vadd.f32 %v9710_v42, %v9029_v51 }
0x41d7   : > { %10736 = vmatmul.mubr.msk.f32.vlgmr.msra.gmra.mrb[96].mxu0 %vm1099_vm3, %v9036_v44 }
0x41d8   : > { %10765 = vmatprep.mubr.msk.f32.mxu0 %vm11671_vm0, %v11672_v8  ;;  %10974 = vmatpush3.bf16.msra.mxu0 %v10973_v55 }
0x41d9   : > { %10975 = vmatprep.subr.bf16.mxu0 %v11670_v1 }
0x41dc   : > { %10977 = vmatpush3.bf16.msra.mxu0 %v10976_v2 }
0x42aa   : > { %v9120_v43 = vpop.f32.mrb[96].mxu0 }
0x42ab   : > { %v9124_v28 = vmax.f32 %v9120_v43, 0.0  ;;  %v10737_v48 = vpop.f32.mrb[97].mxu0 }
0x42ad   : > { %10755 = vmatmul.mubr.msk.f32.vlgmr.msra.gmra.mrb[100].mxu1 %vm1009_vm1, %v9124_v28 }
0x4380   : > { %v9194_v50 = vpop.f32.mrb[100].mxu1 }
0x4381   : > { %v9198_v13 = vadd.f32 %v9194_v50, %v9036_v44  ;;  %v10756_v22 = vpop.f32.mrb[101].mxu1 }
0x4383   : > { %v9203_v8 = vsel %vm1099_vm3, %v9198_v13, 0.0 }
0x4384   : > { %9204 = vadd.xlane.f32.xlu1 %v9203_v8 }
0x4411   : > { %v9205_v54 = vpop.xlane.xlu1 %9204 }
0x4412   : > { %v9206_v57 = vmul.f32 0.03125, %v9205_v54 }
0x4414   : > { %v9207_v58 = vsub.f32 %v9198_v13, %v9206_v57 }
0x4416   : > { %v9208_v61 = vmul.f32 %v9207_v58, %v9207_v58 }
0x4418   : > { %v9209_v59 = vsel %vm1099_vm3, %v9208_v61, 0.0 }
0x4419   : > { %9210 = vadd.xlane.f32.xlu1 %v9209_v59 }
0x44a6   : > { %v9211_v3 = vpop.xlane.xlu1 %9210 }
0x44a7   : > { %v9212_v4 = vmul.f32 0.03125, %v9211_v3 }
0x44a9   : > { %v9213_v5 = vadd.f32 1e-05, %v9212_v4 }
0x44ab   : > { %11256 = vrsqrt.f32 %v9213_v5 }
0x44b5   : > { %v11257_v7 = vpop.eup %11256 }
0x44b6   : > { %v9215_v6 = vmul.f32 %v11257_v7, %v9207_v58 }
0x44b8   : > { %v9222_v10 = vmul.f32 %v9721_v63, %v9215_v6 }
0x44ba   : > { %v9229_v11 = vadd.f32 %v9722_v9, %v9222_v10 }
0x44bc   : > { %10766 = vmatmul.mubr.msk.f32.vlgmr.msra.gmra.mrb[98].mxu0 %vm1099_vm3, %v9229_v11 }
0x458f   : > { %v9303_v1 = vpop.f32.mrb[98].mxu0 }
0x4590   : > { %9307 = vst.msk [vmem:[%s982_s8] sm:$0xff] %vm1009_vm1, %v9303_v1  ;;  %v10767_v12 = vpop.f32.mrb[99].mxu0 }
0x4591   : > { %11579 = shalt.err (!%p11576_p1)
}
0x4592   : > { %s11580_s5 = scalar_lea.hbm %s13231_s12, 128  ;;  %s11584_s7 = scalar_lea.hbm %s13421_s29, 256 }
0x4593   : > { %p11581_p2 = scmp.ne.s32.totalorder %s13231_s12, %s11580_s5  ;;  %p11585_p7 = scmp.lt.u32.totalorder %s13231_s12, %s13421_s29 }
0x4594   : > { %p11586_p8 = scmp.lt.u32.totalorder %s11584_s7, %s11580_s5  ;;  %p11588_p5 = scmp.lt.u32.totalorder %s11580_s5, %s13231_s12 }
0x4595   : > { %p11582_p3 = pnand %p11581_p2, %p13422_p0 }
0x4596   : > { %p11587_p11 = por %p11586_p8, %p11585_p7 }
0x4597   : > { %p11583_p4 = pneg %p11582_p3 }
0x4598   : > { %p11589_p6 = por %p11588_p5, %p11587_p11 }
0x459a   : > { %p11590_p9 = pnand %p11589_p6, %p11583_p4 }
0x459c   : > { %11593 = shalt.err (!%p11590_p9)
}
0x459d   : > { %11022 = dma.vmem_to_hbm [thread:$0]  (%p13422_p0), %s13233_s30, 128, %s13231_s12, %s9309_s0  }
0x459e PF: > { %s13423_s13 = sld [smem:[#allocation31_spill]]  ;;  %s13424_s1 = sld [smem:[#allocation28_spill]] }
0x459f   : > { %s13425_s3 = sld [smem:[#allocation35_spill]] }
0x45a4   : > { %p11084_p10 = scmp.ge.s32.totalorder %s13423_s13, 2  ;;  %s9334_s2 = sand.u32 1, %s13424_s1  }
0x45a5   : > { %p13426_p13 = scmp.ne.s32.totalorder %s13425_s3, 0  ;;  %s9335_s8 = scalar_lea.sflag [#allocation4], %s9334_s2 }
0x45a7   : > { %p11059_p12 = pnand %p11084_p10, %p13426_p13 }
0x45a9   : > { %11635 = dma.done.wait (!%p11059_p12), %s9335_s8, 128  }
0x45aa   : > { %11637 = vsyncadd (!%p11059_p12), %s9335_s8, 4294967168  ;;  %s13427_s30 = sld [smem:[#allocation32_spill]]  ;;  %s13428_s7 = sld [smem:[#allocation29_spill]] }
0x45ab   : > { %s13429_s4 = sld [smem:[#allocation30_spill]]  ;;  %s13430_s8 = sld [smem:[#allocation33_spill]] }
0x45b0   : > { %p43_p1 = scmp.ge.s32.totalorder %s13427_s30, 4  }
0x45b2   :  { %45 = sbr.rel (!%p43_p1) target bundleno = 28 (0x1c), region = 243 }
0x45b9   :  { %9340 = vsyncpa [#allocation3], 1 }
0x45ba   :  { %9342 = vsyncpa [#allocation3 + $0x1], 1 }
0x45bb   :  { %9343 = vsyncpa [#allocation6], 1 }
0x45bc   :  { %9344 = vsyncpa [#allocation9], 1 }
0x45bd   :  { %9345 = vsyncpa [#allocation12], 1 }
0x45be   :  { %9346 = vsyncpa [#allocation15], 1 }
0x45bf   :  { %9347 = vsyncpa [#allocation18], 1 }
0x45c0   :  { %9348 = vsyncpa [#allocation4], 1 }
0x45c1   :  { %9350 = vsyncpa [#allocation4 + $0x1], 1 }

</bundles_post_ra>
